<compile_context>
chip_gen: v7x
topology: tpu7x:2x2x1
jax: 0.10.0
libtpu: 0.0.40
codegen_flags: <defaults>
</compile_context>

<pallas_src>
import jax
import jax.numpy as jnp
from jax.experimental import pallas as pl
from jax.experimental.pallas import tpu as pltpu

jax.config.update("jax_default_matmul_precision", "highest")

EPS = 1e-5
VMEM_LIMIT_BYTES = 32 * 1024 * 1024


# ----------------------------------------------------------------------------
# helpers
# ----------------------------------------------------------------------------
def _pick_time_tile(t, max_tile):
    """Largest multiple of 8 <= max_tile that divides t."""
    cap = min(max_tile, t)
    cap -= cap % 8
    cap = max(cap, 8)
    for cand in range(cap, 7, -8):
        if t % cand == 0:
            return cand
    return t


def _pick_halo(tile, pad):
    """Smallest multiple of 8 dividing `tile` that covers the conv halo."""
    need = max(pad, 1)
    for h in range(8, tile + 1, 8):
        if h >= need and tile % h == 0:
            return h
    return tile


def _layer_norm_rows(x, gamma, beta):
    # x: (R, F) f32, gamma/beta: (1, F) f32; LayerNorm over the lane axis.
    f = x.shape[-1]
    mu = jnp.sum(x, axis=-1, keepdims=True) * (1.0 / f)
    c = x - mu
    var = jnp.sum(c * c, axis=-1, keepdims=True) * (1.0 / f)
    inv = jax.lax.rsqrt(var + EPS)
    return c * inv * gamma + beta


# ----------------------------------------------------------------------------
# Fused TDS block kernel:
#   conv(1,kw) + bias + ReLU + residual + LN  ->  FC(ReLU) + residual + LN
# ----------------------------------------------------------------------------
def _tds_block_kernel(xm_ref, xl_ref, xr_ref, m_ref, cb_ref, g1_ref, be1_ref,
                      w1_ref, fb1_ref, w2_ref, fb2_ref, g2_ref, be2_ref,
                      out_ref, xbuf_ref):
    # xm_ref : (TT, F)    main time tile of the (unpadded) input
    # xl_ref : (HALO, F)  rows immediately before the tile (clamped at j==0)
    # xr_ref : (HALO, F)  rows immediately after the tile (clamped at last j)
    # m_ref  : (kw, F, F) dense block-diagonal conv weights per tap
    # cb/g1/be1/fb1/fb2/g2/be2 : (1, F)   w1/w2 : (F, F)
    tt, f = out_ref.shape
    halo = xl_ref.shape[0]
    kw = m_ref.shape[0]
    pad = (kw - 1) // 2

    j = pl.program_id(1)
    n_t = pl.num_programs(1)

    # Stitch left halo + main tile + right halo into one contiguous window.
    # Out-of-range halos (first/last tile) are the conv's zero padding.
    left = jnp.where(j == 0, 0.0, xl_ref[...].astype(jnp.float32))
    right = jnp.where(j == n_t - 1, 0.0, xr_ref[...].astype(jnp.float32))
    x_main = xm_ref[...].astype(jnp.float32)
    xbuf_ref[pl.ds(0, halo), :] = left
    xbuf_ref[pl.ds(halo, tt), :] = x_main
    xbuf_ref[pl.ds(halo + tt, halo), :] = right

    # ---- TDSConv2dBlock: conv over time + bias + ReLU + residual + LN ----
    acc = jnp.zeros((tt, f), jnp.float32)
    for k in range(kw):                                   # static unroll
        acc = acc + jnp.dot(xbuf_ref[pl.ds(halo - pad + k, tt), :], m_ref[k],
                            preferred_element_type=jnp.float32)
    y = jnp.maximum(acc + cb_ref[...], 0.0)               # bias + ReLU
    y = y + x_main                                        # residual (T_out == T)
    y = _layer_norm_rows(y, g1_ref[...], be1_ref[...])

    # ---- TDSFullyConnectedBlock: Linear -> ReLU -> Linear + residual + LN --
    h = jnp.maximum(
        jnp.dot(y, w1_ref[...], preferred_element_type=jnp.float32) + fb1_ref[...],
        0.0)
    z = jnp.dot(h, w2_ref[...], preferred_element_type=jnp.float32) + fb2_ref[...]
    z = z + y                                              # residual
    out = _layer_norm_rows(z, g2_ref[...], be2_ref[...])
    out_ref[...] = out.astype(out_ref.dtype)


def tds_block(x_btf, p, *, kernel_width, time_tile=256):
    """One fused (TDSConv2dBlock + TDSFullyConnectedBlock). x_btf: (B, T, F)."""
    B, T, F = x_btf.shape
    kw = kernel_width
    assert kw % 2 == 1, "kernel_width must be odd"
    channels = p["channels"]
    assert F % channels == 0
    width = F // channels
    pad = (kw - 1) // 2

    tt = _pick_time_tile(T, time_tile)
    # TODO(synk): support ragged T (not multiple of 8) via zero-extend + output slice.
    assert tt % 8 == 0 and T % tt == 0, "T must be a multiple of 8 for the tiled conv"
    n_t = T // tt
    halo = _pick_halo(tt, pad)
    assert pad <= halo, "time tile too small for this kernel_width"
    ratio = tt // halo
    n_halo = T // halo

    # Dense per-tap weights: M[k, ci*width + u, co*width + u] = W[co, ci, 0, k]
    wk = jnp.transpose(p["conv_w"][:, :, 0, :], (2, 1, 0)).astype(jnp.float32)
    eye = jnp.eye(width, dtype=jnp.float32)
    m = jnp.einsum("kio,uv->kiuov", wk, eye).reshape(kw, F, F)
    cb = jnp.repeat(p["conv_b"].astype(jnp.float32), width).reshape(1, F)
    g1 = p["ln1_g"].astype(jnp.float32).reshape(1, F)
    be1 = p["ln1_b"].astype(jnp.float32).reshape(1, F)
    w1t = jnp.transpose(p["w1"]).astype(jnp.float32)       # nn.Linear: y = x @ W.T + b
    fb1 = p["b1"].astype(jnp.float32).reshape(1, F)
    w2t = jnp.transpose(p["w2"]).astype(jnp.float32)
    fb2 = p["b2"].astype(jnp.float32).reshape(1, F)
    g2 = p["ln2_g"].astype(jnp.float32).reshape(1, F)
    be2 = p["ln2_b"].astype(jnp.float32).reshape(1, F)

    const = lambda bi, j: (0, 0)
    return pl.pallas_call(
        _tds_block_kernel,
        out_shape=jax.ShapeDtypeStruct((B, T, F), x_btf.dtype),
        grid=(B, n_t),
        in_specs=[
            # main tile
            pl.BlockSpec((None, tt, F), lambda bi, j: (bi, j, 0)),
            # left halo (clamped at the first tile; zeroed in-kernel)
            pl.BlockSpec((None, halo, F),
                         lambda bi, j: (bi, jnp.maximum(j * ratio - 1, 0), 0)),
            # right halo (clamped at the last tile; zeroed in-kernel)
            pl.BlockSpec((None, halo, F),
                         lambda bi, j: (bi, jnp.minimum((j + 1) * ratio, n_halo - 1), 0)),
            pl.BlockSpec((kw, F, F), lambda bi, j: (0, 0, 0)),   # conv taps
            pl.BlockSpec((1, F), const),                          # conv bias
            pl.BlockSpec((1, F), const),                          # ln1 gamma
            pl.BlockSpec((1, F), const),                          # ln1 beta
            pl.BlockSpec((F, F), const),                          # w1^T
            pl.BlockSpec((1, F), const),                          # fc bias1
            pl.BlockSpec((F, F), const),                          # w2^T
            pl.BlockSpec((1, F), const),                          # fc bias2
            pl.BlockSpec((1, F), const),                          # ln2 gamma
            pl.BlockSpec((1, F), const),                          # ln2 beta
        ],
        out_specs=pl.BlockSpec((None, tt, F), lambda bi, j: (bi, j, 0)),
        scratch_shapes=[pltpu.VMEM((tt + 2 * halo, F), jnp.float32)],
        compiler_params=pltpu.CompilerParams(
            dimension_semantics=("parallel", "parallel"),
            vmem_limit_bytes=VMEM_LIMIT_BYTES,
        ),
    )(x_btf, x_btf, x_btf, m, cb, g1, be1, w1t, fb1, w2t, fb2, g2, be2)


# ----------------------------------------------------------------------------
# Encoder = sequence of fused [conv block + fc block] stages (PyTorch layout)
# ----------------------------------------------------------------------------
def tds_conv_encoder(x_bft, params, *, kernel_width, time_tile=256):
    """TDSConvEncoder forward. x_bft: (B, num_features, T) -> same shape."""
    x = jnp.transpose(x_bft, (0, 2, 1))                  # (B, T, F): features on lanes
    for p in params:
        x = tds_block(x, p, kernel_width=kernel_width, time_tile=time_tile)
    return jnp.transpose(x, (0, 2, 1))


# ----------------------------------------------------------------------------
# Pure-JAX reference (mirrors the PyTorch module)
# ----------------------------------------------------------------------------
def _ref_layer_norm(x, g, b):
    mu = jnp.mean(x, axis=-1, keepdims=True)
    var = jnp.mean((x - mu) ** 2, axis=-1, keepdims=True)
    return (x - mu) * jax.lax.rsqrt(var + EPS) * g + b


def _ref_conv_block(x, conv_w, conv_b, g, b, channels, kw):
    B, T, F = x.shape
    width = F // channels
    pad = (kw - 1) // 2
    x4 = x.reshape(B, T, channels, width)
    xp = jnp.pad(x4, ((0, 0), (pad, pad), (0, 0), (0, 0)))
    acc = jnp.zeros((B, T, channels, width), jnp.float32)
    for k in range(kw):
        acc = acc + jnp.einsum("btiw,oi->btow",
                               xp[:, k:k + T].astype(jnp.float32),
                               conv_w[:, :, 0, k].astype(jnp.float32))
    acc = acc + conv_b.reshape(1, 1, channels, 1)
    acc = jnp.maximum(acc, 0.0)
    y = acc.reshape(B, T, F) + x
    return _ref_layer_norm(y, g, b)


def _ref_fc_block(x, w1, b1, w2, b2, g, b):
    h = jnp.maximum(jnp.einsum("btf,gf->btg", x, w1) + b1, 0.0)
    y = jnp.einsum("btf,gf->btg", h, w2) + b2
    return _ref_layer_norm(y + x, g, b)


def _ref_encoder(x_bft, params, kw):
    x = jnp.transpose(x_bft, (0, 2, 1)).astype(jnp.float32)
    for p in params:
        x = _ref_conv_block(x, p["conv_w"], p["conv_b"], p["ln1_g"], p["ln1_b"],
                            p["channels"], kw)
        x = _ref_fc_block(x, p["w1"], p["b1"], p["w2"], p["b2"],
                          p["ln2_g"], p["ln2_b"])
    return jnp.transpose(x, (0, 2, 1))


if __name__ == "__main__":
    key = jax.random.PRNGKey(0)

    B, T = 2, 64
    num_features = 128            # multiple of 128 -> lane-dense feature axis
    block_channels = (4, 8)       # each divides num_features
    kernel_width = 5              # odd

    key, kx = jax.random.split(key)
    x = jax.random.normal(kx, (B, num_features, T), dtype=jnp.float32)

    params = []
    F = num_features
    for c in block_channels:
        key, *ks = jax.random.split(key, 11)
        params.append(dict(
            channels=c,
            conv_w=jax.random.normal(ks[0], (c, c, 1, kernel_width), jnp.float32)
                   / (c * kernel_width) ** 0.5,
            conv_b=0.1 * jax.random.normal(ks[1], (c,), jnp.float32),
            ln1_g=1.0 + 0.1 * jax.random.normal(ks[2], (F,), jnp.float32),
            ln1_b=0.1 * jax.random.normal(ks[3], (F,), jnp.float32),
            w1=jax.random.normal(ks[4], (F, F), jnp.float32) / F ** 0.5,
            b1=0.1 * jax.random.normal(ks[5], (F,), jnp.float32),
            w2=jax.random.normal(ks[6], (F, F), jnp.float32) / F ** 0.5,
            b2=0.1 * jax.random.normal(ks[7], (F,), jnp.float32),
            ln2_g=1.0 + 0.1 * jax.random.normal(ks[8], (F,), jnp.float32),
            ln2_b=0.1 * jax.random.normal(ks[9], (F,), jnp.float32),
        ))

    # Small time tile so the demo exercises a multi-step, pipelined grid with
    # clamped halo tiles on both ends.
    out = tds_conv_encoder(x, params, kernel_width=kernel_width, time_tile=32)
    out = jax.block_until_ready(out)

    ref = _ref_encoder(x, params, kernel_width)
    assert out.shape == (B, num_features, T)
    max_err = float(jnp.max(jnp.abs(out - ref)))
    assert jnp.allclose(out, ref, atol=1e-3, rtol=1e-3), (
        f"mismatch vs reference, max abs err = {max_err}")

    print("KERNEL_OK")
</pallas_src>

<mosaic_0001>
module attributes {stable_mosaic.version = 11 : i64} {
  func.func @_tds_block_kernel(%arg0: i32, %arg1: i32, %arg2: memref<1x32x128xf32, #tpu.memory_space<vmem>>, %arg3: memref<1x8x128xf32, #tpu.memory_space<vmem>>, %arg4: memref<1x8x128xf32, #tpu.memory_space<vmem>>, %arg5: memref<5x128x128xf32, #tpu.memory_space<vmem>>, %arg6: memref<1x128xf32, #tpu.memory_space<vmem>>, %arg7: memref<1x128xf32, #tpu.memory_space<vmem>>, %arg8: memref<1x128xf32, #tpu.memory_space<vmem>>, %arg9: memref<128x128xf32, #tpu.memory_space<vmem>>, %arg10: memref<1x128xf32, #tpu.memory_space<vmem>>, %arg11: memref<128x128xf32, #tpu.memory_space<vmem>>, %arg12: memref<1x128xf32, #tpu.memory_space<vmem>>, %arg13: memref<1x128xf32, #tpu.memory_space<vmem>>, %arg14: memref<1x128xf32, #tpu.memory_space<vmem>>, %arg15: memref<1x32x128xf32, #tpu.memory_space<vmem>>, %arg16: memref<48x128xf32, #tpu.memory_space<vmem>>) attributes {dimension_semantics = [#tpu.dimension_semantics<parallel>, #tpu.dimension_semantics<parallel>], iteration_bounds = array<i64: 2, 2>, scalar_prefetch = 0 : i64, scratch_operands = 1 : i64, tpu.core_type = #tpu.core_type<tc>, window_params = [{transform_indices = @transform_0, window_bounds = array<i64: 1, 32, 128>}, {transform_indices = @transform_1, window_bounds = array<i64: 1, 8, 128>}, {transform_indices = @transform_2, window_bounds = array<i64: 1, 8, 128>}, {pipeline_mode = #tpu.pipeline_mode<synchronous>, transform_indices = @transform_3, window_bounds = array<i64: 5, 128, 128>}, {pipeline_mode = #tpu.pipeline_mode<synchronous>, transform_indices = @transform_4, window_bounds = array<i64: 1, 128>}, {pipeline_mode = #tpu.pipeline_mode<synchronous>, transform_indices = @transform_5, window_bounds = array<i64: 1, 128>}, {pipeline_mode = #tpu.pipeline_mode<synchronous>, transform_indices = @transform_6, window_bounds = array<i64: 1, 128>}, {pipeline_mode = #tpu.pipeline_mode<synchronous>, transform_indices = @transform_7, window_bounds = array<i64: 128, 128>}, {pipeline_mode = #tpu.pipeline_mode<synchronous>, transform_indices = @transform_8, window_bounds = array<i64: 1, 128>}, {pipeline_mode = #tpu.pipeline_mode<synchronous>, transform_indices = @transform_9, window_bounds = array<i64: 128, 128>}, {pipeline_mode = #tpu.pipeline_mode<synchronous>, transform_indices = @transform_10, window_bounds = array<i64: 1, 128>}, {pipeline_mode = #tpu.pipeline_mode<synchronous>, transform_indices = @transform_11, window_bounds = array<i64: 1, 128>}, {pipeline_mode = #tpu.pipeline_mode<synchronous>, transform_indices = @transform_12, window_bounds = array<i64: 1, 128>}, {transform_indices = @transform_13, window_bounds = array<i64: 1, 32, 128>}]} {
    %c0_i32 = arith.constant 0 : i32
    %0 = arith.cmpi eq, %arg1, %c0_i32 : i32
    %c0 = arith.constant 0 : index
    %c0_0 = arith.constant 0 : index
    %c0_1 = arith.constant 0 : index
    %1 = vector.load %arg3[%c0, %c0_0, %c0_1] : memref<1x8x128xf32, #tpu.memory_space<vmem>>, vector<1x8x128xf32>
    %2 = vector.shape_cast %1 : vector<1x8x128xf32> to vector<8x128xf32>
    %cst = arith.constant 0.000000e+00 : f32
    %3 = vector.broadcast %cst : f32 to vector<8x128xf32>
    %4 = arith.select %0, %3, %2 : vector<8x128xf32>
    %c1_i32 = arith.constant 1 : i32
    %5 = arith.cmpi eq, %arg1, %c1_i32 : i32
    %c0_2 = arith.constant 0 : index
    %c0_3 = arith.constant 0 : index
    %c0_4 = arith.constant 0 : index
    %6 = vector.load %arg4[%c0_2, %c0_3, %c0_4] : memref<1x8x128xf32, #tpu.memory_space<vmem>>, vector<1x8x128xf32>
    %7 = vector.shape_cast %6 : vector<1x8x128xf32> to vector<8x128xf32>
    %cst_5 = arith.constant 0.000000e+00 : f32
    %8 = vector.broadcast %cst_5 : f32 to vector<8x128xf32>
    %9 = arith.select %5, %8, %7 : vector<8x128xf32>
    %c0_6 = arith.constant 0 : index
    %c0_7 = arith.constant 0 : index
    %c0_8 = arith.constant 0 : index
    %10 = vector.load %arg2[%c0_6, %c0_7, %c0_8] : memref<1x32x128xf32, #tpu.memory_space<vmem>>, vector<1x32x128xf32>
    %11 = vector.shape_cast %10 : vector<1x32x128xf32> to vector<32x128xf32>
    %c0_9 = arith.constant 0 : index
    %c0_10 = arith.constant 0 : index
    %12 = vector.load %arg16[%c0_9, %c0_10] : memref<48x128xf32, #tpu.memory_space<vmem>>, vector<8x128xf32>
    tpu.vector_store %arg16[%c0_9, %c0_10], %4 {strides = array<i32>} : memref<48x128xf32, #tpu.memory_space<vmem>>, vector<8x128xf32>,
    %c8 = arith.constant 8 : index
    %c0_11 = arith.constant 0 : index
    %13 = vector.load %arg16[%c8, %c0_11] : memref<48x128xf32, #tpu.memory_space<vmem>>, vector<32x128xf32>
    tpu.vector_store %arg16[%c8, %c0_11], %11 {strides = array<i32>} : memref<48x128xf32, #tpu.memory_space<vmem>>, vector<32x128xf32>,
    %c40 = arith.constant 40 : index
    %c0_12 = arith.constant 0 : index
    %14 = vector.load %arg16[%c40, %c0_12] : memref<48x128xf32, #tpu.memory_space<vmem>>, vector<8x128xf32>
    tpu.vector_store %arg16[%c40, %c0_12], %9 {strides = array<i32>} : memref<48x128xf32, #tpu.memory_space<vmem>>, vector<8x128xf32>,
    %cst_13 = arith.constant 0.000000e+00 : f32
    %15 = vector.broadcast %cst_13 : f32 to vector<32x128xf32>
    %c6 = arith.constant 6 : index
    %c0_14 = arith.constant 0 : index
    %16 = vector.load %arg16[%c6, %c0_14] : memref<48x128xf32, #tpu.memory_space<vmem>>, vector<32x128xf32>
    %c0_15 = arith.constant 0 : index
    %c0_16 = arith.constant 0 : index
    %c0_17 = arith.constant 0 : index
    %17 = vector.load %arg5[%c0_15, %c0_16, %c0_17] : memref<5x128x128xf32, #tpu.memory_space<vmem>>, vector<1x128x128xf32>
    %18 = vector.shape_cast %17 : vector<1x128x128xf32> to vector<128x128xf32>
    %cst_18 = arith.constant dense<0.000000e+00> : vector<32x128xf32>
    %19 = tpu.matmul %16, %18, %cst_18 {dimension_numbers = #tpu.dot_dimension_numbers<[1], [0], [0], [1], [0, 0, 1, 1], [], []>, precision = #tpu.contract_precision<fp32>} : vector<32x128xf32>, vector<128x128xf32>, vector<32x128xf32> -> vector<32x128xf32>
    %20 = arith.addf %15, %19 : vector<32x128xf32>
    %c7 = arith.constant 7 : index
    %c0_19 = arith.constant 0 : index
    %21 = vector.load %arg16[%c7, %c0_19] : memref<48x128xf32, #tpu.memory_space<vmem>>, vector<32x128xf32>
    %c1 = arith.constant 1 : index
    %c0_20 = arith.constant 0 : index
    %c0_21 = arith.constant 0 : index
    %22 = vector.load %arg5[%c1, %c0_20, %c0_21] : memref<5x128x128xf32, #tpu.memory_space<vmem>>, vector<1x128x128xf32>
    %23 = vector.shape_cast %22 : vector<1x128x128xf32> to vector<128x128xf32>
    %cst_22 = arith.constant dense<0.000000e+00> : vector<32x128xf32>
    %24 = tpu.matmul %21, %23, %cst_22 {dimension_numbers = #tpu.dot_dimension_numbers<[1], [0], [0], [1], [0, 0, 1, 1], [], []>, precision = #tpu.contract_precision<fp32>} : vector<32x128xf32>, vector<128x128xf32>, vector<32x128xf32> -> vector<32x128xf32>
    %25 = arith.addf %20, %24 : vector<32x128xf32>
    %c8_23 = arith.constant 8 : index
    %c0_24 = arith.constant 0 : index
    %26 = vector.load %arg16[%c8_23, %c0_24] : memref<48x128xf32, #tpu.memory_space<vmem>>, vector<32x128xf32>
    %c2 = arith.constant 2 : index
    %c0_25 = arith.constant 0 : index
    %c0_26 = arith.constant 0 : index
    %27 = vector.load %arg5[%c2, %c0_25, %c0_26] : memref<5x128x128xf32, #tpu.memory_space<vmem>>, vector<1x128x128xf32>
    %28 = vector.shape_cast %27 : vector<1x128x128xf32> to vector<128x128xf32>
    %cst_27 = arith.constant dense<0.000000e+00> : vector<32x128xf32>
    %29 = tpu.matmul %26, %28, %cst_27 {dimension_numbers = #tpu.dot_dimension_numbers<[1], [0], [0], [1], [0, 0, 1, 1], [], []>, precision = #tpu.contract_precision<fp32>} : vector<32x128xf32>, vector<128x128xf32>, vector<32x128xf32> -> vector<32x128xf32>
    %30 = arith.addf %25, %29 : vector<32x128xf32>
    %c9 = arith.constant 9 : index
    %c0_28 = arith.constant 0 : index
    %31 = vector.load %arg16[%c9, %c0_28] : memref<48x128xf32, #tpu.memory_space<vmem>>, vector<32x128xf32>
    %c3 = arith.constant 3 : index
    %c0_29 = arith.constant 0 : index
    %c0_30 = arith.constant 0 : index
    %32 = vector.load %arg5[%c3, %c0_29, %c0_30] : memref<5x128x128xf32, #tpu.memory_space<vmem>>, vector<1x128x128xf32>
    %33 = vector.shape_cast %32 : vector<1x128x128xf32> to vector<128x128xf32>
    %cst_31 = arith.constant dense<0.000000e+00> : vector<32x128xf32>
    %34 = tpu.matmul %31, %33, %cst_31 {dimension_numbers = #tpu.dot_dimension_numbers<[1], [0], [0], [1], [0, 0, 1, 1], [], []>, precision = #tpu.contract_precision<fp32>} : vector<32x128xf32>, vector<128x128xf32>, vector<32x128xf32> -> vector<32x128xf32>
    %35 = arith.addf %30, %34 : vector<32x128xf32>
    %c10 = arith.constant 10 : index
    %c0_32 = arith.constant 0 : index
    %36 = vector.load %arg16[%c10, %c0_32] : memref<48x128xf32, #tpu.memory_space<vmem>>, vector<32x128xf32>
    %c4 = arith.constant 4 : index
    %c0_33 = arith.constant 0 : index
    %c0_34 = arith.constant 0 : index
    %37 = vector.load %arg5[%c4, %c0_33, %c0_34] : memref<5x128x128xf32, #tpu.memory_space<vmem>>, vector<1x128x128xf32>
    %38 = vector.shape_cast %37 : vector<1x128x128xf32> to vector<128x128xf32>
    %cst_35 = arith.constant dense<0.000000e+00> : vector<32x128xf32>
    %39 = tpu.matmul %36, %38, %cst_35 {dimension_numbers = #tpu.dot_dimension_numbers<[1], [0], [0], [1], [0, 0, 1, 1], [], []>, precision = #tpu.contract_precision<fp32>} : vector<32x128xf32>, vector<128x128xf32>, vector<32x128xf32> -> vector<32x128xf32>
    %40 = arith.addf %35, %39 : vector<32x128xf32>
    %c0_36 = arith.constant 0 : index
    %c0_37 = arith.constant 0 : index
    %41 = vector.load %arg6[%c0_36, %c0_37] : memref<1x128xf32, #tpu.memory_space<vmem>>, vector<1x128xf32>
    %42 = vector.broadcast %41 : vector<1x128xf32> to vector<32x128xf32>
    %43 = arith.addf %40, %42 : vector<32x128xf32>
    %cst_38 = arith.constant 0.000000e+00 : f32
    %44 = vector.broadcast %cst_38 : f32 to vector<32x128xf32>
    %45 = arith.maximumf %43, %44 : vector<32x128xf32>
    %46 = arith.addf %45, %11 : vector<32x128xf32>
    %c0_39 = arith.constant 0 : index
    %c0_40 = arith.constant 0 : index
    %47 = vector.load %arg7[%c0_39, %c0_40] : memref<1x128xf32, #tpu.memory_space<vmem>>, vector<1x128xf32>
    %c0_41 = arith.constant 0 : index
    %c0_42 = arith.constant 0 : index
    %48 = vector.load %arg8[%c0_41, %c0_42] : memref<1x128xf32, #tpu.memory_space<vmem>>, vector<1x128xf32>
    %cst_43 = arith.constant dense<0.000000e+00> : vector<32xf32>
    %49 = vector.multi_reduction <add>, %46, %cst_43 [1] : vector<32x128xf32> to vector<32xf32>
    %50 = vector.shape_cast %49 : vector<32xf32> to vector<32x1xf32>
    %cst_44 = arith.constant 7.812500e-03 : f32
    %51 = vector.broadcast %cst_44 : f32 to vector<32x1xf32>
    %52 = arith.mulf %50, %51 : vector<32x1xf32>
    %53 = vector.broadcast %52 : vector<32x1xf32> to vector<32x128xf32>
    %54 = arith.subf %46, %53 : vector<32x128xf32>
    %55 = arith.mulf %54, %54 : vector<32x128xf32>
    %cst_45 = arith.constant dense<0.000000e+00> : vector<32xf32>
    %56 = vector.multi_reduction <add>, %55, %cst_45 [1] : vector<32x128xf32> to vector<32xf32>
    %57 = vector.shape_cast %56 : vector<32xf32> to vector<32x1xf32>
    %cst_46 = arith.constant 7.812500e-03 : f32
    %58 = vector.broadcast %cst_46 : f32 to vector<32x1xf32>
    %59 = arith.mulf %57, %58 : vector<32x1xf32>
    %cst_47 = arith.constant 9.99999974E-6 : f32
    %60 = vector.broadcast %cst_47 : f32 to vector<32x1xf32>
    %61 = arith.addf %59, %60 : vector<32x1xf32>
    %62 = math.rsqrt %61 : vector<32x1xf32>
    %63 = vector.broadcast %62 : vector<32x1xf32> to vector<32x128xf32>
    %64 = arith.mulf %54, %63 : vector<32x128xf32>
    %65 = vector.broadcast %47 : vector<1x128xf32> to vector<32x128xf32>
    %66 = arith.mulf %64, %65 : vector<32x128xf32>
    %67 = vector.broadcast %48 : vector<1x128xf32> to vector<32x128xf32>
    %68 = arith.addf %66, %67 : vector<32x128xf32>
    %c0_48 = arith.constant 0 : index
    %c0_49 = arith.constant 0 : index
    %69 = vector.load %arg9[%c0_48, %c0_49] : memref<128x128xf32, #tpu.memory_space<vmem>>, vector<128x128xf32>
    %cst_50 = arith.constant dense<0.000000e+00> : vector<32x128xf32>
    %70 = tpu.matmul %68, %69, %cst_50 {dimension_numbers = #tpu.dot_dimension_numbers<[1], [0], [0], [1], [0, 0, 1, 1], [], []>, precision = #tpu.contract_precision<fp32>} : vector<32x128xf32>, vector<128x128xf32>, vector<32x128xf32> -> vector<32x128xf32>
    %c0_51 = arith.constant 0 : index
    %c0_52 = arith.constant 0 : index
    %71 = vector.load %arg10[%c0_51, %c0_52] : memref<1x128xf32, #tpu.memory_space<vmem>>, vector<1x128xf32>
    %72 = vector.broadcast %71 : vector<1x128xf32> to vector<32x128xf32>
    %73 = arith.addf %70, %72 : vector<32x128xf32>
    %cst_53 = arith.constant 0.000000e+00 : f32
    %74 = vector.broadcast %cst_53 : f32 to vector<32x128xf32>
    %75 = arith.maximumf %73, %74 : vector<32x128xf32>
    %c0_54 = arith.constant 0 : index
    %c0_55 = arith.constant 0 : index
    %76 = vector.load %arg11[%c0_54, %c0_55] : memref<128x128xf32, #tpu.memory_space<vmem>>, vector<128x128xf32>
    %cst_56 = arith.constant dense<0.000000e+00> : vector<32x128xf32>
    %77 = tpu.matmul %75, %76, %cst_56 {dimension_numbers = #tpu.dot_dimension_numbers<[1], [0], [0], [1], [0, 0, 1, 1], [], []>, precision = #tpu.contract_precision<fp32>} : vector<32x128xf32>, vector<128x128xf32>, vector<32x128xf32> -> vector<32x128xf32>
    %c0_57 = arith.constant 0 : index
    %c0_58 = arith.constant 0 : index
    %78 = vector.load %arg12[%c0_57, %c0_58] : memref<1x128xf32, #tpu.memory_space<vmem>>, vector<1x128xf32>
    %79 = vector.broadcast %78 : vector<1x128xf32> to vector<32x128xf32>
    %80 = arith.addf %77, %79 : vector<32x128xf32>
    %81 = arith.addf %80, %68 : vector<32x128xf32>
    %c0_59 = arith.constant 0 : index
    %c0_60 = arith.constant 0 : index
    %82 = vector.load %arg13[%c0_59, %c0_60] : memref<1x128xf32, #tpu.memory_space<vmem>>, vector<1x128xf32>
    %c0_61 = arith.constant 0 : index
    %c0_62 = arith.constant 0 : index
    %83 = vector.load %arg14[%c0_61, %c0_62] : memref<1x128xf32, #tpu.memory_space<vmem>>, vector<1x128xf32>
    %cst_63 = arith.constant dense<0.000000e+00> : vector<32xf32>
    %84 = vector.multi_reduction <add>, %81, %cst_63 [1] : vector<32x128xf32> to vector<32xf32>
    %85 = vector.shape_cast %84 : vector<32xf32> to vector<32x1xf32>
    %cst_64 = arith.constant 7.812500e-03 : f32
    %86 = vector.broadcast %cst_64 : f32 to vector<32x1xf32>
    %87 = arith.mulf %85, %86 : vector<32x1xf32>
    %88 = vector.broadcast %87 : vector<32x1xf32> to vector<32x128xf32>
    %89 = arith.subf %81, %88 : vector<32x128xf32>
    %90 = arith.mulf %89, %89 : vector<32x128xf32>
    %cst_65 = arith.constant dense<0.000000e+00> : vector<32xf32>
    %91 = vector.multi_reduction <add>, %90, %cst_65 [1] : vector<32x128xf32> to vector<32xf32>
    %92 = vector.shape_cast %91 : vector<32xf32> to vector<32x1xf32>
    %cst_66 = arith.constant 7.812500e-03 : f32
    %93 = vector.broadcast %cst_66 : f32 to vector<32x1xf32>
    %94 = arith.mulf %92, %93 : vector<32x1xf32>
    %cst_67 = arith.constant 9.99999974E-6 : f32
    %95 = vector.broadcast %cst_67 : f32 to vector<32x1xf32>
    %96 = arith.addf %94, %95 : vector<32x1xf32>
    %97 = math.rsqrt %96 : vector<32x1xf32>
    %98 = vector.broadcast %97 : vector<32x1xf32> to vector<32x128xf32>
    %99 = arith.mulf %89, %98 : vector<32x128xf32>
    %100 = vector.broadcast %82 : vector<1x128xf32> to vector<32x128xf32>
    %101 = arith.mulf %99, %100 : vector<32x128xf32>
    %102 = vector.broadcast %83 : vector<1x128xf32> to vector<32x128xf32>
    %103 = arith.addf %101, %102 : vector<32x128xf32>
    %c0_68 = arith.constant 0 : index
    %c0_69 = arith.constant 0 : index
    %c0_70 = arith.constant 0 : index
    %104 = vector.load %arg15[%c0_68, %c0_69, %c0_70] : memref<1x32x128xf32, #tpu.memory_space<vmem>>, vector<1x32x128xf32>
    %105 = vector.shape_cast %104 : vector<1x32x128xf32> to vector<32x128xf32>
    %106 = vector.shape_cast %103 : vector<32x128xf32> to vector<1x32x128xf32>
    tpu.vector_store %arg15[%c0_68, %c0_69, %c0_70], %106 {strides = array<i32>} : memref<1x32x128xf32, #tpu.memory_space<vmem>>, vector<1x32x128xf32>,
    return
  }
  func.func @transform_0(%arg0: i32, %arg1: i32) -> (i32, i32, i32) {
    %c0_i32 = arith.constant 0 : i32
    %c0_i32_0 = arith.constant 0 : i32
    return %arg0, %arg1, %c0_i32 : i32, i32, i32
  }
  func.func @transform_1(%arg0: i32, %arg1: i32) -> (i32, i32, i32) {
    %c4_i32 = arith.constant 4 : i32
    %0 = arith.muli %arg1, %c4_i32 : i32
    %c1_i32 = arith.constant 1 : i32
    %1 = arith.subi %0, %c1_i32 : i32
    %c0_i32 = arith.constant 0 : i32
    %2 = arith.maxsi %1, %c0_i32 : i32
    %c0_i32_0 = arith.constant 0 : i32
    %c0_i32_1 = arith.constant 0 : i32
    return %arg0, %2, %c0_i32_0 : i32, i32, i32
  }
  func.func @transform_2(%arg0: i32, %arg1: i32) -> (i32, i32, i32) {
    %c1_i32 = arith.constant 1 : i32
    %0 = arith.addi %arg1, %c1_i32 : i32
    %c4_i32 = arith.constant 4 : i32
    %1 = arith.muli %0, %c4_i32 : i32
    %c7_i32 = arith.constant 7 : i32
    %2 = arith.minsi %1, %c7_i32 : i32
    %c0_i32 = arith.constant 0 : i32
    %c0_i32_0 = arith.constant 0 : i32
    return %arg0, %2, %c0_i32 : i32, i32, i32
  }
  func.func @transform_3(%arg0: i32, %arg1: i32) -> (i32, i32, i32) {
    %c0_i32 = arith.constant 0 : i32
    %c0_i32_0 = arith.constant 0 : i32
    %c0_i32_1 = arith.constant 0 : i32
    %c0_i32_2 = arith.constant 0 : i32
    return %c0_i32, %c0_i32_0, %c0_i32_1 : i32, i32, i32
  }
  func.func @transform_4(%arg0: i32, %arg1: i32) -> (i32, i32) {
    %c0_i32 = arith.constant 0 : i32
    %c0_i32_0 = arith.constant 0 : i32
    %c0_i32_1 = arith.constant 0 : i32
    return %c0_i32, %c0_i32_0 : i32, i32
  }
  func.func @transform_5(%arg0: i32, %arg1: i32) -> (i32, i32) {
    %c0_i32 = arith.constant 0 : i32
    %c0_i32_0 = arith.constant 0 : i32
    %c0_i32_1 = arith.constant 0 : i32
    return %c0_i32, %c0_i32_0 : i32, i32
  }
  func.func @transform_6(%arg0: i32, %arg1: i32) -> (i32, i32) {
    %c0_i32 = arith.constant 0 : i32
    %c0_i32_0 = arith.constant 0 : i32
    %c0_i32_1 = arith.constant 0 : i32
    return %c0_i32, %c0_i32_0 : i32, i32
  }
  func.func @transform_7(%arg0: i32, %arg1: i32) -> (i32, i32) {
    %c0_i32 = arith.constant 0 : i32
    %c0_i32_0 = arith.constant 0 : i32
    %c0_i32_1 = arith.constant 0 : i32
    return %c0_i32, %c0_i32_0 : i32, i32
  }
  func.func @transform_8(%arg0: i32, %arg1: i32) -> (i32, i32) {
    %c0_i32 = arith.constant 0 : i32
    %c0_i32_0 = arith.constant 0 : i32
    %c0_i32_1 = arith.constant 0 : i32
    return %c0_i32, %c0_i32_0 : i32, i32
  }
  func.func @transform_9(%arg0: i32, %arg1: i32) -> (i32, i32) {
    %c0_i32 = arith.constant 0 : i32
    %c0_i32_0 = arith.constant 0 : i32
    %c0_i32_1 = arith.constant 0 : i32
    return %c0_i32, %c0_i32_0 : i32, i32
  }
  func.func @transform_10(%arg0: i32, %arg1: i32) -> (i32, i32) {
    %c0_i32 = arith.constant 0 : i32
    %c0_i32_0 = arith.constant 0 : i32
    %c0_i32_1 = arith.constant 0 : i32
    return %c0_i32, %c0_i32_0 : i32, i32
  }
  func.func @transform_11(%arg0: i32, %arg1: i32) -> (i32, i32) {
    %c0_i32 = arith.constant 0 : i32
    %c0_i32_0 = arith.constant 0 : i32
    %c0_i32_1 = arith.constant 0 : i32
    return %c0_i32, %c0_i32_0 : i32, i32
  }
  func.func @transform_12(%arg0: i32, %arg1: i32) -> (i32, i32) {
    %c0_i32 = arith.constant 0 : i32
    %c0_i32_0 = arith.constant 0 : i32
    %c0_i32_1 = arith.constant 0 : i32
    return %c0_i32, %c0_i32_0 : i32, i32
  }
  func.func @transform_13(%arg0: i32, %arg1: i32) -> (i32, i32, i32) {
    %c0_i32 = arith.constant 0 : i32
    %c0_i32_0 = arith.constant 0 : i32
    return %arg0, %arg1, %c0_i32 : i32, i32, i32
  }
}

</mosaic_0001>

<bundles_post_ra>
// kernel: tpu_custom_call.1
= control target key start
LH: loop header
LB: loop body
LE: loop exit
PB: predicated region body
PF: predicated region fallthrough
CT: control target
= control target key end

     0   :  { %s14435_s0 = inlined_call_operand.hbm [shape: f32[2,64,128], index: 0, kind: input, shape index: {}]   ;;  %s14436_s1 = inlined_call_operand.hbm [shape: f32[2,64,128], index: 1, kind: input, shape index: {}]   ;;  %s14437_s2 = inlined_call_operand.hbm [shape: f32[2,64,128], index: 2, kind: input, shape index: {}]   ;;  %s14438_s3 = inlined_call_operand.hbm [shape: f32[5,128,128], index: 3, kind: input, shape index: {}]   ;;  %s14439_s4 = inlined_call_operand.vmem [shape: f32[1,128], index: 4, kind: input, shape index: {}]   ;;  %s14440_s5 = inlined_call_operand.vmem [shape: f32[1,128], index: 5, kind: input, shape index: {}]   ;;  %s14441_s6 = inlined_call_operand.vmem [shape: f32[1,128], index: 6, kind: input, shape index: {}]   ;;  %s14442_s7 = inlined_call_operand.hbm [shape: f32[128,128], index: 7, kind: input, shape index: {}]   ;;  %s14443_s8 = inlined_call_operand.vmem [shape: f32[1,128], index: 8, kind: input, shape index: {}]   ;;  %s14444_s9 = inlined_call_operand.hbm [shape: f32[128,128], index: 9, kind: input, shape index: {}]   ;;  %s14445_s10 = inlined_call_operand.vmem [shape: f32[1,128], index: 10, kind: input, shape index: {}]   ;;  %s14446_s11 = inlined_call_operand.vmem [shape: f32[1,128], index: 11, kind: input, shape index: {}]   ;;  %s14447_s12 = inlined_call_operand.vmem [shape: f32[1,128], index: 12, kind: input, shape index: {}]   ;;  %s14448_s13 = inlined_call_operand.hbm [shape: f32[2,64,128], index: 13, kind: output, shape index: {}]  }
   0x1   :  { %14675 = sst [smem:[#allocation87_spill]] %s14435_s0 }
   0x2   :  { %14676 = sst [smem:[#allocation88_spill]] %s14436_s1 }
   0x3   :  { %14677 = sst [smem:[#allocation89_spill]] %s14437_s2 }
   0x4   :  { %14678 = sst [smem:[#allocation90_spill]] %s14438_s3 }
   0x5   :  { %14679 = sst [smem:[#allocation91_spill]] %s14439_s4 }
   0x6   :  { %14680 = sst [smem:[#allocation92_spill]] %s14440_s5 }
   0x7   :  { %14681 = sst [smem:[#allocation93_spill]] %s14441_s6 }
   0x8   :  { %14682 = sst [smem:[#allocation94_spill]] %s14442_s7 }
   0x9   :  { %14683 = sst [smem:[#allocation95_spill]] %s14443_s8 }
   0xa   :  { %14684 = sst [smem:[#allocation96_spill]] %s14444_s9 }
   0xb   :  { %14685 = sst [smem:[#allocation97_spill]] %s14445_s10 }
   0xc   :  { %14686 = sst [smem:[#allocation98_spill]] %s14446_s11 }
   0xd   :  { %14687 = sst [smem:[#allocation99_spill]] %s14447_s12 }
   0xe   :  { %14688 = sst [smem:[#allocation100_spill]] %s14448_s13 }
   0xf   :  { %18 = vsyncpa [#allocation4], 0 }
  0x10   :  { %20 = vsyncpa [#allocation4 + $0x1], 0 }
  0x11   :  { %21 = vsyncpa [#allocation7], 0 }
  0x12   :  { %23 = vsyncpa [#allocation7 + $0x1], 0 }
  0x13   :  { %24 = vsyncpa [#allocation10], 0 }
  0x14   :  { %25 = vsyncpa [#allocation13], 0 }
  0x15   :  { %26 = vsyncpa [#allocation5], 0 }
  0x16   :  { %28 = vsyncpa [#allocation5 + $0x1], 0  ;;  %s11166_s25 = smov 0   ;;  %s11168_s26 = smov 0  }
  0x17   :  { %s11170_s27 = smov 0   ;;  %s11172_s28 = smov 0  }
  0x18   :  { %s11174_s29 = smov 0   ;;  %s11176_s30 = smov 0  }
  0x19   :  { %s11178_s14 = smov 0   ;;  %s11180_s15 = smov 0  }
  0x1a   :  { %s11182_s16 = smov 0   ;;  %s11184_s17 = smov 0  }
  0x1b   :  { %s11186_s18 = smov 0   ;;  %s11188_s19 = smov 0  }
  0x1c   :  { %s11190_s20 = smov 0   ;;  %s11192_s21 = smov 0  }
  0x1d LB: > { %14689 = sst [smem:[#allocation21_spill]] %s11031_s25  ;;  %s11237_s22 = sadd.s32 4294967295, %s11083_s21   ;;  %s11083_s21 = sphi %s11192_s21, %s34_s21   ;;  %s11079_s20 = sphi %s11190_s20, %s15046_s20   ;;  %s11075_s19 = sphi %s11188_s19, %s15045_s19   ;;  %s11071_s18 = sphi %s11186_s18, %s15044_s18   ;;  %s11067_s17 = sphi %s11184_s17, %s15043_s17   ;;  %s11063_s16 = sphi %s11182_s16, %s15054_s16   ;;  %s11059_s15 = sphi %s11180_s15, %s15053_s15   ;;  %s11055_s14 = sphi %s11178_s14, %s15052_s14   ;;  %s11051_s30 = sphi %s11176_s30, %s15051_s30   ;;  %s11047_s29 = sphi %s11174_s29, %s15050_s29   ;;  %s11043_s28 = sphi %s11172_s28, %s15041_s28   ;;  %s11039_s27 = sphi %s11170_s27, %s15049_s27   ;;  %s11035_s26 = sphi %s11168_s26, %s15048_s26   ;;  %s11031_s25 = sphi %s11166_s25, %s15047_s25  }
  0x1e   : > { %14690 = sst [smem:[#allocation22_spill]] %s11035_s26  ;;  %p6561_p0 = scmp.ge.s32.totalorder %s11083_s21, 1 }
  0x1f   : > { %14691 = sst [smem:[#allocation23_spill]] %s11039_s27  ;;  %p14450_p1 = scmp.eq.s32.totalorder %s11237_s22, 0 }
  0x20   : > { %14692 = sst [smem:[#allocation24_spill]] %s11047_s29  ;;  %p389_p3 = scmp.lt.s32.totalorder %s11083_s21, 5 }
  0x21   : > { %14693 = sst [smem:[#allocation25_spill]] %s11067_s17  ;;  %s11085_s24 = smov [#allocation9]  }
  0x22   : > { %14694 = sst [smem:[#allocation26_spill]] %s11071_s18  ;;  %p11243_p4 = pnand %p6561_p0, %p389_p3 }
  0x23   : > { %14695 = sst [smem:[#allocation27_spill]] %s11075_s19  ;;  %s401_s13 = sshll.u32 %s11085_s24, 4  ;;  %s402_s13 = int_to_ptr.vmem [resolvable:$true] %s401_s13 }
  0x24   : > { %14696 = sst [smem:[#allocation28_spill]] %s11079_s20  ;;  %p10570_p5 = pneg %p11243_p4 }
  0x25   : > { %s14697_s23 = scalar_select %p11243_p4, 1, 0 }
  0x26   : > { %p11251_p6 = pnand %p10570_p5, %p14450_p1  ;;  %s14700_s3 = sld [smem:[#allocation90_spill]] }
  0x27   : > { %14698 = sst [smem:[#allocation29_spill]] %s14697_s23 }
  0x28   : > { %s14699_s12 = scalar_select %p11251_p6, 1, 0 }
  0x29   : > { %p11263_p8 = pneg %p11251_p6 }
  0x2c   : > { %s10747_s10 = scalar_lea.hbm %s14700_s3, 10240 }
  0x2d   : > { %p10748_p7 = scmp.ne.s32.totalorder %s14700_s3, %s10747_s10  ;;  %p10754_p11 = scmp.lt.u32.totalorder %s10747_s10, %s14700_s3 }
  0x2f   : > { %p10750_p9 = pnand %p11263_p8, %p10748_p7 }
  0x31   : > { %p10751_p10 = pneg %p10750_p9 }
  0x33   : > { %p10756_p12 = pnand %p10754_p11, %p10751_p10 }
  0x35   : > { %10759 = shalt.err (!%p10756_p12)
}
  0x36   : > { %s10760_s11 = scalar_lea.vmem %s402_s13, 10240  ;;  %p10768_p5 = scmp.lt.s32.totalorder %s402_s13, %s402_s13 }
  0x37   : > { %p10761_p13 = scmp.ne.s32.totalorder %s402_s13, %s10760_s11  ;;  %p10769_p2 = scmp.lt.s32.totalorder %s10760_s11, %s10760_s11 }
  0x39   : > { %p10763_p0 = pnand %p10761_p13, %p11263_p8  ;;  %p10770_p1 = por %p10769_p2, %p10768_p5 }
  0x3b   : > { %p10764_p3 = pneg %p10763_p0 }
  0x3d   : > { %p10771_p4 = pnand %p10770_p1, %p10764_p3 }
  0x3f   : > { %10774 = shalt.err (!%p10771_p4)
}
  0x40   : > { %s14454_s6 = smov 128   ;;  %s14456_s4 = smov 8  }
  0x41   : > { %10573 = dma.hbm_to_vmem [thread:$0]  (!%p11251_p6), %s14700_s3, 10240, %s402_s13, [#allocation10], %s14454_s6, %s14454_s6, %s14456_s4  }
  0x42   : > { %s43_s10 = sadd.s32 1, %s11075_s19  ;;  %s46_s18 = sadd.s32 1, %s11079_s20 }
  0x43   : > { %p44_p1 = scmp.ge.s32.totalorder %s43_s10, 2  ;;  %p14470_p2 = scmp.eq.s32.totalorder %s11083_s21, 0 }
  0x44   : > { %s11286_s11 = sshll.u32 %s11075_s19, 2  ;;  %s91_s17 = sadd.s32 1, %s11051_s30 }
  0x45   : > { %s15056_s10 = smov (%p44_p1, %s43_s10), 0  ;;  %s15058_s18 = smov (!%p44_p1, %s46_s18), %s11079_s20 }
  0x46   : > { %14702 = sst [smem:[#allocation30_spill]] %s15056_s10  ;;  %s51_s23 = ssub.s32 %s11075_s19, %s15056_s10 }
  0x47   : > { %s6556_s5 = sadd.s32 4294967295, %s11286_s11  ;;  %p48_p4 = scmp.ge.s32.totalorder %s15058_s18, 2 }
  0x48   : > { %p80_p7 = scmp.gt.s32.totalorder %s6556_s5, 0  ;;  %s6557_s13 = sshll.u32 %s15056_s10, 2 }
  0x49   : > { %p98_p9 = scmp.ne.s32.totalorder %s11051_s30, %s11047_s29  ;;  %s15060_s18 = smov (%p48_p4, %s15058_s18), 0 }
  0x4a   : > { %14703 = sst [smem:[#allocation31_spill]] %s15060_s18  ;;  %s15062_s5 = smov (!%p80_p7, %s6556_s5), 0 }
  0x4b   : > { %s11302_s8 = ssub.s32 %s11079_s20, %s15060_s18  ;;  %s6558_s6 = sadd.s32 4294967295, %s6557_s13 }
  0x4c   : > { %14704 = sst [smem:[#allocation32_spill]] %s11302_s8  ;;  %s11305_s4 = sor.u32 %s51_s23, %s11302_s8 }
  0x4d   : > { %p84_p10 = scmp.gt.s32.totalorder %s6558_s6, 0  ;;  %p11310_p12 = por %p98_p9, %p14470_p2 }
  0x4e   : > { %p104_p13 = scmp.ne.s32.totalorder %s11047_s29, %s11043_s28  ;;  %s11316_s18 = sadd.s32 4, %s6557_s13 }
  0x4f   : > { %s15064_s6 = smov (!%p84_p10, %s6558_s6), 0  ;;  %14706 = sst [smem:[#allocation33_spill]] %s11316_s18 }
  0x50   : > { %s87_s10 = ssub.s32 %s15062_s5, %s15064_s6  ;;  %p14707_p3 = scmp.eq.s32.totalorder %s11237_s22, 0 }
  0x51   : > { %s88_s23 = sor.u32 %s87_s10, %s11302_s8  ;;  %p14469_p4 = scmp.lt.s32.totalorder %s11083_s21, 4 }
  0x52   : > { %p11322_p5 = por %p104_p13, %p14707_p3  ;;  %p89_p1 = scmp.eq.s32.totalorder %s88_s23, 0 }
  0x53   : > { %s11328_s2 = sshll.u32 %s11079_s20, 3  ;;  %s485_s28 = sand.u32 1, %s11083_s21  }
  0x54   : > { %s14708_s19 = scalar_select %p11322_p5, 1, 0 }
  0x55   : > { %s11332_s13 = scalar_select %p89_p1, %s11051_s30, %s91_s17  }
  0x56   : > { %s487_s6 = sand.u32 1, %s11051_s30   ;;  %s498_s25 = sadd.s32 %s11328_s2, %s15062_s5 }
  0x57   : > { %s6570_s26 = sshll.u32 %s487_s6, 3  ;;  %s6574_s18 = sshll.u32 %s498_s25, 7 }
  0x58   : > { %s14709_s1 = sld [smem:[#allocation88_spill]]  ;;  %s489_s23 = scalar_lea.vmem [#allocation6], %s6570_s26 }
  0x59   : > { %s502_s20 = sshll.u32 %s489_s23, 4  ;;  %p11347_p7 = pnand %p14469_p4, %p11310_p12  ;;  %s11351_s20 = int_to_ptr.vmem [resolvable:$true] %s502_s20 }
  0x5a   : > { %s11088_s25 = smov [#allocation11]  }
  0x5b   : > { %s11353_s5 = sshll.u32 %s11088_s25, 4  ;;  %p10777_p10 = pneg %p11347_p7  ;;  %s424_s5 = int_to_ptr.vmem [resolvable:$true] %s11353_s5 }
  0x5e   : > { %s11341_s27 = scalar_lea.hbm %s14709_s1, %s6574_s18  ;;  %s11355_s18 = scalar_lea.sflag [#allocation7], %s485_s28 }
  0x5f   : > { %s10775_s8 = scalar_lea.hbm %s11341_s27, 128  ;;  %s10780_s6 = scalar_lea.hbm %s14709_s1, 2048 }
  0x60   : > { %p10776_p9 = scmp.ne.s32.totalorder %s11341_s27, %s10775_s8  ;;  %p10781_p3 = scmp.lt.u32.totalorder %s11341_s27, %s14709_s1 }
  0x61   : > { %p10782_p1 = scmp.lt.u32.totalorder %s10780_s6, %s10775_s8  ;;  %p10784_p4 = scmp.lt.u32.totalorder %s10775_s8, %s11341_s27 }
  0x62   : > { %p10778_p13 = pnand %p10777_p10, %p10776_p9 }
  0x63   : > { %p10783_p0 = por %p10782_p1, %p10781_p3 }
  0x64   : > { %p10779_p12 = pneg %p10778_p13 }
  0x65   : > { %p10785_p2 = por %p10784_p4, %p10783_p0 }
  0x67   : > { %p10786_p11 = pnand %p10785_p2, %p10779_p12 }
  0x69   : > { %10789 = shalt.err (!%p10786_p11)
}
  0x6a   : > { %s10790_s28 = scalar_lea.vmem %s11351_s20, 128  ;;  %s11089_s25 = smov [#allocation6]  }
  0x6b   : > { %p10791_p9 = scmp.ne.s32.totalorder %s11351_s20, %s10790_s28  ;;  %s10795_s3 = sshll.u32 %s11089_s25, 4  ;;  %s10796_s3 = int_to_ptr.vmem [resolvable:$false] %s10795_s3 }
  0x6c   : > { %s10797_s26 = scalar_lea.vmem %s10796_s3, 256  ;;  %p10798_p6 = scmp.lt.s32.totalorder %s11351_s20, %s10796_s3 }
  0x6d   : > { %p10793_p13 = pnand %p10791_p9, %p10777_p10  ;;  %p10799_p3 = scmp.lt.s32.totalorder %s10797_s26, %s10790_s28 }
  0x6f   : > { %p10794_p5 = pneg %p10793_p13  ;;  %p10800_p1 = por %p10799_p3, %p10798_p6 }
  0x71   : > { %p10801_p0 = pnand %p10800_p1, %p10794_p5 }
  0x73   : > { %10804 = shalt.err (!%p10801_p0)
}
  0x74   : > { %10586 = dma.hbm_to_vmem [thread:$0]  (!%p11347_p7), %s11341_s27, 128, %s11351_s20, %s11355_s18  }
  0x75   : > { %s14711_s7 = sld [smem:[#allocation94_spill]] }
  0x7b   : > { %s10805_s10 = scalar_lea.hbm %s14711_s7, 2048 }
  0x7c   : > { %p10806_p2 = scmp.ne.s32.totalorder %s14711_s7, %s10805_s10  ;;  %p10812_p5 = scmp.lt.u32.totalorder %s10805_s10, %s14711_s7 }
  0x7e   : > { %p10808_p6 = pnand %p10806_p2, %p11263_p8 }
  0x80   : > { %p10809_p11 = pneg %p10808_p6 }
  0x82   : > { %p10814_p4 = pnand %p10812_p5, %p10809_p11 }
  0x84   : > { %10817 = shalt.err (!%p10814_p4)
}
  0x85   : > { %s10818_s3 = scalar_lea.vmem %s424_s5, 2048  ;;  %p10826_p9 = scmp.lt.s32.totalorder %s424_s5, %s424_s5 }
  0x86   : > { %p10819_p7 = scmp.ne.s32.totalorder %s424_s5, %s10818_s3  ;;  %p10827_p13 = scmp.lt.s32.totalorder %s10818_s3, %s10818_s3 }
  0x88   : > { %p10821_p10 = pnand %p10819_p7, %p11263_p8  ;;  %p10828_p3 = por %p10827_p13, %p10826_p9 }
  0x8a   : > { %p10822_p12 = pneg %p10821_p10 }
  0x8c   : > { %p10829_p1 = pnand %p10828_p3, %p10822_p12 }
  0x8e   : > { %10832 = shalt.err (!%p10829_p1)
}
  0x8f   : > { %p14712_p0 = scmp.ne.s32.totalorder %s14699_s12, 0  ;;  %s14713_s27 = smov 8  }
  0x90   : > { %s14714_s20 = smov 128   ;;  %s11090_s6 = smov [#allocation12]  }
  0x91   : > { %10576 = dma.hbm_to_vmem [thread:$0]  (!%p14712_p0), %s14711_s7, 2048, %s424_s5, [#allocation10], %s14714_s20, %s14714_s20, %s14713_s27  }
  0x92   : > { %s439_s10 = sshll.u32 %s11090_s6, 4  ;;  %s14715_s9 = sld [smem:[#allocation96_spill]]  ;;  %s440_s10 = int_to_ptr.vmem [resolvable:$true] %s439_s10 }
  0x98   : > { %s10833_s28 = scalar_lea.hbm %s14715_s9, 2048 }
  0x99   : > { %p10834_p2 = scmp.ne.s32.totalorder %s14715_s9, %s10833_s28  ;;  %p10840_p5 = scmp.lt.u32.totalorder %s10833_s28, %s14715_s9 }
  0x9b   : > { %p10836_p6 = pnand %p10834_p2, %p11263_p8 }
  0x9d   : > { %p10837_p11 = pneg %p10836_p6 }
  0x9f   : > { %p10842_p4 = pnand %p10840_p5, %p10837_p11 }
  0xa1   : > { %10845 = shalt.err (!%p10842_p4)
}
  0xa2   : > { %s10846_s5 = scalar_lea.vmem %s440_s10, 2048  ;;  %p10854_p9 = scmp.lt.s32.totalorder %s440_s10, %s440_s10 }
  0xa3   : > { %p10847_p7 = scmp.ne.s32.totalorder %s440_s10, %s10846_s5  ;;  %p10855_p13 = scmp.lt.s32.totalorder %s10846_s5, %s10846_s5 }
  0xa5   : > { %p10849_p10 = pnand %p10847_p7, %p11263_p8  ;;  %p10856_p3 = por %p10855_p13, %p10854_p9 }
  0xa7   : > { %p10850_p12 = pneg %p10849_p10 }
  0xa9   : > { %p10857_p1 = pnand %p10856_p3, %p10850_p12 }
  0xab   : > { %10860 = shalt.err (!%p10857_p1)
}
  0xac   : > { %10579 = dma.hbm_to_vmem [thread:$0]  (!%p14712_p0), %s14715_s9, 2048, %s440_s10, [#allocation13], %s14714_s20, %s14714_s20, %s14713_s27  }
  0xad   : > { %s6554_s12 = sadd.s32 4294967294, %s11083_s21   ;;  %s55_s24 = sadd.s32 1, %s11063_s16 }
  0xae   : > { %p14716_p8 = scmp.eq.s32.totalorder %s11305_s4, 0  ;;  %p62_p2 = scmp.ne.s32.totalorder %s11063_s16, %s11059_s15 }
  0xaf   : > { %p68_p6 = scmp.ne.s32.totalorder %s11059_s15, %s11055_s14  ;;  %p382_p11 = scmp.eq.s32.totalorder %s6554_s12, 3 }
  0xb0   : > { %s11431_s26 = scalar_select %p14716_p8, %s11063_s16, %s55_s24  }
  0xb1   : > { %s462_s8 = sand.u32 1, %s11063_s16   ;;  %p14717_p5 = scmp.eq.s32.totalorder %s11083_s21, 0 }
  0xb2   : > { %p14718_p7 = scmp.eq.s32.totalorder %s11237_s22, 0  ;;  %p14720_p12 = scmp.eq.s32.totalorder %s11237_s22, 3 }
  0xb3   : > { %p64_p4 = por %p14717_p5, %p62_p2  ;;  %p11452_p0 = por %p382_p11, %p68_p6 }
  0xb4   : > { %p11442_p10 = por %p14718_p7, %p68_p6  ;;  %p11448_p9 = por %p14720_p12, %p62_p2 }
  0xb5   : > { %s14722_s4 = scalar_select %p11452_p0, 1, 0 }
  0xb6   : > { %s14721_s10 = scalar_select %p11448_p9, 1, 0 }
  0xb7   : > { %s6566_s23 = sshll.u32 %s462_s8, 5  ;;  %s14723_s25 = sadd.s32 %s11328_s2, %s11286_s11 }
  0xb8   : > { %s6569_s28 = sshll.u32 %s14723_s25, 7  ;;  %s14724_s0 = sld [smem:[#allocation87_spill]] }
  0xb9   : > { %s466_s1 = scalar_lea.vmem [#allocation3], %s6566_s23  ;;  %p14725_p13 = scmp.lt.s32.totalorder %s11083_s21, 4 }
  0xba   : > { %s475_s29 = sshll.u32 %s466_s1, 4  ;;  %s11472_s24 = scalar_lea.sflag [#allocation4], %s462_s8  ;;  %s11464_s29 = int_to_ptr.vmem [resolvable:$true] %s475_s29 }
  0xbb   : > { %p11468_p3 = pnand %p14725_p13, %p64_p4 }
  0xbd   : > { %p10863_p8 = pneg %p11468_p3 }
  0xbe   : > { %s11462_s5 = scalar_lea.hbm %s14724_s0, %s6569_s28  ;;  %s10866_s17 = scalar_lea.hbm %s14724_s0, 2048 }
  0xbf   : > { %s10861_s25 = scalar_lea.hbm %s11462_s5, 512  ;;  %p10867_p11 = scmp.lt.u32.totalorder %s11462_s5, %s14724_s0 }
  0xc0   : > { %p10862_p1 = scmp.ne.s32.totalorder %s11462_s5, %s10861_s25  ;;  %p10868_p5 = scmp.lt.u32.totalorder %s10866_s17, %s10861_s25 }
  0xc1   : > { %p10870_p7 = scmp.lt.u32.totalorder %s10861_s25, %s11462_s5 }
  0xc2   : > { %p10864_p2 = pnand %p10863_p8, %p10862_p1  ;;  %p10869_p4 = por %p10868_p5, %p10867_p11 }
  0xc4   : > { %p10865_p6 = pneg %p10864_p2  ;;  %p10871_p12 = por %p10870_p7, %p10869_p4 }
  0xc6   : > { %p10872_p13 = pnand %p10871_p12, %p10865_p6 }
  0xc8   : > { %10875 = shalt.err (!%p10872_p13)
}
  0xc9   : > { %s10876_s8 = scalar_lea.vmem %s11464_s29, 512  ;;  %s11091_s23 = smov [#allocation3]  }
  0xca   : > { %p10877_p1 = scmp.ne.s32.totalorder %s11464_s29, %s10876_s8  ;;  %s10881_s28 = sshll.u32 %s11091_s23, 4  ;;  %s10882_s28 = int_to_ptr.vmem [resolvable:$false] %s10881_s28 }
  0xcb   : > { %s10883_s3 = scalar_lea.vmem %s10882_s28, 1024  ;;  %p10884_p9 = scmp.lt.s32.totalorder %s11464_s29, %s10882_s28 }
  0xcc   : > { %p10879_p2 = pnand %p10877_p1, %p10863_p8  ;;  %p10885_p11 = scmp.lt.s32.totalorder %s10883_s3, %s10876_s8 }
  0xce   : > { %p10880_p0 = pneg %p10879_p2  ;;  %p10886_p5 = por %p10885_p11, %p10884_p9 }
  0xd0   : > { %p10887_p4 = pnand %p10886_p5, %p10880_p0 }
  0xd2   : > { %10890 = shalt.err (!%p10887_p4)
}
  0xd3   : > { %s14727_s25 = sld [smem:[#allocation23_spill]]  ;;  %s14728_s17 = sld [smem:[#allocation33_spill]] }
  0xd4   : > { %s14729_s1 = sld [smem:[#allocation22_spill]]  ;;  %s14730_s23 = sld [smem:[#allocation21_spill]] }
  0xd5   : > { %s14731_s8 = sld [smem:[#allocation32_spill]]  ;;  %s6601_s12 = sadd.s32 4, %s11286_s11 }
  0xd6   : > { %10583 = dma.hbm_to_vmem [thread:$0]  (!%p11468_p3), %s11462_s5, 512, %s11464_s29, %s11472_s24, %s14714_s20, %s14714_s20, %s14713_s27  }
  0xd7   : > { %p116_p9 = scmp.lt.s32.totalorder %s6601_s12, 7  ;;  %p14733_p7 = scmp.eq.s32.totalorder %s11083_s21, 0 }
  0xd8   : > { %p14734_p1 = scmp.eq.s32.totalorder %s11237_s22, 0  ;;  %s14736_s24 = sld [smem:[#allocation89_spill]] }
  0xd9   : > { %s127_s28 = sadd.s32 1, %s14727_s25  ;;  %p14732_p0 = scmp.lt.s32.totalorder %s14728_s17, 7 }
  0xda   : > { %s15068_s12 = smov (!%p116_p9, %s6601_s12), 7  ;;  %p134_p8 = scmp.ne.s32.totalorder %s14727_s25, %s14729_s1 }
  0xdb   : > { %s15066_s17 = smov (!%p14732_p0, %s14728_s17), 7  ;;  %p140_p6 = scmp.ne.s32.totalorder %s14729_s1, %s14730_s23 }
  0xdc   : > { %s123_s3 = ssub.s32 %s15068_s12, %s15066_s17  ;;  %s511_s0 = sand.u32 1, %s14727_s25  }
  0xdd   : > { %s124_s7 = sor.u32 %s123_s3, %s14731_s8  ;;  %p136_p12 = por %p134_p8, %p14733_p7 }
  0xde   : > { %p125_p13 = scmp.eq.s32.totalorder %s124_s7, 0  ;;  %p11518_p2 = por %p140_p6, %p14734_p1 }
  0xdf   : > { %s6575_s11 = sshll.u32 %s511_s0, 3  ;;  %s522_s27 = sadd.s32 %s11328_s2, %s15068_s12 }
  0xe0   : > { %s14735_s9 = scalar_select %p11518_p2, 1, 0 }
  0xe1   : > { %s15070_s25 = smov (!%p125_p13, %s14727_s25), %s127_s28  ;;  %s6578_s20 = sshll.u32 %s522_s27, 7 }
  0xe2   : > { %s11529_s1 = scalar_lea.hbm %s14736_s24, %s6578_s20  ;;  %s513_s7 = scalar_lea.vmem [#allocation8], %s6575_s11 }
  0xe3   : > { %s526_s17 = sshll.u32 %s513_s7, 4  ;;  %p14737_p3 = scmp.lt.s32.totalorder %s11083_s21, 4  ;;  %s11531_s17 = int_to_ptr.vmem [resolvable:$true] %s526_s17 }
  0xe4   : > { %s10891_s2 = scalar_lea.hbm %s11529_s1, 128  ;;  %s10896_s12 = scalar_lea.hbm %s14736_s24, 2048 }
  0xe5   : > { %p11535_p11 = pnand %p14737_p3, %p136_p12  ;;  %p10892_p5 = scmp.ne.s32.totalorder %s11529_s1, %s10891_s2 }
  0xe6   : > { %p10897_p8 = scmp.lt.u32.totalorder %s11529_s1, %s14736_s24  ;;  %p10898_p6 = scmp.lt.u32.totalorder %s10896_s12, %s10891_s2 }
  0xe7   : > { %p10893_p4 = pneg %p11535_p11  ;;  %p10900_p12 = scmp.lt.u32.totalorder %s10891_s2, %s11529_s1 }
  0xe8   : > { %p10899_p7 = por %p10898_p6, %p10897_p8 }
  0xe9   : > { %p10894_p9 = pnand %p10893_p4, %p10892_p5 }
  0xea   : > { %p10901_p13 = por %p10900_p12, %p10899_p7 }
  0xeb   : > { %p10895_p0 = pneg %p10894_p9 }
  0xed   : > { %p10902_p1 = pnand %p10901_p13, %p10895_p0 }
  0xef   : > { %10905 = shalt.err (!%p10902_p1)
}
  0xf0   : > { %s10906_s11 = scalar_lea.vmem %s11531_s17, 128  ;;  %s11092_s27 = smov [#allocation8]  }
  0xf1   : > { %p10907_p3 = scmp.ne.s32.totalorder %s11531_s17, %s10906_s11  ;;  %s10911_s20 = sshll.u32 %s11092_s27, 4  ;;  %s10912_s20 = int_to_ptr.vmem [resolvable:$false] %s10911_s20 }
  0xf2   : > { %s10913_s5 = scalar_lea.vmem %s10912_s20, 256  ;;  %p10914_p2 = scmp.lt.s32.totalorder %s11531_s17, %s10912_s20 }
  0xf3   : > { %p10909_p5 = pnand %p10907_p3, %p10893_p4  ;;  %p10915_p8 = scmp.lt.s32.totalorder %s10913_s5, %s10906_s11 }
  0xf5   : > { %p10910_p9 = pneg %p10909_p5  ;;  %p10916_p6 = por %p10915_p8, %p10914_p2 }
  0xf7   : > { %p10917_p7 = pnand %p10916_p6, %p10910_p9 }
  0xf9   : > { %10920 = shalt.err (!%p10917_p7)
}
  0xfa   : > { %10589 = dma.hbm_to_vmem [thread:$0]  (!%p11535_p11), %s11529_s1, 128, %s11531_s17, %s11355_s18  }
  0xfb   : > { %s14739_s29 = sld [smem:[#allocation29_spill]] }
 0x101   : > { %p14740_p0 = scmp.ne.s32.totalorder %s14739_s29, 0 }
 0x103   : > { %535 = sbr.rel (%p14740_p0) target bundleno = 2616 (0xa38), region = 72 }
 0x10a   : > { %s11568_s7 = sand.u32 1, %s11059_s15  }
 0x10b   : > { %s6580_s2 = sshll.u32 %s11568_s7, 5  ;;  %s538_s23 = scalar_lea.sflag [#allocation4], %s11568_s7 }
 0x10c   : > { %s11574_s8 = scalar_lea.vmem [#allocation3], %s6580_s2 }
 0x10d   : > { %11006 = dma.done.wait (%p11442_p10), %s538_s23, 512  }
 0x10e   : > { %11008 = vsyncadd (%p11442_p10), %s538_s23, 4294966784  ;;  %s14741_s18 = sld [smem:[#allocation24_spill]]  ;;  %s546_s1 = sand.u32 1, %s11237_s22  }
 0x10f   : > { %s547_s12 = scalar_lea.sflag [#allocation7], %s546_s1  ;;  %p14742_p2 = scmp.ne.s32.totalorder %s14708_s19, 0 }
 0x114   : > { %s548_s17 = sand.u32 1, %s14741_s18  }
 0x115   : > { %s11582_s0 = sshll.u32 %s548_s17, 3 }
 0x116   : > { %s550_s28 = scalar_lea.vmem [#allocation6], %s11582_s0 }
 0x117   : > { %11010 = dma.done.wait (%p14742_p2), %s547_s12, 128  }
 0x118   : > { %11012 = vsyncadd (%p14742_p2), %s547_s12, 4294967168  ;;  %s14743_s3 = sld [smem:[#allocation22_spill]]  ;;  %p14744_p10 = scmp.ne.s32.totalorder %s14735_s9, 0 }
 0x11e   : > { %s557_s11 = sand.u32 1, %s14743_s3  }
 0x11f   : > { %s11590_s6 = sshll.u32 %s557_s11, 3 }
 0x120   : > { %s559_s27 = scalar_lea.vmem [#allocation8], %s11590_s6 }
 0x121   : > { %11014 = dma.done.wait (%p14744_p10), %s547_s12, 128  }
 0x122   : > { %11016 = vsyncadd (%p14744_p10), %s547_s12, 4294967168  ;;  %p14745_p11 = scmp.eq.s32.totalorder %s11237_s22, 0 }
 0x124   : > { %11018 = dma.done.wait (%p14745_p11), [#allocation10], 12288   ;;  %p14746_p4 = pmov %p14745_p11 }
 0x126   : > { %11020 = vsyncadd (%p14746_p4), [#allocation10], 4294955008  ;;  %p14747_p12 = pmov %p14746_p4 }
 0x127   : > { %p14748_p13 = pmov %p14746_p4 }
 0x128   : > { %11022 = dma.done.wait (%p14747_p12), [#allocation13], 2048  }
 0x129   : > { %11024 = vsyncadd (%p14748_p13), [#allocation13], 4294965248  ;;  %s14749_s19 = sld [smem:[#allocation25_spill]]  ;;  %v11606_v0 = vld [vmem:[#allocation9] sm:$0xff]  ;;  %v11608_v1 = vld [vmem:[#allocation9 + $0x8] sm:$0xff]  ;;  %s14996_s29 = sld [smem:[#allocation91_spill]] }
 0x12a   : > { %v11610_v2 = vld [vmem:[#allocation9 + $0x10] sm:$0xff]  ;;  %v1468_v3 = vand.u32 4294901760, %v11606_v0  ;;  %v1471_v4 = vand.u32 4294901760, %v11608_v1  ;;  %v11614_v5 = vld [vmem:[#allocation9 + $0x18] sm:$0xff]  ;;  %v11617_v7 = vld [vmem:[#allocation9 + $0x20] sm:$0xff]  ;;  %s14997_s18 = sld [smem:[#allocation92_spill]] }
 0x12b   : > { %v1474_v6 = vand.u32 4294901760, %v11610_v2  ;;  %v11619_v8 = vld [vmem:[#allocation9 + $0x28] sm:$0xff]  ;;  %v1477_v9 = vand.u32 4294901760, %v11614_v5  ;;  %v1480_v11 = vand.u32 4294901760, %v11617_v7  ;;  %v11636_v14 = vld [vmem:[#allocation9 + $0x30] sm:$0xff]  ;;  %v11638_v15 = vld [vmem:[#allocation9 + $0x38] sm:$0xff] }
 0x12c   : > { %v11626_v10 = vpack.c.bf16 %v1471_v4, %v1468_v3  ;;  %v1483_v12 = vand.u32 4294901760, %v11619_v8  ;;  %v11644_v17 = vld [vmem:[%s11574_s8] sm:$0xff]  ;;  %v11649_v18 = vld [vmem:[%s11574_s8 + $0x8] sm:$0xff]  ;;  %v11652_v19 = vld [vmem:[%s11574_s8 + $0x10] sm:$0xff]  ;;  %v1486_v22 = vand.u32 4294901760, %v11636_v14  ;;  %v1489_v23 = vand.u32 4294901760, %v11638_v15 }
 0x12d   : > { %v11634_v13 = vpack.c.bf16 %v1477_v9, %v1474_v6  ;;  %651 = vst [vmem:[#allocation2 + $0x8] sm:$0xff] %v11644_v17  ;;  %v11655_v20 = vld [vmem:[%s11574_s8 + $0x18] sm:$0xff]  ;;  %652 = vst [vmem:[#allocation2 + $0x10] sm:$0xff] %v11649_v18  ;;  %v11669_v24 = vld [vmem:[#allocation9 + $0x40] sm:$0xff]  ;;  %v11736_v49 = vsub.f32 %v11606_v0, %v1468_v3  ;;  %v11741_v50 = vsub.f32 %v11608_v1, %v1471_v4  ;;  %s14998_s0 = sld [smem:[#allocation93_spill]]  ;;  %s15013_s3 = sld [smem:[#allocation95_spill]] }
 0x12e   : > { %14750 = vst [vmem:[#allocation34_spill] sm:$0xff] %v11626_v10  ;;  %9331 = vmatprep.subr.bf16.mxu0 %v11626_v10  ;;  %v11662_v21 = vpack.c.bf16 %v1483_v12, %v1480_v11  ;;  %653 = vst [vmem:[#allocation2 + $0x18] sm:$0xff] %v11652_v19  ;;  %v11671_v25 = vld [vmem:[#allocation9 + $0x48] sm:$0xff]  ;;  %v11679_v26 = vpack.c.bf16 %v1489_v23, %v1486_v22  ;;  %v1492_v27 = vand.u32 4294901760, %v11669_v24  ;;  %v11683_v29 = vld [vmem:[#allocation9 + $0x50] sm:$0xff]  ;;  %s15032_s5 = sld [smem:[#allocation98_spill]] }
 0x12f   : > { %p634_p1 = scmp.eq.s32.totalorder %s14749_s19, 0  ;;  %14751 = vst [vmem:[#allocation35_spill] sm:$0xff] %v11634_v13  ;;  %9333 = vmatpush3.bf16.msra.mxu0 %v11626_v10  ;;  %654 = vst [vmem:[#allocation2 + $0x20] sm:$0xff] %v11655_v20  ;;  %v1495_v28 = vand.u32 4294901760, %v11671_v25  ;;  %v11685_v30 = vld [vmem:[#allocation9 + $0x58] sm:$0xff]  ;;  %v14493_v34 = vand.u32 4294901760, %v11683_v29  ;;  %v11761_v57 = vsub.f32 %v11610_v2, %v1474_v6  ;;  %v11774_v0 = vsub.f32 %v11614_v5, %v1477_v9 }
 0x130   : > { %9335 = vmatprep.subr.bf16.mxu0 %v11634_v13  ;;  %14752 = vst [vmem:[#allocation36_spill] sm:$0xff] %v11662_v21  ;;  %14753 = vst [vmem:[#allocation37_spill] sm:$0xff] %v11679_v26  ;;  %v14487_v35 = vand.u32 4294901760, %v11685_v30  ;;  %v11699_v36 = vld [vmem:[#allocation9 + $0x60] sm:$0xff]  ;;  %v11701_v37 = vld [vmem:[#allocation9 + $0x68] sm:$0xff]  ;;  %v14480_v62 = vand.u32 4294901760, %v11736_v49 }
 0x131   : > { %s10722_s9 = scalar_select %p634_p1, 0, 255  ;;  %v11695_v33 = vpack.c.bf16 %v1495_v28, %v1492_v27  ;;  %v14486_v41 = vand.u32 4294901760, %v11699_v36  ;;  %v14485_v42 = vand.u32 4294901760, %v11701_v37  ;;  %v11717_v43 = vld [vmem:[#allocation9 + $0x70] sm:$0xff]  ;;  %v11719_v44 = vld [vmem:[#allocation9 + $0x78] sm:$0xff] }
 0x132   : > { %v11713_v40 = vpack.c.bf16 %v14487_v35, %v14493_v34  ;;  %v14484_v45 = vand.u32 4294901760, %v11717_v43  ;;  %v14483_v46 = vand.u32 4294901760, %v11719_v44  ;;  %14759 = vst [vmem:[#allocation43_spill] sm:$0xff] %v11736_v49  ;;  %14760 = vst [vmem:[#allocation44_spill] sm:$0xff] %v11741_v50  ;;  %v11743_v52 = vld [vmem:[#allocation9 + $0x80] sm:$0xff]  ;;  %v11745_v53 = vld [vmem:[#allocation9 + $0x88] sm:$0xff] }
 0x133   : > { %v10723_v16 = vld [vmem:[%s550_s28] sm:%s10722_s9]  ;;  %9337 = vmatpush3.bf16.msra.mxu0 %v11634_v13  ;;  %14755 = vst [vmem:[#allocation39_spill] sm:$0xff] %v11695_v33  ;;  %v11731_v48 = vpack.c.bf16 %v14485_v42, %v14486_v41  ;;  %v11749_v55 = vld [vmem:[#allocation9 + $0x90] sm:$0xff]  ;;  %14763 = vst [vmem:[#allocation47_spill] sm:$0xff] %v11761_v57  ;;  %v14478_v60 = vand.u32 4294901760, %v11743_v52  ;;  %v14479_v63 = vand.u32 4294901760, %v11741_v50  ;;  %v11850_v41 = vsub.f32 %v11638_v15, %v1489_v23 }
 0x134   : > { %650 = vst [vmem:[#allocation2] sm:$0xff] %v10723_v16  ;;  %9339 = vmatprep.subr.bf16.mxu0 %v11662_v21  ;;  %14757 = vst [vmem:[#allocation41_spill] sm:$0xff] %v11713_v40  ;;  %v657_v47 = vld [vmem:[#allocation2 + $0xe] sm:$0xff]  ;;  %v11756_v56 = vpack.c.bf16 %v14483_v46, %v14484_v45  ;;  %v14477_v1 = vand.u32 4294901760, %v11745_v53  ;;  %v14482_v2 = vand.u32 4294901760, %v11749_v55  ;;  %v14489_v9 = vand.u32 4294901760, %v11761_v57 }
 0x135   : > { %14758 = vst [vmem:[#allocation42_spill] sm:$0xff] %v11731_v48  ;;  %v658_v51 = vld [vmem:[#allocation2 + $0x16] sm:$0xff]  ;;  %v11747_v54 = vand.u32 4294901760, %v657_v47  ;;  %v11766_v61 = vld [vmem:[#allocation9 + $0x98] sm:$0xff]  ;;  %14765 = vst [vmem:[#allocation49_spill] sm:$0xff] %v11774_v0  ;;  %p640_p3 = scmp.eq.s32.totalorder %s14749_s19, 1 }
 0x136   : > { %14762 = vst [vmem:[#allocation46_spill] sm:$0xff] %v11756_v56  ;;  %v11763_v58 = vand.u32 4294901760, %v658_v51  ;;  %v659_v59 = vld [vmem:[#allocation2 + $0x1e] sm:$0xff]  ;;  %v11778_v3 = vld [vmem:[#allocation9 + $0xa0] sm:$0xff]  ;;  %v11789_v16 = vpack.c.bf16 %v14477_v1, %v14478_v60  ;;  %v14481_v5 = vand.u32 4294901760, %v11766_v61  ;;  %v9362_v60 = vpack.c.bf16 %v14479_v63, %v14480_v62  ;;  %v11840_v45 = vld [vmem:[#allocation9 + $0xb8] sm:$0xff] }
 0x137   : > { %9341 = vmatpush3.bf16.msra.mxu0 %v11662_v21  ;;  %14761 = vst [vmem:[#allocation45_spill] sm:$0xff] %v11747_v54  ;;  %v11781_v4 = vsub.f32 %v657_v47, %v11747_v54  ;;  %v11783_v6 = vand.u32 4294901760, %v659_v59  ;;  %v11802_v47 = vsub.f32 %v11619_v8, %v1483_v12  ;;  %v11807_v1 = vld [vmem:[#allocation9 + $0xa8] sm:$0xff]  ;;  %v11838_v46 = vld [vmem:[#allocation9 + $0xb0] sm:$0xff]  ;;  %14773 = vst [vmem:[#allocation57_spill] sm:$0xff] %v11850_v41  ;;  %v14497_v23 = vand.u32 4294901760, %v11840_v45 }
 0x138   : > { %9343 = vmatprep.subr.bf16.mxu0 %v11679_v26  ;;  %14764 = vst [vmem:[#allocation48_spill] sm:$0xff] %v11763_v58  ;;  %9043 = vmatprep.subr.bf16.mxu1 %v11789_v16  ;;  %v11820_v8 = vpack.c.bf16 %v14481_v5, %v14482_v2  ;;  %v14490_v63 = vand.u32 4294901760, %v11807_v1  ;;  %v11835_v5 = vsub.f32 %v11636_v14, %v1486_v22  ;;  %v11858_v22 = vld [vmem:[#allocation9 + $0xc0] sm:$0xff]  ;;  %v11861_v35 = vld [vmem:[#allocation9 + $0xc8] sm:$0xff]  ;;  %v14498_v15 = vand.u32 4294901760, %v11838_v46  ;;  %v11883_v34 = vld [vmem:[#allocation9 + $0xd0] sm:$0xff] }
 0x139   : > { %14766 = vst [vmem:[#allocation50_spill] sm:$0xff] %v11781_v4  ;;  %14767 = vst [vmem:[#allocation51_spill] sm:$0xff] %v11783_v6  ;;  %9045 = vmatpush3.bf16.msra.mxu1 %v11789_v16  ;;  %v14491_v12 = vand.u32 4294901760, %v11781_v4  ;;  %v14495_v42 = vand.u32 4294901760, %v11802_v47  ;;  %s10725_s22 = scalar_select %p640_p3, 0, 255 }
 0x13a   : > { %14769 = vst [vmem:[#allocation53_spill] sm:$0xff] %v11802_v47  ;;  %9047 = vmatprep.subr.bf16.mxu1 %v11820_v8  ;;  %14772 = vst [vmem:[#allocation56_spill] sm:$0xff] %v11835_v5  ;;  %s15031_s9 = sld [smem:[#allocation26_spill]]  ;;  %s15033_s1 = sld [smem:[#allocation99_spill]] }
 0x13b   : > { %v656_v31 = vld [vmem:[#allocation2 + $0x6] sm:$0xff]  ;;  %9345 = vmatpush3.bf16.msra.mxu0 %v11679_v26  ;;  %s15034_s11 = sld [smem:[#allocation100_spill]]  ;;  %p15035_p9 = scmp.ne.s32.totalorder %s14721_s10, 0 }
 0x13c   : > { %v11688_v32 = vand.u32 4294901760, %v656_v31  ;;  %9347 = vmatprep.subr.bf16.mxu0 %v11695_v33 }
 0x13d   : > { %9049 = vmatpush3.bf16.msra.mxu1 %v11820_v8 }
 0x13e   : > { %14754 = vst [vmem:[#allocation38_spill] sm:$0xff] %v11688_v32  ;;  %v11704_v38 = vsub.f32 %v656_v31, %v11688_v32  ;;  %v11797_v31 = vsub.f32 %v11617_v7, %v1480_v11  ;;  %v14488_v7 = vand.u32 4294901760, %v11774_v0  ;;  %v14492_v11 = vand.u32 4294901760, %v11778_v3 }
 0x13f   : > { %9349 = vmatpush3.bf16.msra.mxu0 %v11695_v33 }
 0x140   : > { %14756 = vst [vmem:[#allocation40_spill] sm:$0xff] %v11704_v38  ;;  %v14476_v39 = vand.u32 4294901760, %v11704_v38  ;;  %9351 = vmatprep.subr.bf16.mxu0 %v11713_v40  ;;  %14768 = vst [vmem:[#allocation52_spill] sm:$0xff] %v11797_v31  ;;  %v14496_v62 = vand.u32 4294901760, %v11797_v31  ;;  %v11856_v14 = vpack.c.bf16 %v14490_v63, %v14492_v11  ;;  %v11873_v63 = vsub.f32 %v11669_v24, %v1492_v27  ;;  %s6596_s23 = sshll.u32 %s15031_s9, 3  ;;  %s11093_s9 = smov [#allocation14]  }
 0x141   : > { %v14501_v11 = vand.u32 4294901760, %v11858_v22  ;;  %v14504_v27 = vand.u32 4294901760, %v11850_v41  ;;  %v11949_v41 = vld [vmem:[#allocation9 + $0xf8] sm:$0xff]  ;;  %v14792_v31 = vand.u32 4294901760, %v11717_v43 }
 0x142   : > { %7820 = vmatprep.mubr.f32.mxu0 %v14476_v39  ;;  %v11805_v39 = vsub.f32 %v658_v51, %v11763_v58  ;;  %v11826_v51 = vsub.f32 %v659_v59, %v11783_v6  ;;  %v9366_v59 = vpack.c.bf16 %v14488_v7, %v14489_v9  ;;  %9051 = vmatprep.subr.bf16.mxu1 %v11856_v14  ;;  %v14505_v9 = vand.u32 4294901760, %v11835_v5 }
 0x143   : > { %9353 = vmatpush3.bf16.msra.mxu0 %v11713_v40  ;;  %14774 = vst [vmem:[#allocation58_spill] sm:$0xff] %v11873_v63  ;;  %v9370_v24 = vpack.c.bf16 %v14495_v42, %v14496_v62  ;;  %9053 = vmatpush3.bf16.msra.mxu1 %v11856_v14  ;;  %v14776_v42 = vand.u32 4294901760, %v11683_v29  ;;  %v14784_v5 = vand.u32 4294901760, %v11873_v63 }
 0x144   : > { %9355 = vmatprep.subr.bf16.mxu0 %v11731_v48  ;;  %14770 = vst [vmem:[#allocation54_spill] sm:$0xff] %v11805_v39  ;;  %14771 = vst [vmem:[#allocation55_spill] sm:$0xff] %v11826_v51  ;;  %v14494_v2 = vand.u32 4294901760, %v11805_v39  ;;  %v14499_v7 = vand.u32 4294901760, %v11826_v51  ;;  %v14780_v51 = vand.u32 4294901760, %v11883_v34 }
 0x147   : > { %9357 = vmatpush3.bf16.msra.mxu0 %v11731_v48 }
 0x148   : > { %9359 = vmatprep.subr.bf16.mxu0 %v11756_v56 }
 0x14b   : > { %9361 = vmatpush3.bf16.msra.mxu0 %v11756_v56 }
 0x14c   : > { %9363 = vmatprep.subr.bf16.mxu0 %v9362_v60 }
 0x14e   : > { %7821 = vmatmul.mubr.f32.vlgmr.msra.gmra.mrb[0].mxu0 %v14491_v12  ;;  %v11878_v12 = vsub.f32 %v11671_v25, %v1495_v28  ;;  %v11896_v25 = vpack.c.bf16 %v14497_v23, %v14498_v15  ;;  %v14500_v28 = vand.u32 4294901760, %v11861_v35  ;;  %v11913_v15 = vld [vmem:[#allocation9 + $0xe0] sm:$0xff]  ;;  %v14778_v23 = vand.u32 4294901760, %v11685_v30 }
 0x14f   : > { %9365 = vmatpush3.bf16.msra.mxu0 %v9362_v60  ;;  %7823 = vmatprep.mubr.f32.mxu0 %v14494_v2  ;;  %v11885_v60 = vld [vmem:[#allocation9 + $0xd8] sm:$0xff] }
 0x150   : > { %14775 = vst [vmem:[#allocation59_spill] sm:$0xff] %v11878_v12  ;;  %9367 = vmatprep.subr.bf16.mxu0 %v9366_v59  ;;  %9055 = vmatprep.subr.bf16.mxu1 %v11896_v25  ;;  %v11907_v2 = vpack.c.bf16 %v14500_v28, %v14501_v11  ;;  %v9374_v28 = vpack.c.bf16 %v14504_v27, %v14505_v9  ;;  %v14781_v27 = vand.u32 4294901760, %v11885_v60 }
 0x151   : > { %v11930_v62 = vsub.f32 %v11685_v30, %v14778_v23  ;;  %9057 = vmatpush3.bf16.msra.mxu1 %v11896_v25  ;;  %v11947_v23 = vld [vmem:[#allocation9 + $0xf0] sm:$0xff] }
 0x152   : > { %7824 = vmatmul.mubr.f32.gmra.mrb[2].mxu0 %v14499_v7  ;;  %v11915_v7 = vld [vmem:[#allocation9 + $0xe8] sm:$0xff]  ;;  %9059 = vmatprep.subr.bf16.mxu1 %v11907_v2  ;;  %v11938_v9 = vpack.c.bf16 %v14781_v27, %v14780_v51  ;;  %v14785_v51 = vand.u32 4294901760, %v11878_v12 }
 0x153   : > { %9369 = vmatpush3.bf16.msra.mxu0 %v9366_v59  ;;  %7858 = vmatprep.mubr.f32.mxu0 %v11688_v32  ;;  %v11925_v59 = vsub.f32 %v11683_v29, %v14776_v42  ;;  %14779 = vst [vmem:[#allocation61_spill] sm:$0xff] %v11930_v62  ;;  %v14782_v42 = vand.u32 4294901760, %v11699_v36  ;;  %v676_v29 = vld [vmem:[#allocation2 + $0x7] sm:$0xff] }
 0x154   : > { %9371 = vmatprep.subr.bf16.mxu0 %v9370_v24  ;;  %v9378_v27 = vpack.c.bf16 %v14785_v51, %v14784_v5  ;;  %v14520_v5 = vand.u32 4294901760, %v11947_v23 }
 0x155   : > { %14777 = vst [vmem:[#allocation60_spill] sm:$0xff] %v11925_v59  ;;  %v11945_v30 = vsub.f32 %v11699_v36, %v14782_v42  ;;  %9061 = vmatpush3.bf16.msra.mxu1 %v11907_v2  ;;  %v14788_v36 = vand.u32 4294901760, %v11913_v15  ;;  %v14789_v42 = vand.u32 4294901760, %v11915_v7 }
 0x156   : > { %9063 = vmatprep.subr.bf16.mxu1 %v11938_v9 }
 0x157   : > { %9373 = vmatpush3.bf16.msra.mxu0 %v9370_v24  ;;  %14783 = vst [vmem:[#allocation62_spill] sm:$0xff] %v11945_v30  ;;  %v14786_v24 = vand.u32 4294901760, %v11701_v37  ;;  %v11968_v63 = vpack.c.bf16 %v14789_v42, %v14788_v36  ;;  %v14523_v11 = vand.u32 4294901760, %v11945_v30  ;;  %v11981_v36 = vsub.f32 %v11717_v43, %v14792_v31 }
 0x158   : > { %9375 = vmatprep.subr.bf16.mxu0 %v9374_v28  ;;  %v14794_v42 = vand.u32 4294901760, %v11719_v44  ;;  %v14797_v43 = vand.u32 4294901760, %v11743_v52 }
 0x159   : > { %v11960_v39 = vsub.f32 %v11701_v37, %v14786_v24  ;;  %v14790_v37 = vand.u32 4294901760, %v11925_v59  ;;  %v14791_v24 = vand.u32 4294901760, %v11930_v62  ;;  %14793 = vst [vmem:[#allocation64_spill] sm:$0xff] %v11981_v36  ;;  %9065 = vmatpush3.bf16.msra.mxu1 %v11938_v9  ;;  %v14539_v62 = vand.u32 4294901760, %v11981_v36 }
 0x15a   : > { %v11986_v51 = vsub.f32 %v11719_v44, %v14794_v42  ;;  %9067 = vmatprep.subr.bf16.mxu1 %v11968_v63  ;;  %v12001_v31 = vsub.f32 %v11743_v52, %v14797_v43  ;;  %v14798_v42 = vand.u32 4294901760, %v11745_v53  ;;  %v677_v43 = vld [vmem:[#allocation2 + $0xf] sm:$0xff] }
 0x15b   : > { %14787 = vst [vmem:[#allocation63_spill] sm:$0xff] %v11960_v39  ;;  %9377 = vmatpush3.bf16.msra.mxu0 %v9374_v28  ;;  %v9382_v12 = vpack.c.bf16 %v14791_v24, %v14790_v37  ;;  %v11989_v28 = vand.u32 4294901760, %v676_v29  ;;  %v14796_v37 = vand.u32 4294901760, %v11949_v41  ;;  %v12031_v52 = vand.u32 4294901760, %v677_v43 }
 0x15c   : > { %9379 = vmatprep.subr.bf16.mxu0 %v9378_v27  ;;  %14795 = vst [vmem:[#allocation65_spill] sm:$0xff] %v11986_v51  ;;  %v12009_v47 = vsub.f32 %v11745_v53, %v14798_v42 }
 0x15d   : > { %v11996_v24 = vpack.c.bf16 %v14796_v37, %v14520_v5  ;;  %v12004_v44 = vsub.f32 %v676_v29, %v11989_v28  ;;  %v14799_v37 = vand.u32 4294901760, %v11960_v39  ;;  %9069 = vmatpush3.bf16.msra.mxu1 %v11968_v63  ;;  %14800 = vst [vmem:[#allocation66_spill] sm:$0xff] %v12031_v52  ;;  %v14801_v39 = vand.u32 4294901760, %v11986_v51 }
 0x15e   : > { %v14534_v53 = vand.u32 4294901760, %v12009_v47  ;;  %v12049_v36 = vsub.f32 %v677_v43, %v12031_v52 }
 0x15f   : > { %9381 = vmatpush3.bf16.msra.mxu0 %v9378_v27  ;;  %v9386_v5 = vpack.c.bf16 %v14799_v37, %v14523_v11  ;;  %v14530_v27 = vand.u32 4294901760, %v12001_v31  ;;  %v14531_v29 = vand.u32 4294901760, %v12004_v44  ;;  %9071 = vmatprep.subr.bf16.mxu1 %v11996_v24  ;;  %v9390_v30 = vpack.c.bf16 %v14801_v39, %v14539_v62 }
 0x160   : > { %9383 = vmatprep.subr.bf16.mxu0 %v9382_v12  ;;  %v829_v11 = vsub.f32 %v12009_v47, %v14534_v53  ;;  %v14804_v62 = vand.u32 4294901760, %v11778_v3  ;;  %v14544_v43 = vand.u32 4294901760, %v12049_v36 }
 0x161   : > { %v822_v42 = vsub.f32 %v12001_v31, %v14530_v27  ;;  %v781_v37 = vsub.f32 %v12004_v44, %v14531_v29  ;;  %v14802_v27 = vand.u32 4294901760, %v11749_v55  ;;  %v14803_v29 = vand.u32 4294901760, %v11766_v61  ;;  %9073 = vmatpush3.bf16.msra.mxu1 %v11996_v24 }
 0x162   : > { %v830_v0 = vand.u32 4294901760, %v829_v11 }
 0x163   : > { %9385 = vmatpush3.bf16.msra.mxu0 %v9382_v12  ;;  %v823_v59 = vand.u32 4294901760, %v822_v42  ;;  %v12040_v12 = vsub.f32 %v11749_v55, %v14802_v27  ;;  %v12045_v4 = vsub.f32 %v11766_v61, %v14803_v29  ;;  %v782_v53 = vand.u32 4294901760, %v781_v37 }
 0x164   : > { %9387 = vmatprep.subr.bf16.mxu0 %v9386_v5  ;;  %v12056_v55 = vsub.f32 %v11778_v3, %v14804_v62  ;;  %v14805_v27 = vand.u32 4294901760, %v11807_v1  ;;  %v14806_v29 = vand.u32 4294901760, %v11838_v46 }
 0x165   : > { %v14541_v39 = vand.u32 4294901760, %v12040_v12  ;;  %v14540_v42 = vand.u32 4294901760, %v12045_v4  ;;  %7478 = vmatprep.mubr.f32.mxu1 %v782_v53  ;;  %v9074_v11 = vpack.c.bf16 %v830_v0, %v823_v59  ;;  %v791_v59 = vsub.f32 %v12049_v36, %v14544_v43 }
 0x166   : > { %v12061_v61 = vsub.f32 %v11807_v1, %v14805_v27  ;;  %v12067_v37 = vsub.f32 %v11838_v46, %v14806_v29  ;;  %v14547_v3 = vand.u32 4294901760, %v12056_v55 }
 0x167   : > { %9389 = vmatpush3.bf16.msra.mxu0 %v9386_v5  ;;  %v836_v62 = vsub.f32 %v12040_v12, %v14541_v39  ;;  %v843_v1 = vsub.f32 %v12045_v4, %v14540_v42  ;;  %9075 = vmatprep.subr.bf16.mxu1 %v9074_v11  ;;  %v14807_v5 = vand.u32 4294901760, %v11840_v45  ;;  %v792_v51 = vand.u32 4294901760, %v791_v59 }
 0x168   : > { %9391 = vmatprep.subr.bf16.mxu0 %v9390_v30  ;;  %v14548_v0 = vand.u32 4294901760, %v12061_v61  ;;  %v14549_v46 = vand.u32 4294901760, %v12067_v37  ;;  %v850_v42 = vsub.f32 %v12056_v55, %v14547_v3 }
 0x169   : > { %v12084_v53 = vsub.f32 %v11840_v45, %v14807_v5  ;;  %v837_v27 = vand.u32 4294901760, %v836_v62  ;;  %v844_v29 = vand.u32 4294901760, %v843_v1  ;;  %v14808_v45 = vand.u32 4294901760, %v11858_v22  ;;  %7479 = vmatmul.mubr.f32.vlgmr.msra.gmra.mrb[0].mxu1 %v792_v51 }
 0x16a   : > { %v857_v39 = vsub.f32 %v12061_v61, %v14548_v0  ;;  %v864_v43 = vsub.f32 %v12067_v37, %v14549_v46  ;;  %v851_v5 = vand.u32 4294901760, %v850_v42  ;;  %v14809_v0 = vand.u32 4294901760, %v11861_v35  ;;  %9077 = vmatpush3.bf16.msra.mxu1 %v9074_v11 }
 0x16b   : > { %9393 = vmatpush3.bf16.msra.mxu0 %v9390_v30  ;;  %v14556_v57 = vand.u32 4294901760, %v12084_v53  ;;  %v12099_v62 = vsub.f32 %v11858_v22, %v14808_v45  ;;  %v9078_v1 = vpack.c.bf16 %v844_v29, %v837_v27  ;;  %v14815_v27 = vand.u32 4294901760, %v11913_v15 }
 0x16c   : > { %9395 = vmatprep.subr.bf16.mxu0 %v11626_v10  ;;  %v858_v3 = vand.u32 4294901760, %v857_v39  ;;  %v12105_v30 = vsub.f32 %v11861_v35, %v14809_v0  ;;  %v865_v59 = vand.u32 4294901760, %v864_v43  ;;  %v14811_v39 = vand.u32 4294901760, %v11883_v34 }
 0x16d   : > { %v871_v46 = vsub.f32 %v12084_v53, %v14556_v57  ;;  %v14553_v50 = vand.u32 4294901760, %v12099_v62  ;;  %v14813_v35 = vand.u32 4294901760, %v11885_v60  ;;  %9079 = vmatprep.subr.bf16.mxu1 %v9078_v1 }
 0x16e   : > { %14810 = vst [vmem:[#allocation67_spill] sm:$0xff] %v12105_v30  ;;  %7859 = vmatmul.mubr.f32.vlgmr.msra.gmra.mrb[0].mxu0 %v11747_v54  ;;  %v14552_v22 = vand.u32 4294901760, %v12105_v30  ;;  %v12116_v42 = vsub.f32 %v11883_v34, %v14811_v39  ;;  %v9082_v43 = vpack.c.bf16 %v858_v3, %v851_v5  ;;  %v12131_v34 = vsub.f32 %v11913_v15, %v14815_v27  ;;  %v678_v5 = vld [vmem:[#allocation2 + $0x17] sm:$0xff] }
 0x16f   : > { %v12121_v51 = vsub.f32 %v11885_v60, %v14813_v35  ;;  %9397 = vmatpush3.bf16.msra.mxu0 %v11626_v10  ;;  %7861 = vmatprep.mubr.f32.mxu0 %v11763_v58  ;;  %v872_v0 = vand.u32 4294901760, %v871_v46  ;;  %v878_v11 = vsub.f32 %v12099_v62, %v14553_v50  ;;  %v14817_v46 = vand.u32 4294901760, %v11915_v7 }
 0x170   : > { %14812 = vst [vmem:[#allocation68_spill] sm:$0xff] %v12116_v42  ;;  %14816 = vst [vmem:[#allocation70_spill] sm:$0xff] %v12131_v34  ;;  %9399 = vmatprep.subr.bf16.mxu0 %v11634_v13  ;;  %v885_v60 = vsub.f32 %v12105_v30, %v14552_v22  ;;  %v14555_v29 = vand.u32 4294901760, %v12116_v42  ;;  %v14558_v15 = vand.u32 4294901760, %v12131_v34  ;;  %9081 = vmatpush3.bf16.msra.mxu1 %v9078_v1  ;;  %v14820_v1 = vand.u32 4294901760, %v11947_v23 }
 0x171   : > { %14814 = vst [vmem:[#allocation69_spill] sm:$0xff] %v12121_v51  ;;  %v14554_v3 = vand.u32 4294901760, %v12121_v51  ;;  %v12142_v45 = vsub.f32 %v11915_v7, %v14817_v46  ;;  %v9086_v39 = vpack.c.bf16 %v872_v0, %v865_v59  ;;  %v879_v35 = vand.u32 4294901760, %v878_v11  ;;  %v679_v46 = vld [vmem:[#allocation2 + $0x1f] sm:$0xff]  ;;  %9083 = vmatprep.subr.bf16.mxu1 %v9082_v43 }
 0x172   : > { %7862 = vmatmul.mubr.f32.gmra.mrb[2].mxu0 %v11783_v6  ;;  %v886_v27 = vand.u32 4294901760, %v885_v60  ;;  %v892_v22 = vsub.f32 %v12116_v42, %v14555_v29  ;;  %v12155_v59 = vand.u32 4294901760, %v678_v5  ;;  %v12160_v0 = vsub.f32 %v11947_v23, %v14820_v1 }
 0x173   : > { %14818 = vst [vmem:[#allocation71_spill] sm:$0xff] %v12142_v45  ;;  %v899_v50 = vsub.f32 %v12121_v51, %v14554_v3  ;;  %9401 = vmatpush3.bf16.msra.mxu0 %v11634_v13  ;;  %7896 = vmatprep.mubr.f32.mxu0 %v11688_v32  ;;  %v14822_v11 = vand.u32 4294901760, %v11949_v41  ;;  %v906_v3 = vsub.f32 %v12131_v34, %v14558_v15  ;;  %v12174_v7 = vand.u32 4294901760, %v679_v46 }
 0x174   : > { %14819 = vst [vmem:[#allocation72_spill] sm:$0xff] %v12155_v59  ;;  %14821 = vst [vmem:[#allocation73_spill] sm:$0xff] %v12160_v0  ;;  %9403 = vmatprep.subr.bf16.mxu0 %v11662_v21  ;;  %v12172_v29 = vsub.f32 %v678_v5, %v12155_v59  ;;  %9085 = vmatpush3.bf16.msra.mxu1 %v9082_v43  ;;  %v9090_v57 = vpack.c.bf16 %v886_v27, %v879_v35  ;;  %v893_v23 = vand.u32 4294901760, %v892_v22 }
 0x175   : > { %v12165_v60 = vsub.f32 %v11949_v41, %v14822_v11  ;;  %v900_v1 = vand.u32 4294901760, %v899_v50  ;;  %14824 = vst [vmem:[#allocation75_spill] sm:$0xff] %v12174_v7  ;;  %9087 = vmatprep.subr.bf16.mxu1 %v9086_v39  ;;  %v14825_v41 = vand.u32 4294901760, %v12142_v45  ;;  %v12185_v22 = vsub.f32 %v679_v46, %v12174_v7 }
 0x176   : > { %v14564_v32 = vand.u32 4294901760, %v12172_v29  ;;  %v907_v35 = vand.u32 4294901760, %v906_v3  ;;  %v14826_v5 = vand.u32 4294901760, %v12160_v0  ;;  %v12330_v10 = vand.u32 4294901760, %v11652_v19 }
 0x177   : > { %14823 = vst [vmem:[#allocation74_spill] sm:$0xff] %v12165_v60  ;;  %9405 = vmatpush3.bf16.msra.mxu0 %v11662_v21  ;;  %v913_v11 = vsub.f32 %v12142_v45, %v14825_v41  ;;  %v9094_v43 = vpack.c.bf16 %v900_v1, %v893_v23  ;;  %v14563_v27 = vand.u32 4294901760, %v12185_v22  ;;  %v14827_v46 = vand.u32 4294901760, %v12165_v60 }
 0x178   : > { %9407 = vmatprep.subr.bf16.mxu0 %v11679_v26  ;;  %v801_v50 = vsub.f32 %v12172_v29, %v14564_v32  ;;  %9089 = vmatpush3.bf16.msra.mxu1 %v9086_v39  ;;  %v920_v49 = vsub.f32 %v12160_v0, %v14826_v5  ;;  %v12204_v23 = vand.u32 4294901760, %v11644_v17 }
 0x179   : > { %9091 = vmatprep.subr.bf16.mxu1 %v9090_v57  ;;  %v914_v41 = vand.u32 4294901760, %v913_v11  ;;  %v927_v21 = vsub.f32 %v12165_v60, %v14827_v46  ;;  %v811_v3 = vsub.f32 %v12185_v22, %v14563_v27  ;;  %v12209_v46 = vld [vmem:[#allocation9 + $0x108] sm:$0xff] }
 0x17a   : > { %v802_v15 = vand.u32 4294901760, %v801_v50  ;;  %v921_v11 = vand.u32 4294901760, %v920_v49  ;;  %v12207_v50 = vld [vmem:[#allocation9 + $0x100] sm:$0xff]  ;;  %v2262_v49 = vand.u32 4294901760, %v12209_v46  ;;  %v12235_v27 = vld [vmem:[#allocation9 + $0x128] sm:$0xff] }
 0x17b   : > { %9409 = vmatpush3.bf16.msra.mxu0 %v11679_v26  ;;  %v812_v39 = vand.u32 4294901760, %v811_v3  ;;  %v9098_v1 = vpack.c.bf16 %v914_v41, %v907_v35  ;;  %v928_v5 = vand.u32 4294901760, %v927_v21  ;;  %v2259_v21 = vand.u32 4294901760, %v12207_v50  ;;  %v12220_v35 = vld [vmem:[#allocation9 + $0x110] sm:$0xff]  ;;  %v12222_v41 = vld [vmem:[#allocation9 + $0x118] sm:$0xff] }
 0x17c   : > { %9411 = vmatprep.subr.bf16.mxu0 %v11695_v33  ;;  %7481 = vmatprep.mubr.f32.mxu1 %v802_v15  ;;  %v12304_v13 = vsub.f32 %v12209_v46, %v2262_v49  ;;  %v9126_v46 = vpack.c.bf16 %v12121_v51, %v12116_v42 }
 0x17d   : > { %9093 = vmatpush3.bf16.msra.mxu1 %v9090_v57  ;;  %v12215_v57 = vsub.f32 %v11644_v17, %v12204_v23  ;;  %v9102_v15 = vpack.c.bf16 %v928_v5, %v921_v11  ;;  %v9106_v17 = vpack.c.bf16 %v12009_v47, %v12001_v31  ;;  %v12229_v3 = vpack.c.bf16 %v2262_v49, %v2259_v21  ;;  %v12233_v5 = vld [vmem:[#allocation9 + $0x120] sm:$0xff] }
 0x17e   : > { %9095 = vmatprep.subr.bf16.mxu1 %v9094_v43  ;;  %7482 = vmatmul.mubr.f32.gmra.mrb[2].mxu1 %v812_v39  ;;  %v14575_v39 = vand.u32 4294901760, %v12220_v35  ;;  %v14574_v11 = vand.u32 4294901760, %v12222_v41  ;;  %v14837_v49 = vand.u32 4294901760, %v12220_v35 }
 0x17f   : > { %9413 = vmatpush3.bf16.msra.mxu0 %v11695_v33  ;;  %7516 = vmatprep.mubr.f32.mxu1 %v11989_v28  ;;  %14828 = vst [vmem:[#allocation76_spill] sm:$0xff] %v12229_v3  ;;  %v12254_v33 = vld [vmem:[#allocation9 + $0x138] sm:$0xff] }
 0x180   : > { %9415 = vmatprep.subr.bf16.mxu0 %v11713_v40  ;;  %v12246_v32 = vpack.c.bf16 %v14574_v11, %v14575_v39  ;;  %v14585_v26 = vand.u32 4294901760, %v12254_v33 }
 0x181   : > { %9097 = vmatpush3.bf16.msra.mxu1 %v9094_v43  ;;  %v14573_v43 = vand.u32 4294901760, %v12215_v57 }
 0x182   : > { %9099 = vmatprep.subr.bf16.mxu1 %v9098_v1  ;;  %14829 = vst [vmem:[#allocation77_spill] sm:$0xff] %v12246_v32 }
 0x183   : > { %9417 = vmatpush3.bf16.msra.mxu0 %v11713_v40  ;;  %v14580_v40 = vand.u32 4294901760, %v12235_v27 }
 0x184   : > { %9419 = vmatprep.subr.bf16.mxu0 %v11731_v48 }
 0x185   : > { %9101 = vmatpush3.bf16.msra.mxu1 %v9098_v1  ;;  %v2342_v1 = vsub.f32 %v12215_v57, %v14573_v43 }
 0x186   : > { %9103 = vmatprep.subr.bf16.mxu1 %v9102_v15 }
 0x187   : > { %9421 = vmatpush3.bf16.msra.mxu0 %v11731_v48  ;;  %v14581_v48 = vand.u32 4294901760, %v12233_v5  ;;  %v2343_v43 = vand.u32 4294901760, %v2342_v1  ;;  %v9118_v1 = vpack.c.bf16 %v12084_v53, %v12067_v37 }
 0x188   : > { %9423 = vmatprep.subr.bf16.mxu0 %v11756_v56 }
 0x189   : > { %9105 = vmatpush3.bf16.msra.mxu1 %v9102_v15  ;;  %v9110_v15 = vpack.c.bf16 %v12045_v4, %v12040_v12  ;;  %v12265_v11 = vpack.c.bf16 %v14580_v40, %v14581_v48  ;;  %v9122_v48 = vpack.c.bf16 %v12105_v30, %v12099_v62 }
 0x18a   : > { %9107 = vmatprep.subr.bf16.mxu1 %v9106_v17 }
 0x18b   : > { %9425 = vmatpush3.bf16.msra.mxu0 %v11756_v56  ;;  %v12252_v56 = vld [vmem:[#allocation9 + $0x130] sm:$0xff]  ;;  %14830 = vst [vmem:[#allocation78_spill] sm:$0xff] %v12265_v11 }
 0x18c   : > { %9427 = vmatprep.subr.bf16.mxu0 %v12229_v3  ;;  %7517 = vmatmul.mubr.f32.vlgmr.msra.gmra.mrb[0].mxu1 %v12031_v52  ;;  %v14586_v39 = vand.u32 4294901760, %v12252_v56 }
 0x18d   : > { %9109 = vmatpush3.bf16.msra.mxu1 %v9106_v17  ;;  %v9114_v17 = vpack.c.bf16 %v12061_v61, %v12056_v55  ;;  %7519 = vmatprep.mubr.f32.mxu1 %v12155_v59 }
 0x18e   : > { %7897 = vmatmul.mubr.f32.vlgmr.msra.gmra.mrb[0].mxu0 %v11747_v54  ;;  %9111 = vmatprep.subr.bf16.mxu1 %v9110_v15  ;;  %v12271_v54 = vld [vmem:[#allocation9 + $0x140] sm:$0xff]  ;;  %v12285_v40 = vpack.c.bf16 %v14585_v26, %v14586_v39  ;;  %v12301_v39 = vld [vmem:[#allocation9 + $0x168] sm:$0xff] }
 0x18f   : > { %9429 = vmatpush3.bf16.msra.mxu0 %v12229_v3  ;;  %7899 = vmatprep.mubr.f32.mxu0 %v11763_v58  ;;  %v12273_v58 = vld [vmem:[#allocation9 + $0x148] sm:$0xff]  ;;  %v12299_v26 = vld [vmem:[#allocation9 + $0x160] sm:$0xff] }
 0x190   : > { %9431 = vmatprep.subr.bf16.mxu0 %v12246_v32  ;;  %14831 = vst [vmem:[#allocation79_spill] sm:$0xff] %v12285_v40  ;;  %7520 = vmatmul.mubr.f32.gmra.mrb[2].mxu1 %v12174_v7  ;;  %v12318_v7 = vand.u32 4294901760, %v11649_v18  ;;  %v14840_v51 = vand.u32 4294901760, %v12299_v26 }
 0x191   : > { %9113 = vmatpush3.bf16.msra.mxu1 %v9110_v15  ;;  %v12289_v15 = vld [vmem:[#allocation9 + $0x150] sm:$0xff]  ;;  %7554 = vmatprep.mubr.f32.mxu1 %v12004_v44 }
 0x192   : > { %7900 = vmatmul.mubr.f32.gmra.mrb[2].mxu0 %v11783_v6  ;;  %9115 = vmatprep.subr.bf16.mxu1 %v9114_v17  ;;  %v12291_v6 = vld [vmem:[#allocation9 + $0x158] sm:$0xff]  ;;  %v14606_v38 = vand.u32 4294901760, %v12289_v15  ;;  %v12354_v3 = vsub.f32 %v11649_v18, %v12318_v7  ;;  %v14844_v18 = vand.u32 4294901760, %v12304_v13 }
 0x193   : > { %9433 = vmatpush3.bf16.msra.mxu0 %v12246_v32  ;;  %7934 = vmatprep.mubr.f32.mxu0 %v2343_v43  ;;  %v12295_v43 = vsub.f32 %v12207_v50, %v2259_v21  ;;  %v14832_v50 = vand.u32 4294901760, %v12271_v54  ;;  %v14833_v21 = vand.u32 4294901760, %v12273_v58  ;;  %v14835_v59 = vand.u32 4294901760, %v12291_v6 }
 0x194   : > { %9435 = vmatprep.subr.bf16.mxu0 %v12265_v11  ;;  %14839 = vst [vmem:[#allocation82_spill] sm:$0xff] %v12354_v3 }
 0x195   : > { %9117 = vmatpush3.bf16.msra.mxu1 %v9114_v17  ;;  %v12313_v17 = vpack.c.bf16 %v14833_v21, %v14832_v50  ;;  %v12326_v50 = vld [vmem:[#allocation9 + $0x178] sm:$0xff]  ;;  %v14838_v21 = vand.u32 4294901760, %v12222_v41 }
 0x196   : > { %9119 = vmatprep.subr.bf16.mxu1 %v9118_v1 }
 0x197   : > { %9437 = vmatpush3.bf16.msra.mxu0 %v12265_v11  ;;  %14834 = vst [vmem:[#allocation80_spill] sm:$0xff] %v12313_v17  ;;  %v12322_v11 = vld [vmem:[#allocation9 + $0x170] sm:$0xff]  ;;  %v12349_v32 = vsub.f32 %v12222_v41, %v14838_v21  ;;  %v12367_v41 = vand.u32 4294901760, %v11655_v20  ;;  %v2390_v21 = vsub.f32 %v12304_v13, %v14844_v18  ;;  %v14847_v18 = vand.u32 4294901760, %v12235_v27 }
 0x198   : > { %9439 = vmatprep.subr.bf16.mxu0 %v12285_v40 }
 0x199   : > { %9121 = vmatpush3.bf16.msra.mxu1 %v9118_v1  ;;  %v12339_v1 = vpack.c.bf16 %v14835_v59, %v14606_v38  ;;  %v14841_v59 = vand.u32 4294901760, %v12301_v39 }
 0x19a   : > { %9123 = vmatprep.subr.bf16.mxu1 %v9122_v48 }
 0x19b   : > { %9441 = vmatpush3.bf16.msra.mxu0 %v12285_v40  ;;  %14836 = vst [vmem:[#allocation81_spill] sm:$0xff] %v12339_v1  ;;  %v12344_v40 = vsub.f32 %v12220_v35, %v14837_v49  ;;  %v12360_v38 = vpack.c.bf16 %v14841_v59, %v14840_v51  ;;  %v14843_v49 = vand.u32 4294901760, %v12295_v43  ;;  %v12375_v51 = vsub.f32 %v11652_v19, %v12330_v10 }
 0x19c   : > { %9443 = vmatprep.subr.bf16.mxu0 %v12313_v17  ;;  %v9130_v59 = vpack.c.bf16 %v12142_v45, %v12131_v34  ;;  %v14846_v35 = vand.u32 4294901760, %v12233_v5  ;;  %v12390_v19 = vsub.f32 %v12235_v27, %v14847_v18  ;;  %v14848_v45 = vand.u32 4294901760, %v12322_v11 }
 0x19d   : > { %14842 = vst [vmem:[#allocation83_spill] sm:$0xff] %v12360_v38  ;;  %v2383_v42 = vsub.f32 %v12295_v43, %v14843_v49  ;;  %9125 = vmatpush3.bf16.msra.mxu1 %v9122_v48  ;;  %14845 = vst [vmem:[#allocation84_spill] sm:$0xff] %v12375_v51  ;;  %v14849_v34 = vand.u32 4294901760, %v12326_v50  ;;  %v14851_v48 = vand.u32 4294901760, %v12252_v56  ;;  %v12411_v27 = vsub.f32 %v11655_v20, %v12367_v41 }
 0x19e   : > { %9127 = vmatprep.subr.bf16.mxu1 %v9126_v46  ;;  %v12385_v52 = vsub.f32 %v12233_v5, %v14846_v35  ;;  %v14852_v5 = vand.u32 4294901760, %v12254_v33  ;;  %v14855_v20 = vand.u32 4294901760, %v12349_v32 }
 0x19f   : > { %9445 = vmatpush3.bf16.msra.mxu0 %v12313_v17  ;;  %v14617_v17 = vand.u32 4294901760, %v12354_v3  ;;  %v12397_v30 = vpack.c.bf16 %v14849_v34, %v14848_v45  ;;  %v12402_v49 = vsub.f32 %v12252_v56, %v14851_v48  ;;  %14853 = vst [vmem:[#allocation86_spill] sm:$0xff] %v12411_v27  ;;  %v2384_v18 = vand.u32 4294901760, %v2383_v42 }
 0x1a0   : > { %9447 = vmatprep.subr.bf16.mxu0 %v12339_v1  ;;  %v12407_v35 = vsub.f32 %v12254_v33, %v14852_v5  ;;  %v2391_v34 = vand.u32 4294901760, %v2390_v21  ;;  %v9134_v56 = vpack.c.bf16 %v12165_v60, %v12160_v0  ;;  %v14854_v33 = vand.u32 4294901760, %v12344_v40 }
 0x1a1   : > { %14850 = vst [vmem:[#allocation85_spill] sm:$0xff] %v12397_v30  ;;  %9129 = vmatpush3.bf16.msra.mxu1 %v9126_v46  ;;  %v2404_v46 = vsub.f32 %v12349_v32, %v14855_v20  ;;  %v2352_v21 = vsub.f32 %v12354_v3, %v14617_v17  ;;  %v14856_v60 = vand.u32 4294901760, %v12271_v54  ;;  %v14857_v42 = vand.u32 4294901760, %v12273_v58 }
 0x1a2   : > { %9131 = vmatprep.subr.bf16.mxu1 %v9130_v59  ;;  %v2397_v48 = vsub.f32 %v12344_v40, %v14854_v33  ;;  %v9458_v20 = vpack.c.bf16 %v2391_v34, %v2384_v18  ;;  %v14858_v17 = vand.u32 4294901760, %v12375_v51  ;;  %v14859_v0 = vand.u32 4294901760, %v12385_v52 }
 0x1a3   : > { %9449 = vmatpush3.bf16.msra.mxu0 %v12339_v1  ;;  %v12434_v33 = vsub.f32 %v12271_v54, %v14856_v60  ;;  %v12441_v5 = vsub.f32 %v12273_v58, %v14857_v42  ;;  %v2405_v60 = vand.u32 4294901760, %v2404_v46  ;;  %v14860_v18 = vand.u32 4294901760, %v12390_v19 }
 0x1a4   : > { %9451 = vmatprep.subr.bf16.mxu0 %v12360_v38  ;;  %v2362_v1 = vsub.f32 %v12375_v51, %v14858_v17  ;;  %v2398_v54 = vand.u32 4294901760, %v2397_v48  ;;  %v2353_v45 = vand.u32 4294901760, %v2352_v21  ;;  %v14861_v58 = vand.u32 4294901760, %v12402_v49 }
 0x1a5   : > { %9133 = vmatpush3.bf16.msra.mxu1 %v9130_v59  ;;  %v2411_v59 = vsub.f32 %v12385_v52, %v14859_v0  ;;  %v2418_v34 = vsub.f32 %v12390_v19, %v14860_v18  ;;  %v14862_v17 = vand.u32 4294901760, %v12407_v35  ;;  %v14863_v46 = vand.u32 4294901760, %v12411_v27 }
 0x1a6   : > { %9135 = vmatprep.subr.bf16.mxu1 %v9134_v56  ;;  %v2425_v42 = vsub.f32 %v12402_v49, %v14861_v58  ;;  %v14864_v21 = vand.u32 4294901760, %v12289_v15  ;;  %v14865_v58 = vand.u32 4294901760, %v12291_v6  ;;  %v2363_v48 = vand.u32 4294901760, %v2362_v1 }
 0x1a7   : > { %9453 = vmatpush3.bf16.msra.mxu0 %v12360_v38  ;;  %v2432_v38 = vsub.f32 %v12407_v35, %v14862_v17  ;;  %v2372_v51 = vsub.f32 %v12411_v27, %v14863_v46  ;;  %v9462_v46 = vpack.c.bf16 %v2405_v60, %v2398_v54  ;;  %v2419_v27 = vand.u32 4294901760, %v2418_v34 }
 0x1a8   : > { %9455 = vmatprep.subr.bf16.mxu0 %v12397_v30  ;;  %v12468_v18 = vsub.f32 %v12289_v15, %v14864_v21  ;;  %v12473_v17 = vsub.f32 %v12291_v6, %v14865_v58  ;;  %v2426_v0 = vand.u32 4294901760, %v2425_v42  ;;  %v14866_v15 = vand.u32 4294901760, %v12434_v33 }
 0x1a9   : > { %9137 = vmatpush3.bf16.msra.mxu1 %v9134_v56  ;;  %v2412_v56 = vand.u32 4294901760, %v2411_v59  ;;  %v2373_v3 = vand.u32 4294901760, %v2372_v51  ;;  %v14867_v1 = vand.u32 4294901760, %v12441_v5  ;;  %v14871_v58 = vand.u32 4294901760, %v12326_v50 }
 0x1aa   : > { %9139 = vmatprep.subr.bf16.mxu1 %v11789_v16  ;;  %v2439_v6 = vsub.f32 %v12434_v33, %v14866_v15  ;;  %v2452_v54 = vand.u32 4294901760, %v12468_v18  ;;  %v2459_v60 = vand.u32 4294901760, %v12473_v17 }
 0x1ab   : > { %9457 = vmatpush3.bf16.msra.mxu0 %v12397_v30  ;;  %v2433_v30 = vand.u32 4294901760, %v2432_v38  ;;  %v2446_v21 = vsub.f32 %v12441_v5, %v14867_v1  ;;  %v14868_v38 = vand.u32 4294901760, %v12299_v26 }
 0x1ac   : > { %9459 = vmatprep.subr.bf16.mxu0 %v9458_v20  ;;  %7555 = vmatmul.mubr.f32.vlgmr.msra.gmra.mrb[0].mxu1 %v12049_v36 }
 0x1ad   : > { %9141 = vmatpush3.bf16.msra.mxu1 %v11789_v16  ;;  %v12489_v51 = vsub.f32 %v12299_v26, %v14868_v38  ;;  %7557 = vmatprep.mubr.f32.mxu1 %v12172_v29  ;;  %v9470_v34 = vpack.c.bf16 %v2433_v30, %v2426_v0  ;;  %v2447_v42 = vand.u32 4294901760, %v2446_v21  ;;  %v2453_v26 = vsub.f32 %v12468_v18, %v2452_v54 }
 0x1ae   : > { %7935 = vmatmul.mubr.f32.vlgmr.msra.gmra.mrb[0].mxu0 %v2353_v45  ;;  %v9466_v45 = vpack.c.bf16 %v2419_v27, %v2412_v56  ;;  %9143 = vmatprep.subr.bf16.mxu1 %v11820_v8  ;;  %v2440_v27 = vand.u32 4294901760, %v2439_v6  ;;  %v14872_v56 = vand.u32 4294901760, %v12004_v44 }
 0x1af   : > { %9461 = vmatpush3.bf16.msra.mxu0 %v9458_v20  ;;  %7937 = vmatprep.mubr.f32.mxu0 %v2363_v48  ;;  %v14869_v20 = vand.u32 4294901760, %v12301_v39  ;;  %v2466_v48 = vand.u32 4294901760, %v12489_v51  ;;  %v2454_v6 = vand.u32 4294901760, %v2453_v26 }
 0x1b0   : > { %9463 = vmatprep.subr.bf16.mxu0 %v9462_v46  ;;  %7558 = vmatmul.mubr.f32.gmra.mrb[2].mxu1 %v12185_v22  ;;  %v9474_v15 = vpack.c.bf16 %v2447_v42, %v2440_v27 }
 0x1b1   : > { %v12494_v59 = vsub.f32 %v12301_v39, %v14869_v20  ;;  %9145 = vmatpush3.bf16.msra.mxu1 %v11820_v8  ;;  %v2460_v39 = vsub.f32 %v12473_v17, %v2459_v60  ;;  %7592 = vmatprep.mubr.f32.mxu1 %v14872_v56  ;;  %v14874_v56 = vand.u32 4294901760, %v12009_v47  ;;  %v14877_v47 = vand.u32 4294901760, %v12049_v36 }
 0x1b2   : > { %7938 = vmatmul.mubr.f32.gmra.mrb[2].mxu0 %v2373_v3  ;;  %v14870_v3 = vand.u32 4294901760, %v12322_v11  ;;  %9147 = vmatprep.subr.bf16.mxu1 %v11856_v14  ;;  %v14881_v36 = vand.u32 4294901760, %v12067_v37 }
 0x1b3   : > { %9465 = vmatpush3.bf16.msra.mxu0 %v9462_v46  ;;  %7972 = vmatprep.mubr.f32.mxu0 %v12204_v23  ;;  %v2473_v30 = vand.u32 4294901760, %v12494_v59  ;;  %v12516_v46 = vsub.f32 %v12326_v50, %v14871_v58  ;;  %v2461_v1 = vand.u32 4294901760, %v2460_v39  ;;  %v14873_v58 = vand.u32 4294901760, %v12001_v31 }
 0x1b4   : > { %9467 = vmatprep.subr.bf16.mxu0 %v9466_v45  ;;  %v12511_v0 = vsub.f32 %v12322_v11, %v14870_v3  ;;  %v2467_v11 = vsub.f32 %v12489_v51, %v2466_v48 }
 0x1b5   : > { %9149 = vmatpush3.bf16.msra.mxu1 %v11856_v14  ;;  %v2474_v50 = vsub.f32 %v12494_v59, %v2473_v30  ;;  %v2487_v44 = vand.u32 4294901760, %v12516_v46 }
 0x1b6   : > { %9151 = vmatprep.subr.bf16.mxu1 %v11896_v25  ;;  %v2480_v21 = vand.u32 4294901760, %v12511_v0  ;;  %v2468_v38 = vand.u32 4294901760, %v2467_v11  ;;  %v14875_v11 = vand.u32 4294901760, %v12040_v12  ;;  %v14879_v12 = vand.u32 4294901760, %v12061_v61 }
 0x1b7   : > { %9469 = vmatpush3.bf16.msra.mxu0 %v9466_v45  ;;  %v9478_v45 = vpack.c.bf16 %v2461_v1, %v2454_v6  ;;  %v2475_v20 = vand.u32 4294901760, %v2474_v50  ;;  %v2488_v42 = vsub.f32 %v12516_v46, %v2487_v44  ;;  %v9490_v6 = vpack.c.bf16 %v12304_v13, %v12295_v43 }
 0x1b8   : > { %9471 = vmatprep.subr.bf16.mxu0 %v9470_v34  ;;  %v2481_v27 = vsub.f32 %v12511_v0, %v2480_v21  ;;  %v9494_v1 = vpack.c.bf16 %v12349_v32, %v12344_v40  ;;  %v14876_v50 = vand.u32 4294901760, %v12045_v4  ;;  %v14883_v61 = vand.u32 4294901760, %v12185_v22 }
 0x1b9   : > { %9153 = vmatpush3.bf16.msra.mxu1 %v11896_v25  ;;  %v2489_v39 = vand.u32 4294901760, %v2488_v42 }
 0x1ba   : > { %9155 = vmatprep.subr.bf16.mxu1 %v11907_v2  ;;  %v2482_v26 = vand.u32 4294901760, %v2481_v27  ;;  %v9174_v31 = vpack.c.bf16 %v14876_v50, %v14875_v11  ;;  %v14882_v27 = vand.u32 4294901760, %v12084_v53  ;;  %v9506_v53 = vpack.c.bf16 %v12441_v5, %v12434_v33 }
 0x1bb   : > { %9473 = vmatpush3.bf16.msra.mxu0 %v9470_v34  ;;  %v9482_v34 = vpack.c.bf16 %v2475_v20, %v2468_v38  ;;  %v14878_v38 = vand.u32 4294901760, %v12056_v55  ;;  %v14880_v20 = vand.u32 4294901760, %v12172_v29  ;;  %v9502_v55 = vpack.c.bf16 %v12407_v35, %v12402_v49 }
 0x1bc   : > { %9475 = vmatprep.subr.bf16.mxu0 %v9474_v15  ;;  %v9486_v3 = vpack.c.bf16 %v2489_v39, %v2482_v26  ;;  %v9182_v42 = vpack.c.bf16 %v14882_v27, %v14881_v36  ;;  %v14884_v29 = vand.u32 4294901760, %v12099_v62  ;;  %v14887_v39 = vld [vmem:[#allocation68_spill] sm:$0xff]  ;;  %v14891_v62 = vld [vmem:[#allocation70_spill] sm:$0xff] }
 0x1bd   : > { %9157 = vmatpush3.bf16.msra.mxu1 %v11907_v2  ;;  %v9178_v4 = vpack.c.bf16 %v14879_v12, %v14878_v38  ;;  %v14888_v22 = vand.u32 4294901760, %v14887_v39  ;;  %v14897_v38 = vld [vmem:[#allocation74_spill] sm:$0xff]  ;;  %v14899_v36 = vld [vmem:[#allocation76_spill] sm:$0xff]  ;;  %v14915_v39 = vand.u32 4294901760, %v12304_v13 }
 0x1be   : > { %9159 = vmatprep.subr.bf16.mxu1 %v11938_v9  ;;  %v14898_v12 = vand.u32 4294901760, %v14897_v38  ;;  %v14900_v27 = vld [vmem:[#allocation66_spill] sm:$0xff]  ;;  %v14932_v38 = vand.u32 4294901760, %v12441_v5 }
 0x1bf   : > { %9477 = vmatpush3.bf16.msra.mxu0 %v9474_v15  ;;  %v9170_v15 = vpack.c.bf16 %v14874_v56, %v14873_v58 }
 0x1c0   : > { %9479 = vmatprep.subr.bf16.mxu0 %v9478_v45 }
 0x1c1   : > { %9161 = vmatpush3.bf16.msra.mxu1 %v11938_v9 }
 0x1c2   : > { %9163 = vmatprep.subr.bf16.mxu1 %v11968_v63 }
 0x1c3   : > { %9481 = vmatpush3.bf16.msra.mxu0 %v9478_v45  ;;  %v9498_v45 = vpack.c.bf16 %v12390_v19, %v12385_v52 }
 0x1c4   : > { %9483 = vmatprep.subr.bf16.mxu0 %v9482_v34 }
 0x1c5   : > { %9165 = vmatpush3.bf16.msra.mxu1 %v11968_v63 }
 0x1c6   : > { %9167 = vmatprep.subr.bf16.mxu1 %v11996_v24 }
 0x1c7   : > { %9485 = vmatpush3.bf16.msra.mxu0 %v9482_v34  ;;  %v14885_v34 = vld [vmem:[#allocation67_spill] sm:$0xff] }
 0x1c8   : > { %9487 = vmatprep.subr.bf16.mxu0 %v9486_v3  ;;  %v14886_v37 = vand.u32 4294901760, %v14885_v34  ;;  %v14905_v34 = vld [vmem:[#allocation86_spill] sm:$0xff] }
 0x1c9   : > { %9169 = vmatpush3.bf16.msra.mxu1 %v11996_v24 }
 0x1ca   : > { %9171 = vmatprep.subr.bf16.mxu1 %v9170_v15  ;;  %v9186_v26 = vpack.c.bf16 %v14886_v37, %v14884_v29  ;;  %v14904_v29 = vld [vmem:[#allocation72_spill] sm:$0xff]  ;;  %v14907_v37 = vld [vmem:[#allocation78_spill] sm:$0xff] }
 0x1cb   : > { %9489 = vmatpush3.bf16.msra.mxu0 %v9486_v3  ;;  %v14889_v3 = vld [vmem:[#allocation69_spill] sm:$0xff] }
 0x1cc   : > { %9491 = vmatprep.subr.bf16.mxu0 %v9490_v6  ;;  %7593 = vmatmul.mubr.f32.vlgmr.msra.gmra.mrb[0].mxu1 %v14877_v47  ;;  %v14890_v58 = vand.u32 4294901760, %v14889_v3  ;;  %v14895_v47 = vld [vmem:[#allocation73_spill] sm:$0xff]  ;;  %v14918_v3 = vand.u32 4294901760, %v12349_v32  ;;  %v14924_v32 = vand.u32 4294901760, %v12390_v19 }
 0x1cd   : > { %9173 = vmatpush3.bf16.msra.mxu1 %v9170_v15  ;;  %7595 = vmatprep.mubr.f32.mxu1 %v14880_v20  ;;  %v9510_v15 = vpack.c.bf16 %v12473_v17, %v12468_v18  ;;  %v9518_v20 = vpack.c.bf16 %v12516_v46, %v12511_v0  ;;  %v9578_v18 = vpack.c.bf16 %v2473_v30, %v2466_v48  ;;  %v14939_v17 = vld [vmem:[#allocation42_spill] sm:$0xff] }
 0x1ce   : > { %7973 = vmatmul.mubr.f32.vlgmr.msra.gmra.mrb[0].mxu0 %v12318_v7  ;;  %9175 = vmatprep.subr.bf16.mxu1 %v9174_v31  ;;  %v9190_v56 = vpack.c.bf16 %v14890_v58, %v14888_v22  ;;  %v14944_v30 = vld [vmem:[#allocation50_spill] sm:$0xff] }
 0x1cf   : > { %9493 = vmatpush3.bf16.msra.mxu0 %v9490_v6  ;;  %7975 = vmatprep.mubr.f32.mxu0 %v12330_v10  ;;  %v14892_v6 = vand.u32 4294901760, %v14891_v62 }
 0x1d0   : > { %9495 = vmatprep.subr.bf16.mxu0 %v9494_v1  ;;  %7596 = vmatmul.mubr.f32.gmra.mrb[2].mxu1 %v14883_v61  ;;  %v14903_v61 = vld [vmem:[#allocation77_spill] sm:$0xff] }
 0x1d1   : > { %9177 = vmatpush3.bf16.msra.mxu1 %v9174_v31  ;;  %7630 = vmatprep.mubr.f32.mxu1 %v11989_v28  ;;  %v9514_v31 = vpack.c.bf16 %v12494_v59, %v12489_v51 }
 0x1d2   : > { %7976 = vmatmul.mubr.f32.gmra.mrb[2].mxu0 %v12367_v41  ;;  %9179 = vmatprep.subr.bf16.mxu1 %v9178_v4 }
 0x1d3   : > { %9497 = vmatpush3.bf16.msra.mxu0 %v9494_v1  ;;  %8010 = vmatprep.mubr.f32.mxu0 %v12215_v57  ;;  %v14893_v1 = vld [vmem:[#allocation71_spill] sm:$0xff] }
 0x1d4   : > { %9499 = vmatprep.subr.bf16.mxu0 %v9498_v45  ;;  %v14894_v11 = vand.u32 4294901760, %v14893_v1  ;;  %v14926_v1 = vand.u32 4294901760, %v14905_v34 }
 0x1d5   : > { %9181 = vmatpush3.bf16.msra.mxu1 %v9178_v4 }
 0x1d6   : > { %9183 = vmatprep.subr.bf16.mxu1 %v9182_v42  ;;  %v9194_v50 = vpack.c.bf16 %v14894_v11, %v14892_v6  ;;  %v14925_v6 = vld [vmem:[#allocation35_spill] sm:$0xff] }
 0x1d7   : > { %9501 = vmatpush3.bf16.msra.mxu0 %v9498_v45  ;;  %v14896_v45 = vand.u32 4294901760, %v14895_v47  ;;  %v14930_v47 = vld [vmem:[#allocation37_spill] sm:$0xff] }
 0x1d8   : > { %9503 = vmatprep.subr.bf16.mxu0 %v9502_v55 }
 0x1d9   : > { %9185 = vmatpush3.bf16.msra.mxu1 %v9182_v42  ;;  %v9198_v4 = vpack.c.bf16 %v14898_v12, %v14896_v45  ;;  %v14901_v42 = vld [vmem:[#allocation82_spill] sm:$0xff]  ;;  %v14931_v45 = vand.u32 4294901760, %v12434_v33  ;;  %v14935_v33 = vld [vmem:[#allocation43_spill] sm:$0xff] }
 0x1da   : > { %9187 = vmatprep.subr.bf16.mxu1 %v9186_v26  ;;  %v14921_v13 = vand.u32 4294901760, %v14901_v42 }
 0x1db   : > { %9505 = vmatpush3.bf16.msra.mxu0 %v9502_v55  ;;  %v14902_v55 = vld [vmem:[#allocation84_spill] sm:$0xff]  ;;  %v9570_v12 = vpack.c.bf16 %v14932_v38, %v14931_v45 }
 0x1dc   : > { %9507 = vmatprep.subr.bf16.mxu0 %v9506_v53 }
 0x1dd   : > { %9189 = vmatpush3.bf16.msra.mxu1 %v9186_v26  ;;  %v14908_v26 = vld [vmem:[#allocation75_spill] sm:$0xff] }
 0x1de   : > { %9191 = vmatprep.subr.bf16.mxu1 %v9190_v56 }
 0x1df   : > { %9509 = vmatpush3.bf16.msra.mxu0 %v9506_v53  ;;  %v14910_v53 = vld [vmem:[#allocation80_spill] sm:$0xff] }
 0x1e0   : > { %9511 = vmatprep.subr.bf16.mxu0 %v9510_v15 }
 0x1e1   : > { %9193 = vmatpush3.bf16.msra.mxu1 %v9190_v56  ;;  %v14919_v56 = vld [vmem:[#allocation40_spill] sm:$0xff] }
 0x1e2   : > { %9195 = vmatprep.subr.bf16.mxu1 %v9194_v50 }
 0x1e3   : > { %9513 = vmatpush3.bf16.msra.mxu0 %v9510_v15  ;;  %v14920_v15 = vand.u32 4294901760, %v14919_v56 }
 0x1e4   : > { %9515 = vmatprep.subr.bf16.mxu0 %v9514_v31 }
 0x1e5   : > { %9197 = vmatpush3.bf16.msra.mxu1 %v9194_v50  ;;  %v14927_v50 = vand.u32 4294901760, %v12402_v49  ;;  %v14933_v49 = vld [vmem:[#allocation39_spill] sm:$0xff] }
 0x1e6   : > { %9199 = vmatprep.subr.bf16.mxu1 %v9198_v4 }
 0x1e7   : > { %9517 = vmatpush3.bf16.msra.mxu0 %v9514_v31  ;;  %v14929_v31 = vld [vmem:[#allocation36_spill] sm:$0xff] }
 0x1e8   : > { %9519 = vmatprep.subr.bf16.mxu0 %v9518_v20 }
 0x1e9   : > { %9201 = vmatpush3.bf16.msra.mxu1 %v9198_v4  ;;  %v14934_v4 = vld [vmem:[#allocation41_spill] sm:$0xff] }
 0x1ea   : > { %9203 = vmatprep.subr.bf16.mxu1 %v11789_v16 }
 0x1eb   : > { %9521 = vmatpush3.bf16.msra.mxu0 %v9518_v20  ;;  %v14936_v20 = vand.u32 4294901760, %v14935_v33 }
 0x1ec   : > { %9523 = vmatprep.subr.bf16.mxu0 %v14899_v36  ;;  %7631 = vmatmul.mubr.f32.vlgmr.msra.gmra.mrb[0].mxu1 %v14900_v27 }
 0x1ed   : > { %9205 = vmatpush3.bf16.msra.mxu1 %v11789_v16  ;;  %7633 = vmatprep.mubr.f32.mxu1 %v14904_v29  ;;  %v14906_v16 = vand.u32 4294901760, %v12215_v57  ;;  %v10726_v57 = vld [vmem:[%s559_s27] sm:%s10725_s22]  ;;  %v1592_v5 = vsub.f32 %v14935_v33, %v14936_v20  ;;  %s15030_s27 = sld [smem:[#allocation97_spill]]  ;;  %s10925_s22 = sshll.u32 %s11093_s9, 4  ;;  %s10926_s22 = int_to_ptr.vmem [resolvable:$false] %s10925_s22 }
 0x1ee   : > { %8011 = vmatmul.mubr.f32.vlgmr.msra.gmra.mrb[0].mxu0 %v14901_v42  ;;  %9207 = vmatprep.subr.bf16.mxu1 %v11820_v8  ;;  %655 = vst [vmem:[#allocation2 + $0x28] sm:$0xff] %v10726_v57  ;;  %v14945_v57 = vand.u32 4294901760, %v14944_v30  ;;  %s10927_s20 = scalar_lea.vmem %s10926_s22, 1024 }
 0x1ef   : > { %9525 = vmatpush3.bf16.msra.mxu0 %v14899_v36  ;;  %8013 = vmatprep.mubr.f32.mxu0 %v14902_v55 }
 0x1f0   : > { %9527 = vmatprep.subr.bf16.mxu0 %v14903_v61  ;;  %7634 = vmatmul.mubr.f32.gmra.mrb[2].mxu1 %v14908_v26 }
 0x1f1   : > { %9209 = vmatpush3.bf16.msra.mxu1 %v11820_v8  ;;  %7668 = vmatprep.mubr.f32.mxu1 %v11989_v28  ;;  %v14909_v8 = vld [vmem:[#allocation79_spill] sm:$0xff]  ;;  %v14914_v28 = vand.u32 4294901760, %v12295_v43  ;;  %v1551_v43 = vsub.f32 %v14919_v56, %v14920_v15 }
 0x1f2   : > { %8014 = vmatmul.mubr.f32.gmra.mrb[2].mxu0 %v14905_v34  ;;  %9211 = vmatprep.subr.bf16.mxu1 %v11856_v14  ;;  %v14940_v34 = vld [vmem:[#allocation47_spill] sm:$0xff] }
 0x1f3   : > { %9529 = vmatpush3.bf16.msra.mxu0 %v14903_v61  ;;  %8048 = vmatprep.mubr.f32.mxu0 %v14906_v16  ;;  %v9554_v22 = vpack.c.bf16 %v14915_v39, %v14914_v28  ;;  %v1552_v11 = vand.u32 4294901760, %v1551_v43  ;;  %v14941_v16 = vand.u32 4294901760, %v14940_v34  ;;  %v1561_v28 = vsub.f32 %v14944_v30, %v14945_v57  ;;  %v14946_v39 = vld [vmem:[#allocation46_spill] sm:$0xff] }
 0x1f4   : > { %9531 = vmatprep.subr.bf16.mxu0 %v14907_v37  ;;  %v14951_v43 = vld [vmem:[#allocation54_spill] sm:$0xff] }
 0x1f5   : > { %9213 = vmatpush3.bf16.msra.mxu1 %v11856_v14  ;;  %v14911_v14 = vld [vmem:[#allocation81_spill] sm:$0xff]  ;;  %v1606_v51 = vsub.f32 %v14940_v34, %v14941_v16  ;;  %v1562_v15 = vand.u32 4294901760, %v1561_v28 }
 0x1f6   : > { %9215 = vmatprep.subr.bf16.mxu1 %v11896_v25 }
 0x1f7   : > { %9533 = vmatpush3.bf16.msra.mxu0 %v14907_v37  ;;  %v1607_v46 = vand.u32 4294901760, %v1606_v51 }
 0x1f8   : > { %9535 = vmatprep.subr.bf16.mxu0 %v14909_v8 }
 0x1f9   : > { %9217 = vmatpush3.bf16.msra.mxu1 %v11896_v25  ;;  %v14912_v25 = vld [vmem:[#allocation83_spill] sm:$0xff] }
 0x1fa   : > { %9219 = vmatprep.subr.bf16.mxu1 %v11907_v2 }
 0x1fb   : > { %9537 = vmatpush3.bf16.msra.mxu0 %v14909_v8 }
 0x1fc   : > { %9539 = vmatprep.subr.bf16.mxu0 %v14910_v53 }
 0x1fd   : > { %9221 = vmatpush3.bf16.msra.mxu1 %v11907_v2  ;;  %v14913_v2 = vld [vmem:[#allocation85_spill] sm:$0xff] }
 0x1fe   : > { %9223 = vmatprep.subr.bf16.mxu1 %v11938_v9 }
 0x1ff   : > { %9541 = vmatpush3.bf16.msra.mxu0 %v14910_v53 }
 0x200   : > { %9543 = vmatprep.subr.bf16.mxu0 %v14911_v14 }
 0x201   : > { %9225 = vmatpush3.bf16.msra.mxu1 %v11938_v9  ;;  %v14916_v9 = vld [vmem:[#allocation34_spill] sm:$0xff] }
 0x202   : > { %9227 = vmatprep.subr.bf16.mxu1 %v11968_v63 }
 0x203   : > { %9545 = vmatpush3.bf16.msra.mxu0 %v14911_v14 }
 0x204   : > { %9547 = vmatprep.subr.bf16.mxu0 %v14912_v25 }
 0x205   : > { %9229 = vmatpush3.bf16.msra.mxu1 %v11968_v63  ;;  %v14917_v63 = vand.u32 4294901760, %v12344_v40  ;;  %v14923_v40 = vand.u32 4294901760, %v12385_v52  ;;  %v14928_v52 = vand.u32 4294901760, %v12407_v35  ;;  %v9574_v35 = vpack.c.bf16 %v2459_v60, %v2452_v54 }
 0x206   : > { %9231 = vmatprep.subr.bf16.mxu1 %v11996_v24  ;;  %v1593_v54 = vand.u32 4294901760, %v1592_v5  ;;  %v14961_v5 = vld [vmem:[#allocation59_spill] sm:$0xff] }
 0x207   : > { %9549 = vmatpush3.bf16.msra.mxu0 %v14912_v25  ;;  %v9558_v58 = vpack.c.bf16 %v14918_v3, %v14917_v63  ;;  %v9562_v62 = vpack.c.bf16 %v14924_v32, %v14923_v40  ;;  %v9566_v19 = vpack.c.bf16 %v14928_v52, %v14927_v50  ;;  %v14949_v63 = vld [vmem:[#allocation53_spill] sm:$0xff]  ;;  %v14953_v40 = vld [vmem:[#allocation56_spill] sm:$0xff] }
 0x208   : > { %9551 = vmatprep.subr.bf16.mxu0 %v14913_v2  ;;  %v14950_v3 = vand.u32 4294901760, %v14949_v63  ;;  %v14954_v32 = vand.u32 4294901760, %v14953_v40 }
 0x209   : > { %9233 = vmatpush3.bf16.msra.mxu1 %v11996_v24  ;;  %v14922_v24 = vand.u32 4294901760, %v14902_v55 }
 0x20a   : > { %9235 = vmatprep.subr.bf16.mxu1 %v14916_v9 }
 0x20b   : > { %9553 = vmatpush3.bf16.msra.mxu0 %v14913_v2 }
 0x20c   : > { %9555 = vmatprep.subr.bf16.mxu0 %v9554_v22  ;;  %7669 = vmatmul.mubr.f32.vlgmr.msra.gmra.mrb[0].mxu1 %v14900_v27  ;;  %v14937_v27 = vld [vmem:[#allocation44_spill] sm:$0xff] }
 0x20d   : > { %9237 = vmatpush3.bf16.msra.mxu1 %v14916_v9  ;;  %7671 = vmatprep.mubr.f32.mxu1 %v14904_v29  ;;  %v14938_v42 = vand.u32 4294901760, %v14937_v27  ;;  %v9582_v29 = vpack.c.bf16 %v2487_v44, %v2480_v21  ;;  %v14947_v44 = vld [vmem:[#allocation52_spill] sm:$0xff] }
 0x20e   : > { %8049 = vmatmul.mubr.f32.vlgmr.msra.gmra.mrb[0].mxu0 %v14921_v13  ;;  %9239 = vmatprep.subr.bf16.mxu1 %v14925_v6  ;;  %v14952_v13 = vand.u32 4294901760, %v14951_v43 }
 0x20f   : > { %9557 = vmatpush3.bf16.msra.mxu0 %v9554_v22  ;;  %8051 = vmatprep.mubr.f32.mxu0 %v14922_v24  ;;  %v1599_v55 = vsub.f32 %v14937_v27, %v14938_v42  ;;  %v14948_v22 = vand.u32 4294901760, %v14947_v44  ;;  %v14962_v42 = vand.u32 4294901760, %v14961_v5 }
 0x210   : > { %9559 = vmatprep.subr.bf16.mxu0 %v9558_v58  ;;  %7672 = vmatmul.mubr.f32.gmra.mrb[2].mxu1 %v14908_v26  ;;  %v14942_v26 = vld [vmem:[#allocation49_spill] sm:$0xff]  ;;  %v1571_v24 = vsub.f32 %v14951_v43, %v14952_v13 }
 0x211   : > { %9241 = vmatpush3.bf16.msra.mxu1 %v14925_v6  ;;  %7706 = vmatprep.mubr.f32.mxu1 %v1552_v11  ;;  %v1600_v60 = vand.u32 4294901760, %v1599_v55  ;;  %v14943_v59 = vand.u32 4294901760, %v14942_v26  ;;  %v1620_v9 = vsub.f32 %v14947_v44, %v14948_v22  ;;  %v14955_v6 = vld [vmem:[#allocation57_spill] sm:$0xff]  ;;  %v1655_v55 = vsub.f32 %v14961_v5, %v14962_v42  ;;  %v14970_v22 = vld [vmem:[#allocation63_spill] sm:$0xff] }
 0x212   : > { %8052 = vmatmul.mubr.f32.gmra.mrb[2].mxu0 %v14926_v1  ;;  %9243 = vmatprep.subr.bf16.mxu1 %v14929_v31  ;;  %v14956_v1 = vand.u32 4294901760, %v14955_v6  ;;  %v12799_v42 = vld [vmem:[#allocation9 + $0x198] sm:$0xff] }
 0x213   : > { %9561 = vmatpush3.bf16.msra.mxu0 %v9558_v58  ;;  %8086 = vmatprep.mubr.f32.mxu0 %v12204_v23  ;;  %v1613_v48 = vsub.f32 %v14942_v26, %v14943_v59  ;;  %v9266_v0 = vpack.c.bf16 %v1600_v60, %v1593_v54  ;;  %v1627_v58 = vsub.f32 %v14949_v63, %v14950_v3  ;;  %v1621_v52 = vand.u32 4294901760, %v1620_v9 }
 0x214   : > { %9563 = vmatprep.subr.bf16.mxu0 %v9562_v62  ;;  %v1641_v11 = vsub.f32 %v14955_v6, %v14956_v1  ;;  %v1656_v57 = vand.u32 4294901760, %v1655_v55  ;;  %v14971_v9 = vand.u32 4294901760, %v14970_v22  ;;  %v9298_v55 = vpack.c.bf16 %v14937_v27, %v14935_v33 }
 0x215   : > { %9245 = vmatpush3.bf16.msra.mxu1 %v14929_v31  ;;  %v1614_v21 = vand.u32 4294901760, %v1613_v48  ;;  %v1572_v31 = vand.u32 4294901760, %v1571_v24 }
 0x216   : > { %9247 = vmatprep.subr.bf16.mxu1 %v14930_v47  ;;  %v1683_v3 = vsub.f32 %v14970_v22, %v14971_v9  ;;  %v12868_v9 = vld [vmem:[#allocation9 + $0x1d8] sm:$0xff] }
 0x217   : > { %9565 = vmatpush3.bf16.msra.mxu0 %v9562_v62  ;;  %v1634_v62 = vsub.f32 %v14953_v40, %v14954_v32  ;;  %v9270_v50 = vpack.c.bf16 %v1614_v21, %v1607_v46  ;;  %v14968_v21 = vld [vmem:[#allocation62_spill] sm:$0xff] }
 0x218   : > { %9567 = vmatprep.subr.bf16.mxu0 %v9566_v19  ;;  %v1684_v13 = vand.u32 4294901760, %v1683_v3  ;;  %v14978_v3 = vld [vmem:[#allocation51_spill] sm:$0xff] }
 0x219   : > { %9249 = vmatpush3.bf16.msra.mxu1 %v14930_v47  ;;  %v14957_v47 = vld [vmem:[#allocation55_spill] sm:$0xff] }
 0x21a   : > { %9251 = vmatprep.subr.bf16.mxu1 %v14933_v49  ;;  %v14958_v45 = vand.u32 4294901760, %v14957_v47 }
 0x21b   : > { %9569 = vmatpush3.bf16.msra.mxu0 %v9566_v19  ;;  %v1628_v19 = vand.u32 4294901760, %v1627_v58 }
 0x21c   : > { %9571 = vmatprep.subr.bf16.mxu0 %v9570_v12  ;;  %v1581_v38 = vsub.f32 %v14957_v47, %v14958_v45  ;;  %v12786_v45 = vld [vmem:[#allocation9 + $0x180] sm:$0xff] }
 0x21d   : > { %9253 = vmatpush3.bf16.msra.mxu1 %v14933_v49  ;;  %v1642_v49 = vand.u32 4294901760, %v1641_v11 }
 0x21e   : > { %9255 = vmatprep.subr.bf16.mxu1 %v14934_v4 }
 0x21f   : > { %9573 = vmatpush3.bf16.msra.mxu0 %v9570_v12  ;;  %v1635_v12 = vand.u32 4294901760, %v1634_v62  ;;  %v14974_v62 = vld [vmem:[#allocation65_spill] sm:$0xff] }
 0x220   : > { %9575 = vmatprep.subr.bf16.mxu0 %v9574_v35  ;;  %v14975_v1 = vand.u32 4294901760, %v14974_v62 }
 0x221   : > { %9257 = vmatpush3.bf16.msra.mxu1 %v14934_v4  ;;  %v9278_v59 = vpack.c.bf16 %v1642_v49, %v1635_v12  ;;  %v3054_v49 = vand.u32 4294901760, %v12786_v45 }
 0x222   : > { %9259 = vmatprep.subr.bf16.mxu1 %v14939_v17  ;;  %v1697_v11 = vsub.f32 %v14974_v62, %v14975_v1 }
 0x223   : > { %9577 = vmatpush3.bf16.msra.mxu0 %v9574_v35  ;;  %v14959_v35 = vld [vmem:[#allocation58_spill] sm:$0xff] }
 0x224   : > { %9579 = vmatprep.subr.bf16.mxu0 %v9578_v18  ;;  %v14960_v4 = vand.u32 4294901760, %v14959_v35 }
 0x225   : > { %9261 = vmatpush3.bf16.msra.mxu1 %v14939_v17  ;;  %v1582_v17 = vand.u32 4294901760, %v1581_v38  ;;  %v12788_v38 = vld [vmem:[#allocation9 + $0x188] sm:$0xff] }
 0x226   : > { %9263 = vmatprep.subr.bf16.mxu1 %v14946_v39  ;;  %v1648_v20 = vsub.f32 %v14959_v35, %v14960_v4  ;;  %v3057_v4 = vand.u32 4294901760, %v12788_v38 }
 0x227   : > { %9581 = vmatpush3.bf16.msra.mxu0 %v9578_v18  ;;  %v9274_v18 = vpack.c.bf16 %v1628_v19, %v1621_v52 }
 0x228   : > { %9583 = vmatprep.subr.bf16.mxu0 %v9582_v29  ;;  %v1649_v48 = vand.u32 4294901760, %v1648_v20  ;;  %v12797_v20 = vld [vmem:[#allocation9 + $0x190] sm:$0xff] }
 0x229   : > { %9265 = vmatpush3.bf16.msra.mxu1 %v14946_v39 }
 0x22a   : > { %9267 = vmatprep.subr.bf16.mxu1 %v9266_v0  ;;  %v9282_v46 = vpack.c.bf16 %v1656_v57, %v1649_v48  ;;  %v12831_v48 = vld [vmem:[#allocation9 + $0x1b8] sm:$0xff] }
 0x22b   : > { %9585 = vmatpush3.bf16.msra.mxu0 %v9582_v29  ;;  %v14965_v29 = vld [vmem:[#allocation61_spill] sm:$0xff] }
 0x22c   : > { %9587 = vmatprep.subr.bf16.mxu0 %v14899_v36  ;;  %7707 = vmatmul.mubr.f32.vlgmr.msra.gmra.mrb[0].mxu1 %v1562_v15  ;;  %v14966_v16 = vand.u32 4294901760, %v14965_v29  ;;  %v14976_v57 = vld [vmem:[#allocation45_spill] sm:$0xff] }
 0x22d   : > { %9269 = vmatpush3.bf16.msra.mxu1 %v9266_v0  ;;  %7709 = vmatprep.mubr.f32.mxu1 %v1572_v31  ;;  %v14967_v0 = vld [vmem:[#allocation38_spill] sm:$0xff]  ;;  %v1698_v31 = vand.u32 4294901760, %v1697_v11  ;;  %v3034_v11 = vld [vmem:[#allocation2 + $0x19] sm:$0xff] }
 0x22e   : > { %8087 = vmatmul.mubr.f32.vlgmr.msra.gmra.mrb[0].mxu0 %v12318_v7  ;;  %9271 = vmatprep.subr.bf16.mxu1 %v9270_v50  ;;  %v1669_v51 = vsub.f32 %v14965_v29, %v14966_v16  ;;  %v12812_v16 = vld [vmem:[#allocation9 + $0x1a8] sm:$0xff] }
 0x22f   : > { %9589 = vmatpush3.bf16.msra.mxu0 %v14899_v36  ;;  %8089 = vmatprep.mubr.f32.mxu0 %v12330_v10  ;;  %v14963_v36 = vld [vmem:[#allocation60_spill] sm:$0xff] }
 0x230   : > { %9591 = vmatprep.subr.bf16.mxu0 %v14903_v61  ;;  %v14964_v54 = vand.u32 4294901760, %v14963_v36  ;;  %7710 = vmatmul.mubr.f32.gmra.mrb[2].mxu1 %v1582_v17  ;;  %v1670_v39 = vand.u32 4294901760, %v1669_v51  ;;  %v3060_v17 = vand.u32 4294901760, %v12797_v20  ;;  %v3069_v51 = vand.u32 4294901760, %v12812_v16 }
 0x231   : > { %9273 = vmatpush3.bf16.msra.mxu1 %v9270_v50  ;;  %7744 = vmatprep.mubr.f32.mxu1 %v14967_v0  ;;  %v3032_v50 = vld [vmem:[#allocation2 + $0x9] sm:$0xff] }
 0x232   : > { %8090 = vmatmul.mubr.f32.gmra.mrb[2].mxu0 %v12367_v41  ;;  %v1662_v60 = vsub.f32 %v14963_v36, %v14964_v54  ;;  %9275 = vmatprep.subr.bf16.mxu1 %v9274_v18  ;;  %v12783_v52 = vand.u32 4294901760, %v3032_v50  ;;  %v3063_v54 = vand.u32 4294901760, %v12799_v42  ;;  %v12848_v0 = vld [vmem:[#allocation9 + $0x1c0] sm:$0xff] }
 0x233   : > { %9593 = vmatpush3.bf16.msra.mxu0 %v14903_v61  ;;  %8124 = vmatprep.mubr.f32.mxu0 %v12204_v23  ;;  %v14969_v61 = vand.u32 4294901760, %v14968_v21 }
 0x234   : > { %9595 = vmatprep.subr.bf16.mxu0 %v14907_v37  ;;  %v1663_v28 = vand.u32 4294901760, %v1662_v60  ;;  %v12792_v12 = vsub.f32 %v3032_v50, %v12783_v52  ;;  %v12810_v60 = vld [vmem:[#allocation9 + $0x1a0] sm:$0xff]  ;;  %v12823_v33 = vpack.c.bf16 %v3063_v54, %v3060_v17 }
 0x235   : > { %9277 = vmatpush3.bf16.msra.mxu1 %v9274_v18  ;;  %v1676_v23 = vsub.f32 %v14968_v21, %v14969_v61  ;;  %v12806_v18 = vpack.c.bf16 %v3057_v4, %v3054_v49  ;;  %v3066_v27 = vand.u32 4294901760, %v12810_v60  ;;  %v9310_v61 = vpack.c.bf16 %v14955_v6, %v14953_v40  ;;  %v12871_v40 = vld [vmem:[#allocation9 + $0x1e0] sm:$0xff]  ;;  %v12873_v6 = vld [vmem:[#allocation9 + $0x1e8] sm:$0xff] }
 0x236   : > { %9279 = vmatprep.subr.bf16.mxu1 %v9278_v59  ;;  %v9286_v58 = vpack.c.bf16 %v1670_v39, %v1663_v28  ;;  %v3075_v39 = vand.u32 4294901760, %v12831_v48  ;;  %v3090_v50 = vand.u32 4294901760, %v12871_v40 }
 0x237   : > { %9597 = vmatpush3.bf16.msra.mxu0 %v14907_v37  ;;  %v1677_v15 = vand.u32 4294901760, %v1676_v23  ;;  %v14972_v37 = vld [vmem:[#allocation64_spill] sm:$0xff] }
 0x238   : > { %9599 = vmatprep.subr.bf16.mxu0 %v14909_v8  ;;  %v14973_v24 = vand.u32 4294901760, %v14972_v37 }
 0x239   : > { %9281 = vmatpush3.bf16.msra.mxu1 %v9278_v59  ;;  %v12829_v59 = vld [vmem:[#allocation9 + $0x1b0] sm:$0xff] }
 0x23a   : > { %9283 = vmatprep.subr.bf16.mxu1 %v9282_v46  ;;  %v1690_v32 = vsub.f32 %v14972_v37, %v14973_v24  ;;  %v9314_v24 = vpack.c.bf16 %v14961_v5, %v14959_v35  ;;  %v12900_v5 = vld [vmem:[#allocation9 + $0x1f0] sm:$0xff] }
 0x23b   : > { %9601 = vmatpush3.bf16.msra.mxu0 %v14909_v8  ;;  %v9290_v8 = vpack.c.bf16 %v1684_v13, %v1677_v15  ;;  %v3033_v15 = vld [vmem:[#allocation2 + $0x11] sm:$0xff]  ;;  %v12881_v13 = vsub.f32 %v12788_v38, %v3057_v4  ;;  %v12905_v38 = vand.u32 4294901760, %v3034_v11 }
 0x23c   : > { %9603 = vmatprep.subr.bf16.mxu0 %v14910_v53  ;;  %v1691_v19 = vand.u32 4294901760, %v1690_v32 }
 0x23d   : > { %9285 = vmatpush3.bf16.msra.mxu1 %v9282_v46  ;;  %v14977_v46 = vld [vmem:[#allocation48_spill] sm:$0xff] }
 0x23e   : > { %9287 = vmatprep.subr.bf16.mxu1 %v9286_v58 }
 0x23f   : > { %9605 = vmatpush3.bf16.msra.mxu0 %v14910_v53  ;;  %v9294_v53 = vpack.c.bf16 %v1698_v31, %v1691_v19  ;;  %v12896_v19 = vand.u32 4294901760, %v3033_v15  ;;  %v12902_v31 = vld [vmem:[#allocation9 + $0x1f8] sm:$0xff] }
 0x240   : > { %9607 = vmatprep.subr.bf16.mxu0 %v14911_v14 }
 0x241   : > { %9289 = vmatpush3.bf16.msra.mxu1 %v9286_v58  ;;  %v12876_v58 = vsub.f32 %v12786_v45, %v3054_v49  ;;  %v14637_v45 = vand.u32 4294901760, %v12881_v13  ;;  %v9318_v49 = vpack.c.bf16 %v14965_v29, %v14963_v36  ;;  %v12933_v29 = vsub.f32 %v3033_v15, %v12896_v19 }
 0x242   : > { %9291 = vmatprep.subr.bf16.mxu1 %v9290_v8 }
 0x243   : > { %9609 = vmatpush3.bf16.msra.mxu0 %v14911_v14  ;;  %v3136_v14 = vand.u32 4294901760, %v12792_v12  ;;  %v3177_v35 = vand.u32 4294901760, %v12876_v58  ;;  %v14629_v15 = vand.u32 4294901760, %v12933_v29 }
 0x244   : > { %9611 = vmatprep.subr.bf16.mxu0 %v14912_v25 }
 0x245   : > { %9293 = vmatpush3.bf16.msra.mxu1 %v9290_v8  ;;  %v3093_v8 = vand.u32 4294901760, %v12873_v6 }
 0x246   : > { %9295 = vmatprep.subr.bf16.mxu1 %v9294_v53 }
 0x247   : > { %9613 = vmatpush3.bf16.msra.mxu0 %v14912_v25  ;;  %v3137_v25 = vsub.f32 %v12792_v12, %v3136_v14  ;;  %v12930_v36 = vpack.c.bf16 %v3093_v8, %v3090_v50 }
 0x248   : > { %9615 = vmatprep.subr.bf16.mxu0 %v14913_v2 }
 0x249   : > { %9297 = vmatpush3.bf16.msra.mxu1 %v9294_v53  ;;  %v3138_v28 = vand.u32 4294901760, %v3137_v25  ;;  %v3035_v53 = vld [vmem:[#allocation2 + $0x21] sm:$0xff]  ;;  %v12924_v25 = vsub.f32 %v12799_v42, %v3063_v54  ;;  %v3185_v42 = vsub.f32 %v12881_v13, %v14637_v45  ;;  %v12947_v54 = vsub.f32 %v3034_v11, %v12905_v38 }
 0x24a   : > { %9299 = vmatprep.subr.bf16.mxu1 %v9298_v55 }
 0x24b   : > { %9617 = vmatpush3.bf16.msra.mxu0 %v14913_v2  ;;  %v9302_v2 = vpack.c.bf16 %v14942_v26, %v14940_v34  ;;  %v12842_v34 = vpack.c.bf16 %v3069_v51, %v3066_v27  ;;  %v3072_v26 = vand.u32 4294901760, %v12829_v59 }
 0x24c   : > { %9619 = vmatprep.subr.bf16.mxu0 %v12806_v18  ;;  %7745 = vmatmul.mubr.f32.vlgmr.msra.gmra.mrb[0].mxu1 %v14976_v57  ;;  %v3099_v57 = vand.u32 4294901760, %v12902_v31 }
 0x24d   : > { %9301 = vmatpush3.bf16.msra.mxu1 %v9298_v55  ;;  %7747 = vmatprep.mubr.f32.mxu1 %v14977_v46  ;;  %v12919_v55 = vsub.f32 %v12797_v20, %v3060_v17  ;;  %v3178_v20 = vsub.f32 %v12876_v58, %v3177_v35  ;;  %v12940_v17 = vand.u32 4294901760, %v3035_v53  ;;  %v14628_v46 = vand.u32 4294901760, %v12924_v25 }
 0x24e   : > { %8125 = vmatmul.mubr.f32.vlgmr.msra.gmra.mrb[0].mxu0 %v12318_v7  ;;  %9303 = vmatprep.subr.bf16.mxu1 %v9302_v2  ;;  %v9306_v7 = vpack.c.bf16 %v14949_v63, %v14947_v44  ;;  %v12862_v44 = vpack.c.bf16 %v3075_v39, %v3072_v26  ;;  %v3078_v63 = vand.u32 4294901760, %v12848_v0 }
 0x24f   : > { %9621 = vmatpush3.bf16.msra.mxu0 %v12806_v18  ;;  %8127 = vmatprep.mubr.f32.mxu0 %v12330_v10  ;;  %v12850_v10 = vld [vmem:[#allocation9 + $0x1c8] sm:$0xff] }
 0x250   : > { %9623 = vmatprep.subr.bf16.mxu0 %v12823_v33  ;;  %v3081_v23 = vand.u32 4294901760, %v12850_v10  ;;  %7748 = vmatmul.mubr.f32.gmra.mrb[2].mxu1 %v14978_v3  ;;  %v12962_v3 = vsub.f32 %v12812_v16, %v3069_v51  ;;  %v12982_v16 = vsub.f32 %v3035_v53, %v12940_v17  ;;  %v3186_v51 = vand.u32 4294901760, %v3185_v42 }
 0x251   : > { %9305 = vmatpush3.bf16.msra.mxu1 %v9302_v2  ;;  %7782 = vmatprep.mubr.f32.mxu1 %v14919_v56  ;;  %v3087_v56 = vand.u32 4294901760, %v12868_v9  ;;  %v3096_v2 = vand.u32 4294901760, %v12900_v5  ;;  %v3147_v53 = vsub.f32 %v12933_v29, %v14629_v15 }
 0x252   : > { %8128 = vmatmul.mubr.f32.gmra.mrb[2].mxu0 %v12367_v41  ;;  %9307 = vmatprep.subr.bf16.mxu1 %v9306_v7  ;;  %v12866_v41 = vld [vmem:[#allocation9 + $0x1d0] sm:$0xff]  ;;  %v12890_v32 = vpack.c.bf16 %v3081_v23, %v3078_v63  ;;  %v14630_v11 = vand.u32 4294901760, %v12962_v3 }
 0x253   : > { %9625 = vmatpush3.bf16.msra.mxu0 %v12823_v33  ;;  %8162 = vmatprep.mubr.f32.mxu0 %v3138_v28  ;;  %v3084_v1 = vand.u32 4294901760, %v12866_v41  ;;  %v9322_v28 = vpack.c.bf16 %v14970_v22, %v14968_v21  ;;  %v12969_v21 = vpack.c.bf16 %v3099_v57, %v3096_v2  ;;  %v12974_v22 = vsub.f32 %v12829_v59, %v3072_v26 }
 0x254   : > { %9627 = vmatprep.subr.bf16.mxu0 %v12842_v34  ;;  %v9326_v59 = vpack.c.bf16 %v14974_v62, %v14972_v37  ;;  %v3199_v26 = vsub.f32 %v12924_v25, %v14628_v46  ;;  %v13012_v46 = vsub.f32 %v12850_v10, %v3081_v23 }
 0x255   : > { %9309 = vmatpush3.bf16.msra.mxu1 %v9306_v7  ;;  %v12914_v4 = vpack.c.bf16 %v3087_v56, %v3084_v1  ;;  %v14636_v7 = vand.u32 4294901760, %v12919_v55  ;;  %v14632_v37 = vand.u32 4294901760, %v12974_v22 }
 0x256   : > { %9311 = vmatprep.subr.bf16.mxu1 %v9310_v61 }
 0x257   : > { %9629 = vmatpush3.bf16.msra.mxu0 %v12842_v34  ;;  %v3220_v10 = vsub.f32 %v12974_v22, %v14632_v37 }
 0x258   : > { %9631 = vmatprep.subr.bf16.mxu0 %v12862_v44 }
 0x259   : > { %9313 = vmatpush3.bf16.msra.mxu1 %v9310_v61  ;;  %v12957_v61 = vsub.f32 %v12810_v60, %v3066_v27  ;;  %v12979_v60 = vsub.f32 %v12831_v48, %v3075_v39  ;;  %v3179_v27 = vand.u32 4294901760, %v3178_v20  ;;  %v3192_v48 = vsub.f32 %v12919_v55, %v14636_v7 }
 0x25a   : > { %9315 = vmatprep.subr.bf16.mxu1 %v9314_v24  ;;  %v14635_v20 = vand.u32 4294901760, %v12982_v16 }
 0x25b   : > { %9633 = vmatpush3.bf16.msra.mxu0 %v12862_v44  ;;  %v14633_v39 = vand.u32 4294901760, %v12957_v61  ;;  %v14631_v62 = vand.u32 4294901760, %v12979_v60  ;;  %v9650_v42 = vpack.c.bf16 %v3186_v51, %v3179_v27  ;;  %v3213_v27 = vsub.f32 %v12962_v3, %v14630_v11 }
 0x25c   : > { %9635 = vmatprep.subr.bf16.mxu0 %v12890_v32  ;;  %v3148_v51 = vand.u32 4294901760, %v3147_v53  ;;  %v3240_v11 = vand.u32 4294901760, %v13012_v46  ;;  %v13039_v53 = vsub.f32 %v12866_v41, %v3084_v1 }
 0x25d   : > { %9317 = vmatpush3.bf16.msra.mxu1 %v9314_v24  ;;  %v14634_v24 = vand.u32 4294901760, %v12947_v54  ;;  %v3227_v23 = vsub.f32 %v12979_v60, %v14631_v62  ;;  %v13044_v62 = vsub.f32 %v12868_v9, %v3087_v56 }
 0x25e   : > { %9319 = vmatprep.subr.bf16.mxu1 %v9318_v49  ;;  %v3241_v9 = vsub.f32 %v13012_v46, %v3240_v11  ;;  %v3247_v1 = vand.u32 4294901760, %v13039_v53 }
 0x25f   : > { %9637 = vmatpush3.bf16.msra.mxu0 %v12890_v32  ;;  %v3157_v15 = vsub.f32 %v12947_v54, %v14634_v24  ;;  %v3228_v7 = vand.u32 4294901760, %v3227_v23  ;;  %v3254_v56 = vand.u32 4294901760, %v13044_v62 }
 0x260   : > { %9639 = vmatprep.subr.bf16.mxu0 %v12914_v4 }
 0x261   : > { %9321 = vmatpush3.bf16.msra.mxu1 %v9318_v49  ;;  %v13005_v49 = vsub.f32 %v12848_v0, %v3078_v63  ;;  %v3193_v0 = vand.u32 4294901760, %v3192_v48  ;;  %v3200_v63 = vand.u32 4294901760, %v3199_v26  ;;  %v3167_v26 = vsub.f32 %v12982_v16, %v14635_v20 }
 0x262   : > { %9323 = vmatprep.subr.bf16.mxu1 %v9322_v28  ;;  %v3158_v37 = vand.u32 4294901760, %v3157_v15  ;;  %v3214_v20 = vand.u32 4294901760, %v3213_v27  ;;  %v13064_v15 = vsub.f32 %v12873_v6, %v3093_v8  ;;  %v13084_v8 = vsub.f32 %v12902_v31, %v3099_v57 }
 0x263   : > { %9641 = vmatpush3.bf16.msra.mxu0 %v12914_v4  ;;  %v3233_v48 = vand.u32 4294901760, %v13005_v49  ;;  %v3168_v45 = vand.u32 4294901760, %v3167_v26 }
 0x264   : > { %9643 = vmatprep.subr.bf16.mxu0 %v12930_v36 }
 0x265   : > { %9325 = vmatpush3.bf16.msra.mxu1 %v9322_v28  ;;  %v3206_v28 = vsub.f32 %v12957_v61, %v14633_v39  ;;  %v9654_v39 = vpack.c.bf16 %v3200_v63, %v3193_v0  ;;  %v3234_v41 = vsub.f32 %v13005_v49, %v3233_v48  ;;  %v3242_v63 = vand.u32 4294901760, %v3241_v9 }
 0x266   : > { %9327 = vmatprep.subr.bf16.mxu1 %v9326_v59  ;;  %v9686_v9 = vpack.c.bf16 %v12924_v25, %v12919_v55 }
 0x267   : > { %9645 = vmatpush3.bf16.msra.mxu0 %v12930_v36  ;;  %v3207_v24 = vand.u32 4294901760, %v3206_v28  ;;  %v3235_v0 = vand.u32 4294901760, %v3234_v41  ;;  %v9682_v41 = vpack.c.bf16 %v12881_v13, %v12876_v58  ;;  %v14984_v58 = vand.u32 4294901760, %v12957_v61 }
 0x268   : > { %9647 = vmatprep.subr.bf16.mxu0 %v12969_v21 }
 0x269   : > { %9329 = vmatpush3.bf16.msra.mxu1 %v9326_v59  ;;  %v3221_v59 = vand.u32 4294901760, %v3220_v10 }
 0x26b   : > { %9649 = vmatpush3.bf16.msra.mxu0 %v12969_v21 }
 0x26c   : > { %9651 = vmatprep.subr.bf16.mxu0 %v9650_v42  ;;  %7783 = vmatmul.mubr.f32.vlgmr.msra.gmra.mrb[0].mxu1 %v14944_v30  ;;  %v9658_v30 = vpack.c.bf16 %v3214_v20, %v3207_v24  ;;  %v3248_v24 = vsub.f32 %v13039_v53, %v3247_v1 }
 0x26d   : > { %7785 = vmatprep.mubr.f32.mxu1 %v14951_v43  ;;  %v13059_v43 = vsub.f32 %v12871_v40, %v3090_v50  ;;  %v3255_v40 = vsub.f32 %v13044_v62, %v3254_v56  ;;  %v13079_v50 = vsub.f32 %v12900_v5, %v3096_v2  ;;  %v3282_v2 = vand.u32 4294901760, %v13084_v8 }
 0x26e   : > { %8163 = vmatmul.mubr.f32.vlgmr.msra.gmra.mrb[0].mxu0 %v3148_v51 }
 0x26f   : > { %9653 = vmatpush3.bf16.msra.mxu0 %v9650_v42  ;;  %8165 = vmatprep.mubr.f32.mxu0 %v3158_v37  ;;  %v9662_v42 = vpack.c.bf16 %v3228_v7, %v3221_v59  ;;  %v3261_v6 = vand.u32 4294901760, %v13059_v43  ;;  %v3249_v7 = vand.u32 4294901760, %v3248_v24  ;;  %v3275_v5 = vand.u32 4294901760, %v13079_v50 }
 0x270   : > { %9655 = vmatprep.subr.bf16.mxu0 %v9654_v39  ;;  %7786 = vmatmul.mubr.f32.gmra.mrb[2].mxu1 %v14957_v47  ;;  %v3268_v47 = vand.u32 4294901760, %v13064_v15  ;;  %v3283_v51 = vsub.f32 %v13084_v8, %v3282_v2  ;;  %v9706_v24 = vpack.c.bf16 %v13064_v15, %v13059_v43 }
 0x271   : > { %v3262_v37 = vsub.f32 %v13059_v43, %v3261_v6  ;;  %v3276_v27 = vsub.f32 %v13079_v50, %v3275_v5 }
 0x272   : > { %8166 = vmatmul.mubr.f32.gmra.mrb[2].mxu0 %v3168_v45  ;;  %v9666_v45 = vpack.c.bf16 %v3242_v63, %v3235_v0  ;;  %v3269_v20 = vsub.f32 %v13064_v15, %v3268_v47  ;;  %v3284_v26 = vand.u32 4294901760, %v3283_v51  ;;  %v9698_v0 = vpack.c.bf16 %v13012_v46, %v13005_v49  ;;  %v3838_v15 = vld [vmem:[#allocation9 + $0x230] sm:$0xff]  ;;  %v3828_v51 = vld [vmem:[#allocation2 + $0x12] sm:$0xff] }
 0x273   : > { %9657 = vmatpush3.bf16.msra.mxu0 %v9654_v39  ;;  %8200 = vmatprep.mubr.f32.mxu0 %v12783_v52  ;;  %v3256_v39 = vand.u32 4294901760, %v3255_v40  ;;  %v3263_v57 = vand.u32 4294901760, %v3262_v37  ;;  %v3277_v23 = vand.u32 4294901760, %v3276_v27  ;;  %v9702_v63 = vpack.c.bf16 %v13044_v62, %v13039_v53  ;;  %v13209_v53 = vld [vmem:[#allocation9 + $0x228] sm:$0xff]  ;;  %v13239_v27 = vld [vmem:[#allocation9 + $0x258] sm:$0xff] }
 0x274   : > { %9659 = vmatprep.subr.bf16.mxu0 %v9658_v30  ;;  %v3270_v28 = vand.u32 4294901760, %v3269_v20  ;;  %v9710_v40 = vpack.c.bf16 %v13084_v8, %v13079_v50  ;;  %v14982_v37 = vand.u32 4294901760, %v12933_v29  ;;  %v14983_v20 = vand.u32 4294901760, %v12947_v54 }
 0x275   : > { %v9670_v31 = vpack.c.bf16 %v3256_v39, %v3249_v7  ;;  %v9678_v59 = vpack.c.bf16 %v3284_v26, %v3277_v23  ;;  %v14981_v7 = vand.u32 4294901760, %v12924_v25  ;;  %v14988_v25 = vand.u32 4294901760, %v12979_v60 }
 0x276   : > { %v9674_v10 = vpack.c.bf16 %v3270_v28, %v3263_v57  ;;  %v9774_v46 = vpack.c.bf16 %v3282_v2, %v3275_v5  ;;  %v3864_v43 = vand.u32 4294901760, %v13209_v53  ;;  %v3867_v50 = vand.u32 4294901760, %v3838_v15  ;;  %v13226_v5 = vld [vmem:[#allocation9 + $0x240] sm:$0xff]  ;;  %v13228_v2 = vld [vmem:[#allocation9 + $0x248] sm:$0xff]  ;;  %v13237_v28 = vld [vmem:[#allocation9 + $0x250] sm:$0xff] }
 0x277   : > { %9661 = vmatpush3.bf16.msra.mxu0 %v9658_v30  ;;  %v9690_v30 = vpack.c.bf16 %v12962_v3, %v12957_v61  ;;  %v9766_v61 = vpack.c.bf16 %v3254_v56, %v3247_v1  ;;  %v3876_v57 = vand.u32 4294901760, %v13228_v2 }
 0x278   : > { %9663 = vmatprep.subr.bf16.mxu0 %v9662_v42 }
 0x27b   : > { %9665 = vmatpush3.bf16.msra.mxu0 %v9662_v42  ;;  %v9694_v42 = vpack.c.bf16 %v12979_v60, %v12974_v22  ;;  %v3833_v60 = vld [vmem:[#allocation9 + $0x208] sm:$0xff] }
 0x27c   : > { %9667 = vmatprep.subr.bf16.mxu0 %v9666_v45 }
 0x27f   : > { %9669 = vmatpush3.bf16.msra.mxu0 %v9666_v45  ;;  %v14980_v45 = vand.u32 4294901760, %v12919_v55  ;;  %v14987_v55 = vand.u32 4294901760, %v12974_v22 }
 0x280   : > { %9671 = vmatprep.subr.bf16.mxu0 %v9670_v31 }
 0x281   : > { %v9750_v39 = vpack.c.bf16 %v14981_v7, %v14980_v45  ;;  %v3830_v45 = vld [vmem:[#allocation2 + $0x22] sm:$0xff] }
 0x283   : > { %9673 = vmatpush3.bf16.msra.mxu0 %v9670_v31  ;;  %v14986_v31 = vand.u32 4294901760, %v12982_v16 }
 0x284   : > { %9675 = vmatprep.subr.bf16.mxu0 %v9674_v10 }
 0x287   : > { %9677 = vmatpush3.bf16.msra.mxu0 %v9674_v10  ;;  %v13242_v10 = vld [vmem:[#allocation9 + $0x260] sm:$0xff] }
 0x288   : > { %9679 = vmatprep.subr.bf16.mxu0 %v9678_v59 }
 0x28b   : > { %9681 = vmatpush3.bf16.msra.mxu0 %v9678_v59 }
 0x28c   : > { %9683 = vmatprep.subr.bf16.mxu0 %v9682_v41 }
 0x28e   : > { %8201 = vmatmul.mubr.f32.vlgmr.msra.gmra.mrb[0].mxu0 %v12896_v19 }
 0x28f   : > { %9685 = vmatpush3.bf16.msra.mxu0 %v9682_v41  ;;  %8203 = vmatprep.mubr.f32.mxu0 %v12905_v38  ;;  %v3879_v41 = vand.u32 4294901760, %v13237_v28 }
 0x290   : > { %9687 = vmatprep.subr.bf16.mxu0 %v9686_v9 }
 0x292   : > { %8204 = vmatmul.mubr.f32.gmra.mrb[2].mxu0 %v12940_v17 }
 0x293   : > { %9689 = vmatpush3.bf16.msra.mxu0 %v9686_v9  ;;  %8238 = vmatprep.mubr.f32.mxu0 %v12792_v12  ;;  %v14979_v12 = vand.u32 4294901760, %v12881_v13  ;;  %v14985_v13 = vand.u32 4294901760, %v12962_v3  ;;  %v9770_v3 = vpack.c.bf16 %v3268_v47, %v3261_v6  ;;  %v3839_v6 = vld [vmem:[#allocation9 + $0x238] sm:$0xff]  ;;  %v3882_v9 = vand.u32 4294901760, %v13239_v27 }
 0x294   : > { %9691 = vmatprep.subr.bf16.mxu0 %v9690_v30  ;;  %v3870_v8 = vand.u32 4294901760, %v3839_v6 }
 0x295   : > { %v13273_v7 = vpack.c.bf16 %v3882_v9, %v3879_v41 }
 0x297   : > { %9693 = vmatpush3.bf16.msra.mxu0 %v9690_v30  ;;  %v3829_v30 = vld [vmem:[#allocation2 + $0x1a] sm:$0xff] }
 0x298   : > { %9695 = vmatprep.subr.bf16.mxu0 %v9694_v42 }
 0x29b   : > { %9697 = vmatpush3.bf16.msra.mxu0 %v9694_v42  ;;  %v13257_v42 = vand.u32 4294901760, %v3828_v51 }
 0x29c   : > { %9699 = vmatprep.subr.bf16.mxu0 %v9698_v0 }
 0x29f   : > { %9701 = vmatpush3.bf16.msra.mxu0 %v9698_v0  ;;  %v3885_v0 = vand.u32 4294901760, %v13242_v10 }
 0x2a0   : > { %9703 = vmatprep.subr.bf16.mxu0 %v9702_v63 }
 0x2a3   : > { %9705 = vmatpush3.bf16.msra.mxu0 %v9702_v63 }
 0x2a4   : > { %9707 = vmatprep.subr.bf16.mxu0 %v9706_v24 }
 0x2a7   : > { %9709 = vmatpush3.bf16.msra.mxu0 %v9706_v24  ;;  %v13262_v24 = vld [vmem:[#allocation9 + $0x270] sm:$0xff] }
 0x2a8   : > { %9711 = vmatprep.subr.bf16.mxu0 %v9710_v40 }
 0x2ab   : > { %9713 = vmatpush3.bf16.msra.mxu0 %v9710_v40 }
 0x2ac   : > { %9715 = vmatprep.subr.bf16.mxu0 %v12806_v18 }
 0x2ae   : > { %8239 = vmatmul.mubr.f32.vlgmr.msra.gmra.mrb[0].mxu0 %v12933_v29  ;;  %v9758_v29 = vpack.c.bf16 %v14988_v25, %v14987_v55 }
 0x2af   : > { %9717 = vmatpush3.bf16.msra.mxu0 %v12806_v18  ;;  %8241 = vmatprep.mubr.f32.mxu0 %v12947_v54  ;;  %v9762_v54 = vpack.c.bf16 %v3240_v11, %v3233_v48  ;;  %v3835_v11 = vld [vmem:[#allocation9 + $0x218] sm:$0xff] }
 0x2b0   : > { %9719 = vmatprep.subr.bf16.mxu0 %v12823_v33  ;;  %v3858_v48 = vand.u32 4294901760, %v3835_v11 }
 0x2b2   : > { %8242 = vmatmul.mubr.f32.gmra.mrb[2].mxu0 %v12982_v16  ;;  %v3834_v16 = vld [vmem:[#allocation9 + $0x210] sm:$0xff] }
 0x2b3   : > { %9721 = vmatpush3.bf16.msra.mxu0 %v12823_v33  ;;  %8276 = vmatprep.mubr.f32.mxu0 %v3136_v14  ;;  %v9746_v14 = vpack.c.bf16 %v14979_v12, %v3177_v35  ;;  %v9754_v35 = vpack.c.bf16 %v14985_v13, %v14984_v58  ;;  %v3855_v49 = vand.u32 4294901760, %v3834_v16  ;;  %v13282_v58 = vsub.f32 %v3828_v51, %v13257_v42 }
 0x2b4   : > { %9723 = vmatprep.subr.bf16.mxu0 %v12842_v34  ;;  %v13351_v51 = vsub.f32 %v13228_v2, %v3876_v57 }
 0x2b7   : > { %9725 = vmatpush3.bf16.msra.mxu0 %v12842_v34 }
 0x2b8   : > { %9727 = vmatprep.subr.bf16.mxu0 %v12862_v44 }
 0x2bb   : > { %9729 = vmatpush3.bf16.msra.mxu0 %v12862_v44 }
 0x2bc   : > { %9731 = vmatprep.subr.bf16.mxu0 %v12890_v32 }
 0x2bf   : > { %9733 = vmatpush3.bf16.msra.mxu0 %v12890_v32 }
 0x2c0   : > { %9735 = vmatprep.subr.bf16.mxu0 %v12914_v4 }
 0x2c3   : > { %9737 = vmatpush3.bf16.msra.mxu0 %v12914_v4 }
 0x2c4   : > { %9739 = vmatprep.subr.bf16.mxu0 %v12930_v36 }
 0x2c7   : > { %9741 = vmatpush3.bf16.msra.mxu0 %v12930_v36 }
 0x2c8   : > { %9743 = vmatprep.subr.bf16.mxu0 %v12969_v21 }
 0x2cb   : > { %9745 = vmatpush3.bf16.msra.mxu0 %v12969_v21 }
 0x2cc   : > { %9747 = vmatprep.subr.bf16.mxu0 %v9746_v14 }
 0x2ce   : > { %8277 = vmatmul.mubr.f32.vlgmr.msra.gmra.mrb[0].mxu0 %v14982_v37  ;;  %v13277_v37 = vsub.f32 %v3834_v16, %v3855_v49 }
 0x2cf   : > { %9749 = vmatpush3.bf16.msra.mxu0 %v9746_v14  ;;  %8279 = vmatprep.mubr.f32.mxu0 %v14983_v20  ;;  %v13266_v14 = vand.u32 4294901760, %v3829_v30  ;;  %v13279_v20 = vsub.f32 %v3835_v11, %v3858_v48 }
 0x2d0   : > { %9751 = vmatprep.subr.bf16.mxu0 %v9750_v39 }
 0x2d2   : > { %8280 = vmatmul.mubr.f32.gmra.mrb[2].mxu0 %v14986_v31  ;;  %v13291_v31 = vand.u32 4294901760, %v3830_v45 }
 0x2d3   : > { %9753 = vmatpush3.bf16.msra.mxu0 %v9750_v39  ;;  %8314 = vmatprep.mubr.f32.mxu0 %v12783_v52  ;;  %v13275_v39 = vld [vmem:[#allocation9 + $0x278] sm:$0xff] }
 0x2d4   : > { %9755 = vmatprep.subr.bf16.mxu0 %v9754_v35  ;;  %v3894_v55 = vand.u32 4294901760, %v13275_v39 }
 0x2d7   : > { %9757 = vmatpush3.bf16.msra.mxu0 %v9754_v35  ;;  %v3891_v35 = vand.u32 4294901760, %v13262_v24 }
 0x2d8   : > { %9759 = vmatprep.subr.bf16.mxu0 %v9758_v29 }
 0x2d9   : > { %v13326_v16 = vpack.c.bf16 %v3894_v55, %v3891_v35 }
 0x2db   : > { %9761 = vmatpush3.bf16.msra.mxu0 %v9758_v29 }
 0x2dc   : > { %9763 = vmatprep.subr.bf16.mxu0 %v9762_v54 }
 0x2df   : > { %9765 = vmatpush3.bf16.msra.mxu0 %v9762_v54  ;;  %v13302_v54 = vsub.f32 %v3829_v30, %v13266_v14 }
 0x2e0   : > { %9767 = vmatprep.subr.bf16.mxu0 %v9766_v61 }
 0x2e3   : > { %9769 = vmatpush3.bf16.msra.mxu0 %v9766_v61  ;;  %v3986_v61 = vand.u32 4294901760, %v13277_v37 }
 0x2e4   : > { %9771 = vmatprep.subr.bf16.mxu0 %v9770_v3 }
 0x2e7   : > { %9773 = vmatpush3.bf16.msra.mxu0 %v9770_v3  ;;  %v3993_v3 = vand.u32 4294901760, %v13279_v20 }
 0x2e8   : > { %9775 = vmatprep.subr.bf16.mxu0 %v9774_v46 }
 0x2eb   : > { %9777 = vmatpush3.bf16.msra.mxu0 %v9774_v46 }
 0x2ec   : > { %9779 = vmatprep.subr.bf16.mxu0 %v12806_v18 }
 0x2ee   : > { %8315 = vmatmul.mubr.f32.vlgmr.msra.gmra.mrb[0].mxu0 %v12896_v19 }
 0x2ef   : > { %9781 = vmatpush3.bf16.msra.mxu0 %v12806_v18  ;;  %8317 = vmatprep.mubr.f32.mxu0 %v12905_v38  ;;  %v3827_v18 = vld [vmem:[#allocation2 + $0xa] sm:$0xff] }
 0x2f0   : > { %9783 = vmatprep.subr.bf16.mxu0 %v12823_v33  ;;  %v13194_v22 = vand.u32 4294901760, %v3827_v18 }
 0x2f2   : > { %8318 = vmatmul.mubr.f32.gmra.mrb[2].mxu0 %v12940_v17 }
 0x2f3   : > { %9785 = vmatpush3.bf16.msra.mxu0 %v12823_v33  ;;  %8352 = vmatprep.mubr.f32.mxu0 %v12783_v52  ;;  %v3832_v33 = vld [vmem:[#allocation9 + $0x200] sm:$0xff]  ;;  %v13199_v52 = vsub.f32 %v3827_v18, %v13194_v22  ;;  %v13311_v18 = vsub.f32 %v13209_v53, %v3864_v43  ;;  %v3994_v53 = vsub.f32 %v13279_v20, %v3993_v3 }
 0x2f4   : > { %9787 = vmatprep.subr.bf16.mxu0 %v12842_v34 }
 0x2f7   : > { %9789 = vmatpush3.bf16.msra.mxu0 %v12842_v34  ;;  %v3849_v34 = vand.u32 4294901760, %v3832_v33 }
 0x2f8   : > { %9791 = vmatprep.subr.bf16.mxu0 %v12862_v44 }
 0x2f9   : > { %v13246_v23 = vsub.f32 %v3832_v33, %v3849_v34  ;;  %v14644_v33 = vand.u32 4294901760, %v13282_v58 }
 0x2fb   : > { %9793 = vmatpush3.bf16.msra.mxu0 %v12862_v44  ;;  %v3852_v44 = vand.u32 4294901760, %v3833_v60  ;;  %v3972_v40 = vand.u32 4294901760, %v13246_v23 }
 0x2fc   : > { %9795 = vmatprep.subr.bf16.mxu0 %v12890_v32 }
 0x2fd   : > { %v13205_v62 = vpack.c.bf16 %v3852_v44, %v3849_v34  ;;  %v13248_v26 = vsub.f32 %v3833_v60, %v3852_v44  ;;  %v3973_v25 = vsub.f32 %v13246_v23, %v3972_v40  ;;  %v13314_v60 = vsub.f32 %v3838_v15, %v3867_v50 }
 0x2fe   : > { %v13316_v34 = vsub.f32 %v3839_v6, %v3870_v8  ;;  %v13319_v44 = vsub.f32 %v3830_v45, %v13291_v31 }
 0x2ff   : > { %9797 = vmatpush3.bf16.msra.mxu0 %v12890_v32  ;;  %v3931_v32 = vand.u32 4294901760, %v13199_v52  ;;  %v3979_v12 = vand.u32 4294901760, %v13248_v26  ;;  %v3974_v11 = vand.u32 4294901760, %v3973_v25  ;;  %v14639_v15 = vand.u32 4294901760, %v13314_v60 }
 0x300   : > { %9799 = vmatprep.subr.bf16.mxu0 %v12914_v4  ;;  %v14638_v6 = vand.u32 4294901760, %v13316_v34  ;;  %v3995_v25 = vand.u32 4294901760, %v3994_v53  ;;  %v13378_v53 = vsub.f32 %v13237_v28, %v3879_v41 }
 0x301   : > { %v3932_v1 = vsub.f32 %v13199_v52, %v3931_v32  ;;  %v3980_v29 = vsub.f32 %v13248_v26, %v3979_v12  ;;  %v4015_v2 = vsub.f32 %v13314_v60, %v14639_v15 }
 0x303   : > { %9801 = vmatpush3.bf16.msra.mxu0 %v12914_v4  ;;  %v13207_v4 = vld [vmem:[#allocation9 + $0x220] sm:$0xff] }
 0x304   : > { %9803 = vmatprep.subr.bf16.mxu0 %v12930_v36  ;;  %v3861_v56 = vand.u32 4294901760, %v13207_v4 }
 0x306   : > { %v13224_v47 = vpack.c.bf16 %v3864_v43, %v3861_v56  ;;  %v13308_v46 = vsub.f32 %v13207_v4, %v3861_v56  ;;  %v3987_v4 = vsub.f32 %v13277_v37, %v3986_v61  ;;  %v14640_v56 = vand.u32 4294901760, %v13311_v18 }
 0x307   : > { %9805 = vmatpush3.bf16.msra.mxu0 %v12930_v36  ;;  %v13216_v36 = vpack.c.bf16 %v3858_v48, %v3855_v49  ;;  %v3981_v49 = vand.u32 4294901760, %v3980_v29  ;;  %v14643_v48 = vand.u32 4294901760, %v13302_v54  ;;  %v3942_v43 = vsub.f32 %v13282_v58, %v14644_v33 }
 0x308   : > { %9807 = vmatprep.subr.bf16.mxu0 %v12969_v21  ;;  %v3988_v45 = vand.u32 4294901760, %v3987_v4  ;;  %v4035_v4 = vand.u32 4294901760, %v13351_v51 }
 0x309   : > { %v3952_v30 = vsub.f32 %v13302_v54, %v14643_v48  ;;  %v3943_v29 = vand.u32 4294901760, %v3942_v43  ;;  %v13383_v43 = vsub.f32 %v13239_v27, %v3882_v9  ;;  %v4042_v27 = vand.u32 4294901760, %v13378_v53 }
 0x30a   : > { %v9846_v15 = vpack.c.bf16 %v3995_v25, %v3988_v45  ;;  %v4036_v41 = vsub.f32 %v13351_v51, %v4035_v4  ;;  %v13396_v45 = vsub.f32 %v13242_v10, %v3885_v0 }
 0x30b   : > { %9809 = vmatpush3.bf16.msra.mxu0 %v12969_v21  ;;  %v3933_v21 = vand.u32 4294901760, %v3932_v1  ;;  %v14641_v1 = vand.u32 4294901760, %v13308_v46  ;;  %v4049_v9 = vand.u32 4294901760, %v13383_v43 }
 0x30c   : > { %9811 = vmatprep.subr.bf16.mxu0 %v13205_v62  ;;  %v4056_v10 = vand.u32 4294901760, %v13396_v45 }
 0x30e   : > { %8353 = vmatmul.mubr.f32.vlgmr.msra.gmra.mrb[0].mxu0 %v12896_v19  ;;  %v13233_v19 = vpack.c.bf16 %v3870_v8, %v3867_v50  ;;  %v14642_v50 = vand.u32 4294901760, %v13319_v44  ;;  %v9842_v8 = vpack.c.bf16 %v3981_v49, %v3974_v11 }
 0x30f   : > { %9813 = vmatpush3.bf16.msra.mxu0 %v13205_v62  ;;  %8355 = vmatprep.mubr.f32.mxu0 %v12905_v38  ;;  %v3873_v38 = vand.u32 4294901760, %v13226_v5 }
 0x310   : > { %9815 = vmatprep.subr.bf16.mxu0 %v13216_v36  ;;  %v3962_v49 = vsub.f32 %v13319_v44, %v14642_v50  ;;  %v4016_v50 = vand.u32 4294901760, %v4015_v2 }
 0x311   : > { %v13253_v59 = vpack.c.bf16 %v3876_v57, %v3873_v38  ;;  %v4022_v57 = vsub.f32 %v13316_v34, %v14638_v6  ;;  %v3953_v6 = vand.u32 4294901760, %v3952_v30 }
 0x312   : > { %8356 = vmatmul.mubr.f32.gmra.mrb[2].mxu0 %v12940_v17  ;;  %v13244_v17 = vld [vmem:[#allocation9 + $0x268] sm:$0xff]  ;;  %v3963_v33 = vand.u32 4294901760, %v3962_v49 }
 0x313   : > { %9817 = vmatpush3.bf16.msra.mxu0 %v13216_v36  ;;  %8390 = vmatprep.mubr.f32.mxu0 %v3933_v21  ;;  %v3888_v63 = vand.u32 4294901760, %v13244_v17  ;;  %v13344_v21 = vsub.f32 %v13226_v5, %v3873_v38  ;;  %v4001_v5 = vsub.f32 %v13308_v46, %v14641_v1  ;;  %v4008_v38 = vsub.f32 %v13311_v18, %v14640_v56 }
 0x314   : > { %9819 = vmatprep.subr.bf16.mxu0 %v13224_v47  ;;  %v4023_v48 = vand.u32 4294901760, %v4022_v57 }
 0x315   : > { %v13288_v13 = vpack.c.bf16 %v3888_v63, %v3885_v0  ;;  %v4028_v11 = vand.u32 4294901760, %v13344_v21  ;;  %v4002_v56 = vand.u32 4294901760, %v4001_v5  ;;  %v4009_v1 = vand.u32 4294901760, %v4008_v38 }
 0x316   : > { %v9854_v25 = vpack.c.bf16 %v4023_v48, %v4016_v50  ;;  %v4037_v38 = vand.u32 4294901760, %v4036_v41  ;;  %v13415_v0 = vsub.f32 %v13262_v24, %v3891_v35 }
 0x317   : > { %9821 = vmatpush3.bf16.msra.mxu0 %v13224_v47  ;;  %v4029_v28 = vsub.f32 %v13344_v21, %v4028_v11  ;;  %v9850_v30 = vpack.c.bf16 %v4009_v1, %v4002_v56  ;;  %v4050_v1 = vsub.f32 %v13383_v43, %v4049_v9 }
 0x318   : > { %9823 = vmatprep.subr.bf16.mxu0 %v13233_v19  ;;  %v4070_v24 = vand.u32 4294901760, %v13415_v0 }
 0x319   : > { %v4030_v5 = vand.u32 4294901760, %v4029_v28  ;;  %v4051_v56 = vand.u32 4294901760, %v4050_v1  ;;  %v9874_v1 = vpack.c.bf16 %v13248_v26, %v13246_v23  ;;  %v14991_v23 = vand.u32 4294901760, %v13308_v46 }
 0x31a   : > { %v4071_v2 = vsub.f32 %v13415_v0, %v4070_v24  ;;  %v14992_v26 = vand.u32 4294901760, %v13311_v18 }
 0x31b   : > { %9825 = vmatpush3.bf16.msra.mxu0 %v13233_v19 }
 0x31c   : > { %9827 = vmatprep.subr.bf16.mxu0 %v13253_v59  ;;  %v4072_v28 = vand.u32 4294901760, %v4071_v2  ;;  %v14990_v2 = vand.u32 4294901760, %v13302_v54 }
 0x31f   : > { %9829 = vmatpush3.bf16.msra.mxu0 %v13253_v59 }
 0x320   : > { %9831 = vmatprep.subr.bf16.mxu0 %v13273_v7 }
 0x323   : > { %9833 = vmatpush3.bf16.msra.mxu0 %v13273_v7 }
 0x324   : > { %9835 = vmatprep.subr.bf16.mxu0 %v13288_v13 }
 0x327   : > { %9837 = vmatpush3.bf16.msra.mxu0 %v13288_v13 }
 0x328   : > { %9839 = vmatprep.subr.bf16.mxu0 %v13326_v16 }
 0x32b   : > { %9841 = vmatpush3.bf16.msra.mxu0 %v13326_v16 }
 0x32c   : > { %9843 = vmatprep.subr.bf16.mxu0 %v9842_v8 }
 0x32e   : > { %8391 = vmatmul.mubr.f32.vlgmr.msra.gmra.mrb[0].mxu0 %v3943_v29 }
 0x32f   : > { %9845 = vmatpush3.bf16.msra.mxu0 %v9842_v8  ;;  %8393 = vmatprep.mubr.f32.mxu0 %v3953_v6  ;;  %v13401_v8 = vsub.f32 %v13244_v17, %v3888_v63  ;;  %v4043_v6 = vsub.f32 %v13378_v53, %v4042_v27  ;;  %v13420_v63 = vsub.f32 %v13275_v39, %v3894_v55 }
 0x330   : > { %9847 = vmatprep.subr.bf16.mxu0 %v9846_v15 }
 0x331   : > { %v4063_v17 = vand.u32 4294901760, %v13401_v8  ;;  %v4044_v48 = vand.u32 4294901760, %v4043_v6  ;;  %v4077_v35 = vand.u32 4294901760, %v13420_v63 }
 0x332   : > { %8394 = vmatmul.mubr.f32.gmra.mrb[2].mxu0 %v3963_v33  ;;  %v9858_v33 = vpack.c.bf16 %v4037_v38, %v4030_v5 }
 0x333   : > { %9849 = vmatpush3.bf16.msra.mxu0 %v9846_v15  ;;  %8428 = vmatprep.mubr.f32.mxu0 %v13194_v22  ;;  %v4057_v15 = vsub.f32 %v13396_v45, %v4056_v10  ;;  %v4064_v50 = vsub.f32 %v13401_v8, %v4063_v17  ;;  %v9862_v39 = vpack.c.bf16 %v4051_v56, %v4044_v48 }
 0x334   : > { %9851 = vmatprep.subr.bf16.mxu0 %v9850_v30  ;;  %v4078_v57 = vsub.f32 %v13420_v63, %v4077_v35  ;;  %v9882_v48 = vpack.c.bf16 %v13311_v18, %v13308_v46  ;;  %v9886_v56 = vpack.c.bf16 %v13316_v34, %v13314_v60  ;;  %v9966_v46 = vpack.c.bf16 %v4077_v35, %v4070_v24 }
 0x335   : > { %v4058_v55 = vand.u32 4294901760, %v4057_v15  ;;  %v4065_v29 = vand.u32 4294901760, %v4064_v50  ;;  %v9890_v15 = vpack.c.bf16 %v13351_v51, %v13344_v21  ;;  %v9894_v50 = vpack.c.bf16 %v13383_v43, %v13378_v53  ;;  %v10745_v43 = vld [vmem:[#allocation2 + $0x18] sm:$0xff] }
 0x336   : > { %v4079_v41 = vand.u32 4294901760, %v4078_v57 }
 0x337   : > { %9853 = vmatpush3.bf16.msra.mxu0 %v9850_v30  ;;  %v9866_v49 = vpack.c.bf16 %v4065_v29, %v4058_v55  ;;  %v9902_v55 = vpack.c.bf16 %v13420_v63, %v13415_v0  ;;  %v14989_v29 = vand.u32 4294901760, %v13282_v58 }
 0x338   : > { %9855 = vmatprep.subr.bf16.mxu0 %v9854_v25  ;;  %v9870_v5 = vpack.c.bf16 %v4079_v41, %v4072_v28 }
 0x33b   : > { %9857 = vmatpush3.bf16.msra.mxu0 %v9854_v25 }
 0x33c   : > { %9859 = vmatprep.subr.bf16.mxu0 %v9858_v33 }
 0x33f   : > { %9861 = vmatpush3.bf16.msra.mxu0 %v9858_v33  ;;  %v13436_v30 = vpop.f32.mrb[0].mxu1  ;;  %v9878_v33 = vpack.c.bf16 %v13279_v20, %v13277_v37  ;;  %v14994_v37 = vand.u32 4294901760, %v13314_v60  ;;  %v14995_v20 = vand.u32 4294901760, %v13316_v34 }
 0x340   : > { %9863 = vmatprep.subr.bf16.mxu0 %v9862_v39  ;;  %v13438_v25 = vpop.f32.mrb[1].mxu1 }
 0x343   : > { %9865 = vmatpush3.bf16.msra.mxu0 %v9862_v39  ;;  %v13440_v38 = vpop.f32.mrb[2].mxu1  ;;  %v9898_v39 = vpack.c.bf16 %v13401_v8, %v13396_v45 }
 0x344   : > { %9867 = vmatprep.subr.bf16.mxu0 %v9866_v49  ;;  %v13442_v6 = vpop.f32.mrb[3].mxu1 }
 0x347   : > { %9869 = vmatpush3.bf16.msra.mxu0 %v9866_v49 }
 0x348   : > { %9871 = vmatprep.subr.bf16.mxu0 %v9870_v5 }
 0x34b   : > { %9873 = vmatpush3.bf16.msra.mxu0 %v9870_v5 }
 0x34c   : > { %9875 = vmatprep.subr.bf16.mxu0 %v9874_v1 }
 0x34e   : > { %8429 = vmatmul.mubr.f32.vlgmr.msra.gmra.mrb[0].mxu0 %v13257_v42 }
 0x34f   : > { %9877 = vmatpush3.bf16.msra.mxu0 %v9874_v1  ;;  %8431 = vmatprep.mubr.f32.mxu0 %v13266_v14  ;;  %v4707_v1 = vld [vmem:[#allocation11] sm:$0xff] }
 0x350   : > { %9879 = vmatprep.subr.bf16.mxu0 %v9878_v33 }
 0x352   : > { %8432 = vmatmul.mubr.f32.gmra.mrb[2].mxu0 %v13291_v31 }
 0x353   : > { %9881 = vmatpush3.bf16.msra.mxu0 %v9878_v33  ;;  %8466 = vmatprep.mubr.f32.mxu0 %v13199_v52  ;;  %v9938_v52 = vpack.c.bf16 %v3979_v12, %v3972_v40  ;;  %v9946_v40 = vpack.c.bf16 %v14992_v26, %v14991_v23  ;;  %v14993_v12 = vand.u32 4294901760, %v13319_v44  ;;  %v4708_v33 = vld [vmem:[#allocation11 + $0x8] sm:$0xff] }
 0x354   : > { %9883 = vmatprep.subr.bf16.mxu0 %v9882_v48 }
 0x357   : > { %9885 = vmatpush3.bf16.msra.mxu0 %v9882_v48  ;;  %v4731_v48 = vand.u32 4294901760, %v4707_v1 }
 0x358   : > { %9887 = vmatprep.subr.bf16.mxu0 %v9886_v56 }
 0x35b   : > { %9889 = vmatpush3.bf16.msra.mxu0 %v9886_v56  ;;  %v4734_v56 = vand.u32 4294901760, %v4708_v33 }
 0x35c   : > { %9891 = vmatprep.subr.bf16.mxu0 %v9890_v15 }
 0x35f   : > { %9893 = vmatpush3.bf16.msra.mxu0 %v9890_v15  ;;  %v13570_v15 = vpack.c.bf16 %v4734_v56, %v4731_v48 }
 0x360   : > { %9895 = vmatprep.subr.bf16.mxu0 %v9894_v50 }
 0x361   : > { %10003 = vmatprep.subr.bf16.mxu1 %v13570_v15 }
 0x362   : > { %10005 = vmatpush3.bf16.msra.mxu1 %v13570_v15 }
 0x363   : > { %9897 = vmatpush3.bf16.msra.mxu0 %v9894_v50  ;;  %v4709_v50 = vld [vmem:[#allocation11 + $0x10] sm:$0xff] }
 0x364   : > { %9899 = vmatprep.subr.bf16.mxu0 %v9898_v39 }
 0x367   : > { %9901 = vmatpush3.bf16.msra.mxu0 %v9898_v39  ;;  %v4710_v39 = vld [vmem:[#allocation11 + $0x18] sm:$0xff] }
 0x368   : > { %9903 = vmatprep.subr.bf16.mxu0 %v9902_v55 }
 0x36b   : > { %9905 = vmatpush3.bf16.msra.mxu0 %v9902_v55  ;;  %v4737_v55 = vand.u32 4294901760, %v4709_v50 }
 0x36c   : > { %9907 = vmatprep.subr.bf16.mxu0 %v13205_v62 }
 0x36e   : > { %8467 = vmatmul.mubr.f32.vlgmr.msra.gmra.mrb[0].mxu0 %v13282_v58  ;;  %v9950_v58 = vpack.c.bf16 %v14995_v20, %v14994_v37  ;;  %v4714_v37 = vld [vmem:[#allocation11 + $0x38] sm:$0xff] }
 0x36f   : > { %9909 = vmatpush3.bf16.msra.mxu0 %v13205_v62  ;;  %8469 = vmatprep.mubr.f32.mxu0 %v13302_v54  ;;  %v9954_v54 = vpack.c.bf16 %v4035_v4, %v4028_v11  ;;  %v10744_v4 = vld [vmem:[#allocation2 + $0x10] sm:$0xff] }
 0x370   : > { %9911 = vmatprep.subr.bf16.mxu0 %v13216_v36 }
 0x372   : > { %8470 = vmatmul.mubr.f32.gmra.mrb[2].mxu0 %v13319_v44 }
 0x373   : > { %9913 = vmatpush3.bf16.msra.mxu0 %v13216_v36  ;;  %8504 = vmatprep.mubr.f32.mxu0 %v3931_v32  ;;  %v9942_v32 = vpack.c.bf16 %v3993_v3, %v3986_v61  ;;  %v9958_v61 = vpack.c.bf16 %v4049_v9, %v4042_v27  ;;  %v9962_v3 = vpack.c.bf16 %v4063_v17, %v4056_v10  ;;  %v10746_v9 = vld [vmem:[#allocation2 + $0x20] sm:$0xff] }
 0x374   : > { %9915 = vmatprep.subr.bf16.mxu0 %v13224_v47 }
 0x377   : > { %9917 = vmatpush3.bf16.msra.mxu0 %v13224_v47 }
 0x378   : > { %9919 = vmatprep.subr.bf16.mxu0 %v13233_v19 }
 0x37b   : > { %9921 = vmatpush3.bf16.msra.mxu0 %v13233_v19 }
 0x37c   : > { %9923 = vmatprep.subr.bf16.mxu0 %v13253_v59 }
 0x37f   : > { %9925 = vmatpush3.bf16.msra.mxu0 %v13253_v59 }
 0x380   : > { %9927 = vmatprep.subr.bf16.mxu0 %v13273_v7 }
 0x383   : > { %9929 = vmatpush3.bf16.msra.mxu0 %v13273_v7 }
 0x384   : > { %9931 = vmatprep.subr.bf16.mxu0 %v13288_v13 }
 0x387   : > { %9933 = vmatpush3.bf16.msra.mxu0 %v13288_v13 }
 0x388   : > { %9935 = vmatprep.subr.bf16.mxu0 %v13326_v16 }
 0x38b   : > { %9937 = vmatpush3.bf16.msra.mxu0 %v13326_v16 }
 0x38c   : > { %9939 = vmatprep.subr.bf16.mxu0 %v9938_v52 }
 0x38e   : > { %8505 = vmatmul.mubr.f32.vlgmr.msra.gmra.mrb[0].mxu0 %v14989_v29  ;;  %v4711_v29 = vld [vmem:[#allocation11 + $0x20] sm:$0xff] }
 0x38f   : > { %9941 = vmatpush3.bf16.msra.mxu0 %v9938_v52  ;;  %8507 = vmatprep.mubr.f32.mxu0 %v14990_v2  ;;  %v4740_v52 = vand.u32 4294901760, %v4710_v39  ;;  %v4712_v2 = vld [vmem:[#allocation11 + $0x28] sm:$0xff]  ;;  %v4743_v23 = vand.u32 4294901760, %v4711_v29 }
 0x390   : > { %9943 = vmatprep.subr.bf16.mxu0 %v9942_v32  ;;  %v4746_v26 = vand.u32 4294901760, %v4712_v2 }
 0x392   : > { %8508 = vmatmul.mubr.f32.gmra.mrb[2].mxu0 %v14993_v12  ;;  %v4713_v12 = vld [vmem:[#allocation11 + $0x30] sm:$0xff] }
 0x393   : > { %9945 = vmatpush3.bf16.msra.mxu0 %v9942_v32  ;;  %8542 = vmatprep.mubr.f32.mxu0 %v13194_v22  ;;  %v13574_v32 = vpack.c.bf16 %v4740_v52, %v4737_v55  ;;  %v4749_v20 = vand.u32 4294901760, %v4713_v12 }
 0x394   : > { %9947 = vmatprep.subr.bf16.mxu0 %v9946_v40 }
 0x395   : > { %10007 = vmatprep.subr.bf16.mxu1 %v13574_v32 }
 0x396   : > { %10009 = vmatpush3.bf16.msra.mxu1 %v13574_v32 }
 0x397   : > { %9949 = vmatpush3.bf16.msra.mxu0 %v9946_v40  ;;  %v13578_v40 = vpack.c.bf16 %v4746_v26, %v4743_v23 }
 0x398   : > { %9951 = vmatprep.subr.bf16.mxu0 %v9950_v58 }
 0x399   : > { %10011 = vmatprep.subr.bf16.mxu1 %v13578_v40 }
 0x39a   : > { %10013 = vmatpush3.bf16.msra.mxu1 %v13578_v40 }
 0x39b   : > { %9953 = vmatpush3.bf16.msra.mxu0 %v9950_v58  ;;  %v4752_v58 = vand.u32 4294901760, %v4714_v37 }
 0x39c   : > { %9955 = vmatprep.subr.bf16.mxu0 %v9954_v54 }
 0x39f   : > { %9957 = vmatpush3.bf16.msra.mxu0 %v9954_v54  ;;  %v13582_v54 = vpack.c.bf16 %v4752_v58, %v4749_v20 }
 0x3a0   : > { %9959 = vmatprep.subr.bf16.mxu0 %v9958_v61 }
 0x3a1   : > { %10015 = vmatprep.subr.bf16.mxu1 %v13582_v54 }
 0x3a2   : > { %10017 = vmatpush3.bf16.msra.mxu1 %v13582_v54 }
 0x3a3   : > { %9961 = vmatpush3.bf16.msra.mxu0 %v9958_v61  ;;  %v13584_v61 = vld [vmem:[#allocation11 + $0x40] sm:$0xff] }
 0x3a4   : > { %9963 = vmatprep.subr.bf16.mxu0 %v9962_v3 }
 0x3a7   : > { %9965 = vmatpush3.bf16.msra.mxu0 %v9962_v3  ;;  %v13586_v3 = vld [vmem:[#allocation11 + $0x48] sm:$0xff] }
 0x3a8   : > { %9967 = vmatprep.subr.bf16.mxu0 %v9966_v46 }
 0x3ab   : > { %9969 = vmatpush3.bf16.msra.mxu0 %v9966_v46  ;;  %v4755_v46 = vand.u32 4294901760, %v13584_v61 }
 0x3ac   : > { %9971 = vmatprep.subr.bf16.mxu0 %v13205_v62 }
 0x3ae   : > { %8543 = vmatmul.mubr.f32.vlgmr.msra.gmra.mrb[0].mxu0 %v13257_v42 }
 0x3af   : > { %9973 = vmatpush3.bf16.msra.mxu0 %v13205_v62  ;;  %8545 = vmatprep.mubr.f32.mxu0 %v13266_v14 }
 0x3b0   : > { %9975 = vmatprep.subr.bf16.mxu0 %v13216_v36 }
 0x3b2   : > { %8546 = vmatmul.mubr.f32.gmra.mrb[2].mxu0 %v13291_v31 }
 0x3b3   : > { %9977 = vmatpush3.bf16.msra.mxu0 %v13216_v36  ;;  %8580 = vmatprep.mubr.f32.mxu0 %v13194_v22  ;;  %v6587_v36 = vld [vmem:[%s14996_s29] ss:$0 sm:$0xff]  ;;  %s6595_s29 = sshll.u32 %s14749_s19, 2 }
 0x3b4   : > { %9979 = vmatprep.subr.bf16.mxu0 %v13224_v47  ;;  %s6384_s17 = sadd.s32 %s6596_s23, %s6595_s29 }
 0x3b5   : > { %s6597_s19 = sshll.u32 %s6384_s17, 7 }
 0x3b6   : > { %s14355_s6 = scalar_lea.hbm %s15034_s11, %s6597_s19 }
 0x3b7   : > { %9981 = vmatpush3.bf16.msra.mxu0 %v13224_v47 }
 0x3b8   : > { %9983 = vmatprep.subr.bf16.mxu0 %v13233_v19 }
 0x3bb   : > { %9985 = vmatpush3.bf16.msra.mxu0 %v13233_v19 }
 0x3bc   : > { %9987 = vmatprep.subr.bf16.mxu0 %v13253_v59 }
 0x3bf   : > { %9989 = vmatpush3.bf16.msra.mxu0 %v13253_v59 }
 0x3c0   : > { %9991 = vmatprep.subr.bf16.mxu0 %v13273_v7 }
 0x3c3   : > { %9993 = vmatpush3.bf16.msra.mxu0 %v13273_v7 }
 0x3c4   : > { %9995 = vmatprep.subr.bf16.mxu0 %v13288_v13 }
 0x3c7   : > { %9997 = vmatpush3.bf16.msra.mxu0 %v13288_v13 }
 0x3c8   : > { %9999 = vmatprep.subr.bf16.mxu0 %v13326_v16 }
 0x3cb   : > { %10001 = vmatpush3.bf16.msra.mxu0 %v13326_v16  ;;  %v10743_v16 = vld [vmem:[#allocation2 + $0x8] sm:$0xff] }
 0x3ce   : > { %8581 = vmatmul.mubr.f32.vlgmr.msra.gmra.mrb[0].mxu0 %v13257_v42 }
 0x3cf   : > { %8583 = vmatprep.mubr.f32.mxu0 %v13266_v14 }
 0x3d2   : > { %8584 = vmatmul.mubr.f32.gmra.mrb[2].mxu0 %v13291_v31 }
 0x4a1   : > { %v8582_v22 = vpop.f32.mrb[0].mxu0 }
 0x4a2   : > { %v10386_v62 = vadd.f32 %v8582_v22, %v13436_v30  ;;  %v4596_v47 = vpop.f32.mrb[1].mxu0  ;;  %v4758_v22 = vand.u32 4294901760, %v13586_v3 }
 0x4a3   : > { %v10387_v19 = vadd.f32 %v4596_v47, %v13438_v25  ;;  %v13596_v47 = vld [vmem:[#allocation11 + $0x58] sm:$0xff] }
 0x4a4   : > { %v4630_v59 = vadd.f32 %v10386_v62, %v6587_v36  ;;  %v13592_v62 = vpack.c.bf16 %v4758_v22, %v4755_v46 }
 0x4a5   : > { %v4629_v7 = vadd.f32 %v10387_v19, %v6587_v36  ;;  %v8585_v13 = vpop.f32.mrb[2].mxu0 }
 0x4a6   : > { %v10388_v18 = vadd.f32 %v8585_v13, %v13440_v38  ;;  %v4608_v42 = vpop.f32.mrb[3].mxu0  ;;  %v4634_v31 = vmax.f32 %v4630_v59, 0.0  ;;  %10019 = vmatprep.subr.bf16.mxu1 %v13592_v62  ;;  %v4764_v59 = vand.u32 4294901760, %v13596_v47  ;;  %v13604_v13 = vld [vmem:[#allocation11 + $0x60] sm:$0xff] }
 0x4a7   : > { %v4633_v60 = vmax.f32 %v4629_v7, 0.0  ;;  %v10389_v14 = vadd.f32 %v4608_v42, %v13442_v6  ;;  %10021 = vmatpush3.bf16.msra.mxu1 %v13592_v62  ;;  %v4767_v42 = vand.u32 4294901760, %v13604_v13 }
 0x4a8   : > { %v4632_v34 = vadd.f32 %v10388_v18, %v6587_v36  ;;  %v4638_v53 = vadd.f32 %v10744_v4, %v4634_v31  ;;  %v13606_v18 = vld [vmem:[#allocation11 + $0x68] sm:$0xff]  ;;  %v13618_v31 = vsub.f32 %v4707_v1, %v4731_v48 }
 0x4a9   : > { %v4631_v44 = vadd.f32 %v10389_v14, %v6587_v36  ;;  %v4637_v21 = vadd.f32 %v10743_v16, %v4633_v60  ;;  %v13594_v36 = vld [vmem:[#allocation11 + $0x50] sm:$0xff]  ;;  %v4770_v60 = vand.u32 4294901760, %v13606_v18  ;;  %v13624_v16 = vld [vmem:[#allocation11 + $0x78] sm:$0xff] }
 0x4aa   : > { %v4636_v11 = vmax.f32 %v4632_v34, 0.0  ;;  %v4761_v19 = vand.u32 4294901760, %v13594_v36  ;;  %v13620_v34 = vsub.f32 %v4708_v33, %v4734_v56 }
 0x4ab   : > { %v4635_v51 = vmax.f32 %v4631_v44, 0.0  ;;  %4643 = vadd.xlane.f32.xlu0 %v4637_v21  ;;  %v13616_v14 = vpack.c.bf16 %v4770_v60, %v4767_v42  ;;  %v13622_v44 = vld [vmem:[#allocation11 + $0x70] sm:$0xff] }
 0x4ac   : > { %v4640_v45 = vadd.f32 %v10746_v9, %v4636_v11  ;;  %v13602_v7 = vpack.c.bf16 %v4764_v59, %v4761_v19  ;;  %v4854_v11 = vand.u32 4294901760, %v13618_v31  ;;  %v4861_v4 = vand.u32 4294901760, %v13620_v34 }
 0x4ad   : > { %v4639_v27 = vadd.f32 %v10745_v43, %v4635_v51  ;;  %v4776_v51 = vand.u32 4294901760, %v13624_v16  ;;  %v13644_v9 = vsub.f32 %v4709_v50, %v4737_v55  ;;  %v13675_v50 = vsub.f32 %v4713_v12, %v4749_v20 }
 0x4ae   : > { %10023 = vmatprep.subr.bf16.mxu1 %v13602_v7  ;;  %v4855_v43 = vsub.f32 %v13618_v31, %v4854_v11  ;;  %v13690_v12 = vsub.f32 %v13586_v3, %v4758_v22  ;;  %v13704_v3 = vsub.f32 %v13594_v36, %v4761_v19  ;;  %v13729_v19 = vsub.f32 %v13606_v18, %v4770_v60 }
 0x4af   : > { %4645 = vadd.xlane.f32.xlu0 %v4638_v53  ;;  %4647 = vadd.xlane.f32.xlu1 %v4639_v27  ;;  %v13746_v18 = vsub.f32 %v13624_v16, %v4776_v51 }
 0x4b0   : > { %10025 = vmatpush3.bf16.msra.mxu1 %v13602_v7 }
 0x4b1   : > { %10027 = vmatprep.subr.bf16.mxu1 %v13616_v14 }
 0x4b3   : > { %4649 = vadd.xlane.f32.xlu1 %v4640_v45 }
 0x4b4   : > { %10029 = vmatpush3.bf16.msra.mxu1 %v13616_v14 }
 0x538   : > { %v4644_v8 = vpop.xlane.xlu0 %4643 }
 0x539   : > { %v4651_v10 = vmul.f32 0.0078125, %v4644_v8  ;;  %v4856_v8 = vand.u32 4294901760, %v4855_v43  ;;  %v13687_v43 = vsub.f32 %v13584_v61, %v4755_v46  ;;  %v13707_v46 = vsub.f32 %v13596_v47, %v4764_v59 }
 0x53a   : > { %v13724_v47 = vsub.f32 %v13604_v13, %v4767_v42 }
 0x53b   : > { %v13554_v17 = vsub.f32 %v4637_v21, %v4651_v10  ;;  %v4773_v21 = vand.u32 4294901760, %v13622_v44 }
 0x53c   : > { %v4646_v0 = vpop.xlane.xlu0 %4645  ;;  %v4648_v63 = vpop.xlane.xlu1 %4647 }
 0x53d   : > { %v4652_v24 = vmul.f32 0.0078125, %v4646_v0  ;;  %v4653_v35 = vmul.f32 0.0078125, %v4648_v63  ;;  %v4659_v57 = vmul.f32 %v13554_v17, %v13554_v17  ;;  %v4868_v0 = vand.u32 4294901760, %v13644_v9 }
 0x53e   : > { %v13741_v13 = vsub.f32 %v13622_v44, %v4773_v21 }
 0x53f   : > { %v13558_v49 = vsub.f32 %v4638_v53, %v4652_v24  ;;  %v13560_v28 = vsub.f32 %v4639_v27, %v4653_v35  ;;  %4663 = vadd.xlane.f32.xlu0 %v4659_v57  ;;  %v13636_v53 = vpack.c.bf16 %v4776_v51, %v4773_v21  ;;  %v4862_v27 = vsub.f32 %v13620_v34, %v4861_v4 }
 0x540   : > { %v4650_v41 = vpop.xlane.xlu1 %4649  ;;  %v4869_v35 = vsub.f32 %v13644_v9, %v4868_v0 }
 0x541   : > { %v4654_v30 = vmul.f32 0.0078125, %v4650_v41  ;;  %v4660_v25 = vmul.f32 %v13558_v49, %v13558_v49  ;;  %v4661_v5 = vmul.f32 %v13560_v28, %v13560_v28  ;;  %10031 = vmatprep.subr.bf16.mxu1 %v13636_v53  ;;  %v4863_v10 = vand.u32 4294901760, %v4862_v27 }
 0x542   : > { %10033 = vmatpush3.bf16.msra.mxu1 %v13636_v53  ;;  %v13660_v41 = vsub.f32 %v4711_v29, %v4743_v23  ;;  %v14654_v29 = vand.u32 4294901760, %v13675_v50  ;;  %v14651_v27 = vand.u32 4294901760, %v13690_v12 }
 0x543   : > { %v13566_v38 = vsub.f32 %v4640_v45, %v4654_v30  ;;  %4665 = vadd.xlane.f32.xlu1 %v4660_v25  ;;  %4667 = vadd.xlane.f32.xlu0 %v4661_v5  ;;  %v13646_v45 = vsub.f32 %v4710_v39, %v4740_v52  ;;  %v13652_v24 = vpack.c.bf16 %v4863_v10, %v4856_v8  ;;  %v4870_v25 = vand.u32 4294901760, %v4869_v35 }
 0x544   : > { %v13662_v30 = vsub.f32 %v4712_v2, %v4746_v26  ;;  %v13677_v39 = vsub.f32 %v4714_v37, %v4752_v58  ;;  %v4897_v26 = vsub.f32 %v13675_v50, %v14654_v29  ;;  %v14652_v58 = vand.u32 4294901760, %v13687_v43  ;;  %v6588_v29 = vld [vmem:[%s14997_s18] ss:$0 sm:$0xff] }
 0x545   : > { %v4662_v6 = vmul.f32 %v13566_v38, %v13566_v38  ;;  %v14657_v63 = vand.u32 4294901760, %v13646_v45  ;;  %10035 = vmatprep.subr.bf16.mxu1 %v13652_v24  ;;  %v4918_v61 = vsub.f32 %v13690_v12, %v14651_v27 }
 0x546   : > { %v14655_v1 = vand.u32 4294901760, %v13662_v30  ;;  %v14653_v2 = vand.u32 4294901760, %v13677_v39  ;;  %v4898_v20 = vand.u32 4294901760, %v4897_v26  ;;  %v4911_v10 = vsub.f32 %v13687_v43, %v14652_v58 }
 0x547   : > { %4669 = vadd.xlane.f32.xlu1 %v4662_v6  ;;  %v4876_v57 = vsub.f32 %v13646_v45, %v14657_v63  ;;  %v14656_v6 = vand.u32 4294901760, %v13660_v41  ;;  %v14647_v26 = vand.u32 4294901760, %v13729_v19 }
 0x548   : > { %v4890_v56 = vsub.f32 %v13662_v30, %v14655_v1  ;;  %v4904_v37 = vsub.f32 %v13677_v39, %v14653_v2  ;;  %v4912_v35 = vand.u32 4294901760, %v4911_v10  ;;  %v14645_v10 = vand.u32 4294901760, %v13746_v18 }
 0x549   : > { %v4877_v5 = vand.u32 4294901760, %v4876_v57  ;;  %v4883_v48 = vsub.f32 %v13660_v41, %v14656_v6  ;;  %v4919_v57 = vand.u32 4294901760, %v4918_v61  ;;  %v4946_v42 = vsub.f32 %v13729_v19, %v14647_v26 }
 0x54a   : > { %v4891_v52 = vand.u32 4294901760, %v4890_v56  ;;  %v4905_v8 = vand.u32 4294901760, %v4904_v37  ;;  %v4960_v21 = vsub.f32 %v13746_v18, %v14645_v10 }
 0x54b   : > { %v13667_v33 = vpack.c.bf16 %v4877_v5, %v4870_v25  ;;  %v4884_v55 = vand.u32 4294901760, %v4883_v48  ;;  %v14650_v25 = vand.u32 4294901760, %v13704_v3  ;;  %v14649_v5 = vand.u32 4294901760, %v13707_v46 }
 0x54c   : > { %v13709_v22 = vpack.c.bf16 %v4905_v8, %v4898_v20  ;;  %v13713_v48 = vpack.c.bf16 %v4919_v57, %v4912_v35  ;;  %v14646_v8 = vand.u32 4294901760, %v13741_v13  ;;  %v4947_v61 = vand.u32 4294901760, %v4946_v42 }
 0x54d   : > { %v13681_v23 = vpack.c.bf16 %v4891_v52, %v4884_v55  ;;  %v4925_v56 = vsub.f32 %v13704_v3, %v14650_v25  ;;  %v4932_v36 = vsub.f32 %v13707_v46, %v14649_v5  ;;  %v14648_v52 = vand.u32 4294901760, %v13724_v47 }
 0x54e   : > { %v4953_v44 = vsub.f32 %v13741_v13, %v14646_v8  ;;  %v4961_v35 = vand.u32 4294901760, %v4960_v21  ;;  %v13785_v42 = vpack.c.bf16 %v13707_v46, %v13704_v3 }
 0x54f   : > { %v4926_v59 = vand.u32 4294901760, %v4925_v56  ;;  %v4933_v55 = vand.u32 4294901760, %v4932_v36  ;;  %v4939_v20 = vsub.f32 %v13724_v47, %v14648_v52  ;;  %v13765_v56 = vpack.c.bf16 %v13620_v34, %v13618_v31 }
 0x550   : > { %v4954_v51 = vand.u32 4294901760, %v4953_v44  ;;  %v13769_v36 = vpack.c.bf16 %v13646_v45, %v13644_v9  ;;  %v15001_v31 = vand.u32 4294901760, %v13660_v41  ;;  %v15002_v34 = vand.u32 4294901760, %v13662_v30 }
 0x551   : > { %v13733_v37 = vpack.c.bf16 %v4933_v55, %v4926_v59  ;;  %v4940_v60 = vand.u32 4294901760, %v4939_v20  ;;  %v13773_v59 = vpack.c.bf16 %v13662_v30, %v13660_v41  ;;  %v13777_v55 = vpack.c.bf16 %v13677_v39, %v13675_v50 }
 0x552   : > { %v13761_v57 = vpack.c.bf16 %v4961_v35, %v4954_v51  ;;  %v13781_v20 = vpack.c.bf16 %v13690_v12, %v13687_v43  ;;  %v15004_v9 = vand.u32 4294901760, %v13677_v39  ;;  %v15006_v41 = vand.u32 4294901760, %v13690_v12 }
 0x553   : > { %v13759_v16 = vpack.c.bf16 %v4947_v61, %v4940_v60  ;;  %v13789_v60 = vpack.c.bf16 %v13729_v19, %v13724_v47  ;;  %v13793_v61 = vpack.c.bf16 %v13746_v18, %v13741_v13  ;;  %v15010_v39 = vand.u32 4294901760, %v13729_v19 }
 0x554   : > { %v15012_v12 = vand.u32 4294901760, %v13746_v18 }
 0x5cc   : > { %v4664_v44 = vpop.xlane.xlu0 %4663 }
 0x5cd   : > { %v4671_v21 = vmul.f32 0.0078125, %v4664_v44 }
 0x5cf   : > { %v4675_v51 = vadd.f32 1e-05, %v4671_v21  ;;  %v6589_v21 = vld [vmem:[%s14998_s0] ss:$0 sm:$0xff]  ;;  %s623_s0 = scalar_lea.vmem [#allocation14], %s6580_s2  ;;  %s6372_s2 = scalar_lea.sflag [#allocation5], %s11568_s7 }
 0x5d0   : > { %v4668_v35 = vpop.xlane.xlu0 %4667  ;;  %v4666_v10 = vpop.xlane.xlu1 %4665  ;;  %s6387_s12 = sshll.u32 %s623_s0, 4  ;;  %s14357_s12 = int_to_ptr.vmem [resolvable:$true] %s6387_s12 }
 0x5d1   : > { %10727 = vrsqrt.f32 %v4675_v51  ;;  %v4673_v8 = vmul.f32 0.0078125, %v4668_v35  ;;  %v4672_v26 = vmul.f32 0.0078125, %v4666_v10  ;;  %p10928_p7 = scmp.lt.s32.totalorder %s14357_s12, %s10926_s22 }
 0x5d3   : > { %v4677_v52 = vadd.f32 1e-05, %v4673_v8  ;;  %v4676_v5 = vadd.f32 1e-05, %v4672_v26 }
 0x5d4   : > { %v4670_v25 = vpop.xlane.xlu1 %4669 }
 0x5d5   : > { %10729 = vrsqrt.f32 %v4677_v52  ;;  %v4674_v27 = vmul.f32 0.0078125, %v4670_v25 }
 0x5d6   : > { %10731 = vrsqrt.f32 %v4676_v5 }
 0x5d7   : > { %v4678_v58 = vadd.f32 1e-05, %v4674_v27 }
 0x5d9   : > { %10733 = vrsqrt.f32 %v4678_v58 }
 0x5db   : > { %v10728_v2 = vpop.eup %10727 }
 0x5dc   : > { %v4683_v44 = vmul.f32 %v10728_v2, %v13554_v17 }
 0x5de   : > { %v4693_v10 = vmul.f32 %v6588_v29, %v4683_v44 }
 0x5df   : > { %v10730_v8 = vpop.eup %10729 }
 0x5e0   : > { %v10732_v26 = vpop.eup %10731  ;;  %v4685_v52 = vmul.f32 %v10730_v8, %v13560_v28  ;;  %v13803_v25 = vadd.f32 %v6589_v21, %v4693_v10 }
 0x5e1   : > { %v4684_v58 = vmul.f32 %v10732_v26, %v13558_v49 }
 0x5e2   : > { %v4695_v27 = vmul.f32 %v6588_v29, %v4685_v52  ;;  %v13807_v5 = vand.u32 4294901760, %v13803_v25 }
 0x5e3   : > { %v10734_v51 = vpop.eup %10733  ;;  %v4694_v35 = vmul.f32 %v6588_v29, %v4684_v58 }
 0x5e4   : > { %v4686_v17 = vmul.f32 %v10734_v51, %v13566_v38  ;;  %v13812_v2 = vsub.f32 %v13803_v25, %v13807_v5  ;;  %v13814_v44 = vadd.f32 %v6589_v21, %v4695_v27 }
 0x5e5   : > { %v13816_v1 = vadd.f32 %v6589_v21, %v4694_v35 }
 0x5e6   : > { %v4696_v28 = vmul.f32 %v6588_v29, %v4686_v17  ;;  %v4813_v10 = vand.u32 4294901760, %v13812_v2  ;;  %v13820_v49 = vand.u32 4294901760, %v13814_v44 }
 0x5e7   : > { %v13823_v8 = vand.u32 4294901760, %v13816_v1 }
 0x5e8   : > { %v4814_v38 = vsub.f32 %v13812_v2, %v4813_v10  ;;  %v13830_v26 = vsub.f32 %v13814_v44, %v13820_v49  ;;  %v13832_v52 = vadd.f32 %v6589_v21, %v4696_v28 }
 0x5e9   : > { %v13836_v29 = vsub.f32 %v13816_v1, %v13823_v8 }
 0x5ea   : > { %v4815_v58 = vand.u32 4294901760, %v4814_v38  ;;  %v14658_v27 = vand.u32 4294901760, %v13830_v26  ;;  %v13840_v51 = vand.u32 4294901760, %v13832_v52 }
 0x5eb   : > { %v4823_v35 = vand.u32 4294901760, %v13836_v29 }
 0x5ec   : > { %8618 = vmatprep.mubr.f32.mxu1 %v4815_v58  ;;  %v4834_v17 = vsub.f32 %v13830_v26, %v14658_v27  ;;  %v13848_v21 = vsub.f32 %v13832_v52, %v13840_v51 }
 0x5ed   : > { %v4824_v28 = vsub.f32 %v13836_v29, %v4823_v35 }
 0x5ee   : > { %v4835_v38 = vand.u32 4294901760, %v4834_v17  ;;  %v4843_v6 = vand.u32 4294901760, %v13848_v21 }
 0x5ef   : > { %v4825_v63 = vand.u32 4294901760, %v4824_v28 }
 0x5f0   : > { %v4844_v58 = vsub.f32 %v13848_v21, %v4843_v6 }
 0x5f1   : > { %8619 = vmatmul.mubr.f32.vlgmr.msra.gmra.mrb[4].mxu1 %v4825_v63  ;;  %v10130_v63 = vpack.c.bf16 %v4861_v4, %v4854_v11  ;;  %v10138_v11 = vpack.c.bf16 %v15002_v34, %v15001_v31  ;;  %v15003_v4 = vand.u32 4294901760, %v13675_v50  ;;  %v15009_v50 = vand.u32 4294901760, %v13724_v47  ;;  %v13970_v47 = vld [vmem:[#allocation12 + $0x10] sm:$0xff] }
 0x5f2   : > { %10037 = vmatpush3.bf16.msra.mxu1 %v13652_v24  ;;  %8621 = vmatprep.mubr.f32.mxu1 %v4835_v38  ;;  %v4845_v27 = vand.u32 4294901760, %v4844_v58  ;;  %v14999_v24 = vand.u32 4294901760, %v13646_v45  ;;  %v5518_v58 = vld [vmem:[#allocation12 + $0x70] sm:$0xff] }
 0x5f3   : > { %10039 = vmatprep.subr.bf16.mxu1 %v13667_v33  ;;  %v10142_v45 = vpack.c.bf16 %v15004_v9, %v15003_v4 }
 0x5f5   : > { %8622 = vmatmul.mubr.f32.gmra.mrb[6].mxu1 %v4845_v27  ;;  %v5516_v27 = vld [vmem:[#allocation12 + $0x60] sm:$0xff] }
 0x5f6   : > { %10041 = vmatpush3.bf16.msra.mxu1 %v13667_v33  ;;  %8656 = vmatprep.mubr.f32.mxu1 %v13807_v5  ;;  %v10134_v33 = vpack.c.bf16 %v14999_v24, %v4868_v0  ;;  %v15005_v0 = vand.u32 4294901760, %v13687_v43  ;;  %v15011_v43 = vand.u32 4294901760, %v13741_v13  ;;  %v13980_v13 = vld [vmem:[#allocation12 + $0x20] sm:$0xff]  ;;  %v5570_v24 = vand.u32 4294901760, %v5518_v58 }
 0x5f7   : > { %10043 = vmatprep.subr.bf16.mxu1 %v13681_v23  ;;  %v5540_v18 = vand.u32 4294901760, %v13980_v13 }
 0x5f8   : > { %v10146_v30 = vpack.c.bf16 %v15006_v41, %v15005_v0 }
 0x5fa   : > { %10045 = vmatpush3.bf16.msra.mxu1 %v13681_v23  ;;  %v15000_v23 = vand.u32 4294901760, %v13830_v26 }
 0x5fb   : > { %10047 = vmatprep.subr.bf16.mxu1 %v13709_v22 }
 0x5fe   : > { %10049 = vmatpush3.bf16.msra.mxu1 %v13709_v22  ;;  %v15008_v22 = vand.u32 4294901760, %v13707_v46 }
 0x5ff   : > { %10051 = vmatprep.subr.bf16.mxu1 %v13713_v48 }
 0x602   : > { %10053 = vmatpush3.bf16.msra.mxu1 %v13713_v48 }
 0x603   : > { %10055 = vmatprep.subr.bf16.mxu1 %v13733_v37 }
 0x606   : > { %10057 = vmatpush3.bf16.msra.mxu1 %v13733_v37  ;;  %v10154_v37 = vpack.c.bf16 %v15010_v39, %v15009_v50 }
 0x607   : > { %10059 = vmatprep.subr.bf16.mxu1 %v13759_v16 }
 0x60a   : > { %10061 = vmatpush3.bf16.msra.mxu1 %v13759_v16  ;;  %v10158_v16 = vpack.c.bf16 %v15012_v12, %v15011_v43 }
 0x60b   : > { %10063 = vmatprep.subr.bf16.mxu1 %v13761_v57 }
 0x60e   : > { %10065 = vmatpush3.bf16.msra.mxu1 %v13761_v57 }
 0x60f   : > { %10067 = vmatprep.subr.bf16.mxu1 %v13765_v56 }
 0x611   : > { %8657 = vmatmul.mubr.f32.vlgmr.msra.gmra.mrb[4].mxu1 %v13823_v8 }
 0x612   : > { %8659 = vmatprep.mubr.f32.mxu1 %v13820_v49  ;;  %10069 = vmatpush3.bf16.msra.mxu1 %v13765_v56  ;;  %v13994_v56 = vld [vmem:[#allocation12 + $0x30] sm:$0xff] }
 0x613   : > { %10071 = vmatprep.subr.bf16.mxu1 %v13769_v36 }
 0x615   : > { %8660 = vmatmul.mubr.f32.gmra.mrb[6].mxu1 %v13840_v51 }
 0x616   : > { %10073 = vmatpush3.bf16.msra.mxu1 %v13769_v36  ;;  %8694 = vmatprep.mubr.f32.mxu1 %v13812_v2  ;;  %v13996_v36 = vld [vmem:[#allocation12 + $0x38] sm:$0xff] }
 0x617   : > { %10075 = vmatprep.subr.bf16.mxu1 %v13773_v59 }
 0x61a   : > { %10077 = vmatpush3.bf16.msra.mxu1 %v13773_v59  ;;  %v5546_v59 = vand.u32 4294901760, %v13994_v56 }
 0x61b   : > { %10079 = vmatprep.subr.bf16.mxu1 %v13777_v55 }
 0x61e   : > { %10081 = vmatpush3.bf16.msra.mxu1 %v13777_v55  ;;  %v5549_v55 = vand.u32 4294901760, %v13996_v36 }
 0x61f   : > { %10083 = vmatprep.subr.bf16.mxu1 %v13781_v20 }
 0x622   : > { %10085 = vmatpush3.bf16.msra.mxu1 %v13781_v20  ;;  %v14017_v20 = vpack.c.bf16 %v5549_v55, %v5546_v59 }
 0x623   : > { %10087 = vmatprep.subr.bf16.mxu1 %v13785_v42 }
 0x626   : > { %10089 = vmatpush3.bf16.msra.mxu1 %v13785_v42  ;;  %v5512_v42 = vld [vmem:[#allocation12 + $0x40] sm:$0xff] }
 0x627   : > { %10091 = vmatprep.subr.bf16.mxu1 %v13789_v60 }
 0x62a   : > { %10093 = vmatpush3.bf16.msra.mxu1 %v13789_v60  ;;  %v5513_v60 = vld [vmem:[#allocation12 + $0x48] sm:$0xff] }
 0x62b   : > { %10095 = vmatprep.subr.bf16.mxu1 %v13793_v61 }
 0x62e   : > { %10097 = vmatpush3.bf16.msra.mxu1 %v13793_v61  ;;  %v5552_v61 = vand.u32 4294901760, %v5512_v42 }
 0x62f   : > { %10099 = vmatprep.subr.bf16.mxu1 %v13570_v15 }
 0x630   : > { %v14053_v41 = vsub.f32 %v5512_v42, %v5552_v61 }
 0x631   : > { %8695 = vmatmul.mubr.f32.vlgmr.msra.gmra.mrb[4].mxu1 %v13836_v29 }
 0x632   : > { %8697 = vmatprep.mubr.f32.mxu1 %v13830_v26  ;;  %10101 = vmatpush3.bf16.msra.mxu1 %v13570_v15 }
 0x633   : > { %10103 = vmatprep.subr.bf16.mxu1 %v13574_v32 }
 0x635   : > { %8698 = vmatmul.mubr.f32.gmra.mrb[6].mxu1 %v13848_v21 }
 0x636   : > { %10105 = vmatpush3.bf16.msra.mxu1 %v13574_v32  ;;  %8732 = vmatprep.mubr.f32.mxu1 %v4813_v10  ;;  %v5514_v10 = vld [vmem:[#allocation12 + $0x50] sm:$0xff] }
 0x637   : > { %10107 = vmatprep.subr.bf16.mxu1 %v13578_v40 }
 0x63a   : > { %10109 = vmatpush3.bf16.msra.mxu1 %v13578_v40 }
 0x63b   : > { %10111 = vmatprep.subr.bf16.mxu1 %v13582_v54 }
 0x63e   : > { %10113 = vmatpush3.bf16.msra.mxu1 %v13582_v54 }
 0x63f   : > { %10115 = vmatprep.subr.bf16.mxu1 %v13592_v62 }
 0x642   : > { %10117 = vmatpush3.bf16.msra.mxu1 %v13592_v62 }
 0x643   : > { %10119 = vmatprep.subr.bf16.mxu1 %v13602_v7 }
 0x646   : > { %10121 = vmatpush3.bf16.msra.mxu1 %v13602_v7 }
 0x647   : > { %10123 = vmatprep.subr.bf16.mxu1 %v13616_v14 }
 0x64a   : > { %10125 = vmatpush3.bf16.msra.mxu1 %v13616_v14 }
 0x64b   : > { %10127 = vmatprep.subr.bf16.mxu1 %v13636_v53 }
 0x64e   : > { %10129 = vmatpush3.bf16.msra.mxu1 %v13636_v53 }
 0x64f   : > { %10131 = vmatprep.subr.bf16.mxu1 %v10130_v63 }
 0x651   : > { %8733 = vmatmul.mubr.f32.vlgmr.msra.gmra.mrb[4].mxu1 %v4823_v35  ;;  %v5564_v35 = vand.u32 4294901760, %v5516_v27 }
 0x652   : > { %8735 = vmatprep.mubr.f32.mxu1 %v15000_v23  ;;  %10133 = vmatpush3.bf16.msra.mxu1 %v10130_v63  ;;  %v5519_v63 = vld [vmem:[#allocation12 + $0x78] sm:$0xff] }
 0x653   : > { %10135 = vmatprep.subr.bf16.mxu1 %v10134_v33  ;;  %v14079_v42 = vsub.f32 %v5516_v27, %v5564_v35 }
 0x655   : > { %8736 = vmatmul.mubr.f32.gmra.mrb[6].mxu1 %v4843_v6  ;;  %v15007_v6 = vand.u32 4294901760, %v13704_v3  ;;  %v5505_v3 = vld [vmem:[#allocation12 + $0x8] sm:$0xff] }
 0x656   : > { %10137 = vmatpush3.bf16.msra.mxu1 %v10134_v33  ;;  %8770 = vmatprep.mubr.f32.mxu1 %v13807_v5  ;;  %v5531_v46 = vand.u32 4294901760, %v5505_v3  ;;  %v5573_v33 = vand.u32 4294901760, %v5519_v63 }
 0x657   : > { %10139 = vmatprep.subr.bf16.mxu1 %v10138_v11  ;;  %v10150_v48 = vpack.c.bf16 %v15008_v22, %v15007_v6  ;;  %v14666_v6 = vand.u32 4294901760, %v14053_v41 }
 0x658   : > { %v14034_v38 = vsub.f32 %v5505_v3, %v5531_v46  ;;  %v14040_v34 = vpack.c.bf16 %v5573_v33, %v5570_v24 }
 0x65a   : > { %10141 = vmatpush3.bf16.msra.mxu1 %v10138_v11  ;;  %v14672_v31 = vand.u32 4294901760, %v14034_v38 }
 0x65b   : > { %10143 = vmatprep.subr.bf16.mxu1 %v10142_v45 }
 0x65c   : > { %v5659_v4 = vsub.f32 %v14034_v38, %v14672_v31 }
 0x65e   : > { %10145 = vmatpush3.bf16.msra.mxu1 %v10142_v45  ;;  %v5660_v45 = vand.u32 4294901760, %v5659_v4  ;;  %v14092_v4 = vsub.f32 %v5519_v63, %v5573_v33 }
 0x65f   : > { %10147 = vmatprep.subr.bf16.mxu1 %v10146_v30 }
 0x662   : > { %10149 = vmatpush3.bf16.msra.mxu1 %v10146_v30 }
 0x663   : > { %10151 = vmatprep.subr.bf16.mxu1 %v10150_v48 }
 0x666   : > { %10153 = vmatpush3.bf16.msra.mxu1 %v10150_v48  ;;  %v5708_v48 = vsub.f32 %v14053_v41, %v14666_v6 }
 0x667   : > { %10155 = vmatprep.subr.bf16.mxu1 %v10154_v37 }
 0x668   : > { %v5709_v43 = vand.u32 4294901760, %v5708_v48 }
 0x66a   : > { %10157 = vmatpush3.bf16.msra.mxu1 %v10154_v37 }
 0x66b   : > { %10159 = vmatprep.subr.bf16.mxu1 %v10158_v16 }
 0x66e   : > { %10161 = vmatpush3.bf16.msra.mxu1 %v10158_v16 }
 0x66f   : > { %10163 = vmatprep.subr.bf16.mxu1 %v13570_v15 }
 0x671   : > { %8771 = vmatmul.mubr.f32.vlgmr.msra.gmra.mrb[4].mxu1 %v13823_v8 }
 0x672   : > { %8773 = vmatprep.mubr.f32.mxu1 %v13820_v49  ;;  %10165 = vmatpush3.bf16.msra.mxu1 %v13570_v15  ;;  %v5504_v15 = vld [vmem:[#allocation12] sm:$0xff] }
 0x673   : > { %10167 = vmatprep.subr.bf16.mxu1 %v13574_v32 }
 0x675   : > { %8774 = vmatmul.mubr.f32.gmra.mrb[6].mxu1 %v13840_v51 }
 0x676   : > { %10169 = vmatpush3.bf16.msra.mxu1 %v13574_v32  ;;  %8808 = vmatprep.mubr.f32.mxu1 %v13807_v5  ;;  %v5528_v32 = vand.u32 4294901760, %v5504_v15  ;;  %v5555_v5 = vand.u32 4294901760, %v5513_v60 }
 0x677   : > { %10171 = vmatprep.subr.bf16.mxu1 %v13578_v40 }
 0x678   : > { %v14022_v2 = vpack.c.bf16 %v5555_v5, %v5552_v61  ;;  %v14032_v28 = vsub.f32 %v5504_v15, %v5528_v32  ;;  %v14055_v30 = vsub.f32 %v5513_v60, %v5555_v5 }
 0x67a   : > { %10173 = vmatpush3.bf16.msra.mxu1 %v13578_v40  ;;  %v13972_v40 = vld [vmem:[#allocation12 + $0x18] sm:$0xff]  ;;  %v14673_v23 = vand.u32 4294901760, %v14032_v28  ;;  %v14665_v22 = vand.u32 4294901760, %v14055_v30 }
 0x67b   : > { %10175 = vmatprep.subr.bf16.mxu1 %v13582_v54  ;;  %v5537_v19 = vand.u32 4294901760, %v13972_v40 }
 0x67c   : > { %v5652_v11 = vsub.f32 %v14032_v28, %v14673_v23  ;;  %v5715_v50 = vsub.f32 %v14055_v30, %v14665_v22 }
 0x67e   : > { %10177 = vmatpush3.bf16.msra.mxu1 %v13582_v54  ;;  %v13976_v54 = vpack.c.bf16 %v5531_v46, %v5528_v32  ;;  %v5653_v9 = vand.u32 4294901760, %v5652_v11  ;;  %v5716_v12 = vand.u32 4294901760, %v5715_v50  ;;  %v14090_v11 = vsub.f32 %v5518_v58, %v5570_v24 }
 0x67f   : > { %10179 = vmatprep.subr.bf16.mxu1 %v13592_v62  ;;  %v14111_v50 = vpack.c.bf16 %v14034_v38, %v14032_v28 }
 0x680   : > { %v14050_v0 = vpack.c.bf16 %v5660_v45, %v5653_v9  ;;  %v14071_v3 = vpack.c.bf16 %v5716_v12, %v5709_v43  ;;  %v14115_v43 = vpack.c.bf16 %v14055_v30, %v14053_v41 }
 0x682   : > { %10181 = vmatpush3.bf16.msra.mxu1 %v13592_v62  ;;  %v5534_v62 = vand.u32 4294901760, %v13970_v47 }
 0x683   : > { %10183 = vmatprep.subr.bf16.mxu1 %v13602_v7 }
 0x686   : > { %10185 = vmatpush3.bf16.msra.mxu1 %v13602_v7  ;;  %v13982_v7 = vld [vmem:[#allocation12 + $0x28] sm:$0xff] }
 0x687   : > { %10187 = vmatprep.subr.bf16.mxu1 %v13616_v14  ;;  %v5543_v57 = vand.u32 4294901760, %v13982_v7 }
 0x68a   : > { %10189 = vmatpush3.bf16.msra.mxu1 %v13616_v14  ;;  %v13990_v14 = vpack.c.bf16 %v5537_v19, %v5534_v62 }
 0x68b   : > { %10191 = vmatprep.subr.bf16.mxu1 %v13636_v53 }
 0x68e   : > { %10193 = vmatpush3.bf16.msra.mxu1 %v13636_v53  ;;  %v14006_v53 = vpack.c.bf16 %v5543_v57, %v5540_v18 }
 0x68f   : > { %10195 = vmatprep.subr.bf16.mxu1 %v13976_v54 }
 0x691   : > { %8809 = vmatmul.mubr.f32.vlgmr.msra.gmra.mrb[4].mxu1 %v13823_v8  ;;  %v5558_v8 = vand.u32 4294901760, %v5514_v10 }
 0x692   : > { %8811 = vmatprep.mubr.f32.mxu1 %v13820_v49  ;;  %10197 = vmatpush3.bf16.msra.mxu1 %v13976_v54  ;;  %v5515_v49 = vld [vmem:[#allocation12 + $0x58] sm:$0xff] }
 0x693   : > { %10199 = vmatprep.subr.bf16.mxu1 %v13990_v14  ;;  %v5561_v26 = vand.u32 4294901760, %v5515_v49  ;;  %v14065_v39 = vsub.f32 %v5514_v10, %v5558_v8  ;;  %v14662_v10 = vand.u32 4294901760, %v14079_v42 }
 0x695   : > { %8812 = vmatmul.mubr.f32.gmra.mrb[6].mxu1 %v13840_v51  ;;  %v14026_v29 = vpack.c.bf16 %v5561_v26, %v5558_v8  ;;  %v5517_v51 = vld [vmem:[#allocation12 + $0x68] sm:$0xff]  ;;  %v14067_v37 = vsub.f32 %v5515_v49, %v5561_v26  ;;  %v14664_v16 = vand.u32 4294901760, %v14065_v39  ;;  %v5736_v26 = vsub.f32 %v14079_v42, %v14662_v10 }
 0x696   : > { %10201 = vmatpush3.bf16.msra.mxu1 %v13990_v14  ;;  %v5567_v17 = vand.u32 4294901760, %v5517_v51  ;;  %v14177_v10 = vsub.f32 %v13996_v36, %v5549_v55 }
 0x697   : > { %10203 = vmatprep.subr.bf16.mxu1 %v14006_v53  ;;  %v14663_v15 = vand.u32 4294901760, %v14067_v37  ;;  %v5722_v32 = vsub.f32 %v14065_v39, %v14664_v16  ;;  %v14119_v12 = vpack.c.bf16 %v14067_v37, %v14065_v39 }
 0x698   : > { %v14030_v21 = vpack.c.bf16 %v5567_v17, %v5564_v35  ;;  %v14081_v60 = vsub.f32 %v5517_v51, %v5567_v17  ;;  %v5737_v51 = vand.u32 4294901760, %v5736_v26  ;;  %v14660_v35 = vand.u32 4294901760, %v14090_v11  ;;  %v6590_v26 = vld [vmem:[%s15013_s3] ss:$0 sm:$0xff] }
 0x699   : > { %v5729_v46 = vsub.f32 %v14067_v37, %v14663_v15  ;;  %v5723_v61 = vand.u32 4294901760, %v5722_v32  ;;  %v14659_v17 = vand.u32 4294901760, %v14092_v4 }
 0x69a   : > { %10205 = vmatpush3.bf16.msra.mxu1 %v14006_v53  ;;  %v14661_v49 = vand.u32 4294901760, %v14081_v60  ;;  %v5750_v45 = vsub.f32 %v14090_v11, %v14660_v35  ;;  %v14123_v32 = vpack.c.bf16 %v14081_v60, %v14079_v42 }
 0x69b   : > { %10207 = vmatprep.subr.bf16.mxu1 %v14017_v20  ;;  %v5730_v5 = vand.u32 4294901760, %v5729_v46  ;;  %v5757_v58 = vsub.f32 %v14092_v4, %v14659_v17  ;;  %v14127_v46 = vpack.c.bf16 %v14092_v4, %v14090_v11 }
 0x69c   : > { %v5743_v27 = vsub.f32 %v14081_v60, %v14661_v49  ;;  %v5751_v24 = vand.u32 4294901760, %v5750_v45 }
 0x69d   : > { %v14085_v8 = vpack.c.bf16 %v5730_v5, %v5723_v61  ;;  %v5758_v33 = vand.u32 4294901760, %v5757_v58  ;;  %v14132_v61 = vsub.f32 %v13970_v47, %v5534_v62  ;;  %v14137_v5 = vsub.f32 %v13972_v40, %v5537_v19 }
 0x69e   : > { %10209 = vmatpush3.bf16.msra.mxu1 %v14017_v20  ;;  %v5744_v9 = vand.u32 4294901760, %v5743_v27  ;;  %v14147_v47 = vsub.f32 %v13980_v13, %v5540_v18  ;;  %v14152_v40 = vsub.f32 %v13982_v7, %v5543_v57 }
 0x69f   : > { %10211 = vmatprep.subr.bf16.mxu1 %v14022_v2  ;;  %v14107_v48 = vpack.c.bf16 %v5758_v33, %v5751_v24  ;;  %v14671_v45 = vand.u32 4294901760, %v14132_v61  ;;  %v14669_v58 = vand.u32 4294901760, %v14137_v5 }
 0x6a0   : > { %v14105_v63 = vpack.c.bf16 %v5744_v9, %v5737_v51  ;;  %v14667_v7 = vand.u32 4294901760, %v14147_v47  ;;  %v14668_v57 = vand.u32 4294901760, %v14152_v40 }
 0x6a1   : > { %v5673_v13 = vsub.f32 %v14137_v5, %v14669_v58 }
 0x6a2   : > { %10213 = vmatpush3.bf16.msra.mxu1 %v14022_v2  ;;  %v5687_v36 = vsub.f32 %v14152_v40, %v14668_v57 }
 0x6a3   : > { %10215 = vmatprep.subr.bf16.mxu1 %v14026_v29 }
 0x6a6   : > { %10217 = vmatpush3.bf16.msra.mxu1 %v14026_v29 }
 0x6a7   : > { %10219 = vmatprep.subr.bf16.mxu1 %v14030_v21 }
 0x6aa   : > { %10221 = vmatpush3.bf16.msra.mxu1 %v14030_v21 }
 0x6ab   : > { %10223 = vmatprep.subr.bf16.mxu1 %v14040_v34 }
 0x6ae   : > { %10225 = vmatpush3.bf16.msra.mxu1 %v14040_v34 }
 0x6af   : > { %10227 = vmatprep.subr.bf16.mxu1 %v14050_v0 }
 0x764   : > { %v8810_v27 = vpop.f32.mrb[4].mxu1 }
 0x765   : > { %v10390_v51 = vadd.f32 %v8810_v27, %v6590_v26  ;;  %v5478_v9 = vpop.f32.mrb[5].mxu1 }
 0x766   : > { %v10391_v24 = vadd.f32 %v6590_v26, %v5478_v9  ;;  %v5666_v9 = vsub.f32 %v14132_v61, %v14671_v45 }
 0x767   : > { %v5501_v62 = vmax.f32 %v10390_v51, 0.0 }
 0x768   : > { %v5500_v19 = vmax.f32 %v10391_v24, 0.0  ;;  %v8813_v33 = vpop.f32.mrb[6].mxu1 }
 0x769   : > { %v14154_v27 = vand.u32 4294901760, %v5501_v62  ;;  %v10392_v17 = vadd.f32 %v8813_v33, %v6590_v26  ;;  %v5490_v35 = vpop.f32.mrb[7].mxu1  ;;  %v14172_v33 = vsub.f32 %v13994_v56, %v5546_v59  ;;  %v5680_v59 = vsub.f32 %v14147_v47, %v14667_v7 }
 0x76a   : > { %v14162_v18 = vand.u32 4294901760, %v5500_v19  ;;  %v10393_v49 = vadd.f32 %v6590_v26, %v5490_v35 }
 0x76b   : > { %v14167_v51 = vsub.f32 %v5501_v62, %v14154_v27  ;;  %v5503_v24 = vmax.f32 %v10392_v17, 0.0  ;;  %v5667_v62 = vand.u32 4294901760, %v5666_v9  ;;  %v5674_v17 = vand.u32 4294901760, %v5673_v13 }
 0x76c   : > { %v14180_v35 = vsub.f32 %v5500_v19, %v14162_v18  ;;  %v5502_v26 = vmax.f32 %v10393_v49, 0.0  ;;  %v5693_v19 = vand.u32 4294901760, %v14172_v33  ;;  %v5700_v9 = vand.u32 4294901760, %v14177_v10 }
 0x76d   : > { %v14670_v15 = vand.u32 4294901760, %v14167_v51  ;;  %v14183_v16 = vand.u32 4294901760, %v5503_v24  ;;  %v10230_v7 = vpack.c.bf16 %v5674_v17, %v5667_v62  ;;  %v5681_v45 = vand.u32 4294901760, %v5680_v59 }
 0x76e   : > { %v14185_v22 = vand.u32 4294901760, %v5502_v26  ;;  %v5610_v56 = vand.u32 4294901760, %v14180_v35  ;;  %v5701_v62 = vsub.f32 %v14177_v10, %v5700_v9 }
 0x76f   : > { %v5621_v55 = vsub.f32 %v14167_v51, %v14670_v15  ;;  %v14198_v49 = vsub.f32 %v5503_v24, %v14183_v16  ;;  %v5688_v24 = vand.u32 4294901760, %v5687_v36 }
 0x770   : > { %v14203_v13 = vsub.f32 %v5502_v26, %v14185_v22  ;;  %v5611_v6 = vsub.f32 %v14180_v35, %v5610_v56  ;;  %v5694_v26 = vsub.f32 %v14172_v33, %v5693_v19 }
 0x771   : > { %v14674_v57 = vand.u32 4294901760, %v14198_v49  ;;  %v5622_v31 = vand.u32 4294901760, %v5621_v55  ;;  %v10234_v36 = vpack.c.bf16 %v5688_v24, %v5681_v45 }
 0x772   : > { %v5612_v58 = vand.u32 4294901760, %v5611_v6  ;;  %v5630_v15 = vand.u32 4294901760, %v14203_v13  ;;  %v5695_v55 = vand.u32 4294901760, %v5694_v26 }
 0x773   : > { %v5641_v23 = vsub.f32 %v14198_v49, %v14674_v57  ;;  %v5702_v57 = vand.u32 4294901760, %v5701_v62 }
 0x774   : > { %8846 = vmatprep.mubr.f32.mxu1 %v5612_v58  ;;  %v5631_v6 = vsub.f32 %v14203_v13, %v5630_v15 }
 0x775   : > { %8847 = vmatmul.mubr.f32.vlgmr.msra.gmra.mrb[8].mxu1 %v5622_v31  ;;  %v5642_v59 = vand.u32 4294901760, %v5641_v23  ;;  %v10238_v58 = vpack.c.bf16 %v5702_v57, %v5695_v55  ;;  %v10262_v23 = vpack.c.bf16 %v14137_v5, %v14132_v61  ;;  %v10266_v31 = vpack.c.bf16 %v14152_v40, %v14147_v47 }
 0x776   : > { %10229 = vmatpush3.bf16.msra.mxu1 %v14050_v0  ;;  %v5632_v17 = vand.u32 4294901760, %v5631_v6  ;;  %v10270_v0 = vpack.c.bf16 %v14177_v10, %v14172_v33  ;;  %v15026_v57 = vand.u32 4294901760, %v14079_v42  ;;  %v15027_v10 = vand.u32 4294901760, %v14081_v60 }
 0x777   : > { %10231 = vmatprep.subr.bf16.mxu1 %v10230_v7 }
 0x778   : > { %8849 = vmatprep.mubr.f32.mxu1 %v5632_v17 }
 0x779   : > { %8850 = vmatmul.mubr.f32.gmra.mrb[10].mxu1 %v5642_v59 }
 0x77a   : > { %10233 = vmatpush3.bf16.msra.mxu1 %v10230_v7  ;;  %8884 = vmatprep.mubr.f32.mxu1 %v14162_v18 }
 0x77b   : > { %10235 = vmatprep.subr.bf16.mxu1 %v10234_v36 }
 0x77e   : > { %10237 = vmatpush3.bf16.msra.mxu1 %v10234_v36 }
 0x77f   : > { %10239 = vmatprep.subr.bf16.mxu1 %v10238_v58 }
 0x782   : > { %10241 = vmatpush3.bf16.msra.mxu1 %v10238_v58 }
 0x783   : > { %10243 = vmatprep.subr.bf16.mxu1 %v14071_v3 }
 0x786   : > { %10245 = vmatpush3.bf16.msra.mxu1 %v14071_v3  ;;  %v15014_v3 = vand.u32 4294901760, %v14032_v28  ;;  %v15019_v28 = vand.u32 4294901760, %v14147_v47  ;;  %v15024_v47 = vand.u32 4294901760, %v14065_v39 }
 0x787   : > { %10247 = vmatprep.subr.bf16.mxu1 %v14085_v8 }
 0x78a   : > { %10249 = vmatpush3.bf16.msra.mxu1 %v14085_v8  ;;  %v15015_v8 = vand.u32 4294901760, %v14034_v38  ;;  %v15020_v38 = vand.u32 4294901760, %v14152_v40  ;;  %v15025_v40 = vand.u32 4294901760, %v14067_v37 }
 0x78b   : > { %10251 = vmatprep.subr.bf16.mxu1 %v14105_v63 }
 0x78c   : > { %v10342_v7 = vpack.c.bf16 %v15025_v40, %v15024_v47 }
 0x78e   : > { %10253 = vmatpush3.bf16.msra.mxu1 %v14105_v63  ;;  %v10322_v63 = vpack.c.bf16 %v15015_v8, %v15014_v3 }
 0x78f   : > { %10255 = vmatprep.subr.bf16.mxu1 %v14107_v48 }
 0x792   : > { %10257 = vmatpush3.bf16.msra.mxu1 %v14107_v48  ;;  %v15016_v48 = vand.u32 4294901760, %v14132_v61  ;;  %v10334_v61 = vpack.c.bf16 %v5700_v9, %v5693_v19 }
 0x793   : > { %10259 = vmatprep.subr.bf16.mxu1 %v14111_v50 }
 0x795   : > { %8885 = vmatmul.mubr.f32.vlgmr.msra.gmra.mrb[8].mxu1 %v14154_v27 }
 0x796   : > { %8887 = vmatprep.mubr.f32.mxu1 %v14185_v22  ;;  %10261 = vmatpush3.bf16.msra.mxu1 %v14111_v50  ;;  %v15017_v50 = vand.u32 4294901760, %v14137_v5  ;;  %v15023_v5 = vand.u32 4294901760, %v14055_v30  ;;  %v15029_v30 = vand.u32 4294901760, %v14092_v4 }
 0x797   : > { %10263 = vmatprep.subr.bf16.mxu1 %v10262_v23 }
 0x799   : > { %8888 = vmatmul.mubr.f32.gmra.mrb[10].mxu1 %v14183_v16 }
 0x79a   : > { %10265 = vmatpush3.bf16.msra.mxu1 %v10262_v23  ;;  %8922 = vmatprep.mubr.f32.mxu1 %v14180_v35 }
 0x79b   : > { %10267 = vmatprep.subr.bf16.mxu1 %v10266_v31 }
 0x79e   : > { %10269 = vmatpush3.bf16.msra.mxu1 %v10266_v31 }
 0x79f   : > { %10271 = vmatprep.subr.bf16.mxu1 %v10270_v0 }
 0x7a2   : > { %10273 = vmatpush3.bf16.msra.mxu1 %v10270_v0 }
 0x7a3   : > { %10275 = vmatprep.subr.bf16.mxu1 %v14115_v43 }
 0x7a6   : > { %10277 = vmatpush3.bf16.msra.mxu1 %v14115_v43  ;;  %v10326_v43 = vpack.c.bf16 %v15017_v50, %v15016_v48 }
 0x7a7   : > { %10279 = vmatprep.subr.bf16.mxu1 %v14119_v12 }
 0x7aa   : > { %10281 = vmatpush3.bf16.msra.mxu1 %v14119_v12  ;;  %v15018_v12 = vand.u32 4294901760, %v14167_v51 }
 0x7ab   : > { %10283 = vmatprep.subr.bf16.mxu1 %v14123_v32 }
 0x7ae   : > { %10285 = vmatpush3.bf16.msra.mxu1 %v14123_v32  ;;  %v10330_v32 = vpack.c.bf16 %v15020_v38, %v15019_v28 }
 0x7af   : > { %10287 = vmatprep.subr.bf16.mxu1 %v14127_v46 }
 0x7b2   : > { %10289 = vmatpush3.bf16.msra.mxu1 %v14127_v46  ;;  %v15021_v46 = vand.u32 4294901760, %v14198_v49 }
 0x7b3   : > { %10291 = vmatprep.subr.bf16.mxu1 %v13976_v54 }
 0x7b5   : > { %8923 = vmatmul.mubr.f32.vlgmr.msra.gmra.mrb[8].mxu1 %v14167_v51  ;;  %v10346_v51 = vpack.c.bf16 %v15027_v10, %v15026_v57 }
 0x7b6   : > { %8925 = vmatprep.mubr.f32.mxu1 %v14203_v13  ;;  %10293 = vmatpush3.bf16.msra.mxu1 %v13976_v54 }
 0x7b7   : > { %10295 = vmatprep.subr.bf16.mxu1 %v13990_v14 }
 0x7b9   : > { %8926 = vmatmul.mubr.f32.gmra.mrb[10].mxu1 %v14198_v49 }
 0x7ba   : > { %10297 = vmatpush3.bf16.msra.mxu1 %v13990_v14  ;;  %8960 = vmatprep.mubr.f32.mxu1 %v5610_v56 }
 0x7bb   : > { %10299 = vmatprep.subr.bf16.mxu1 %v14006_v53 }
 0x7be   : > { %10301 = vmatpush3.bf16.msra.mxu1 %v14006_v53 }
 0x7bf   : > { %10303 = vmatprep.subr.bf16.mxu1 %v14017_v20 }
 0x7c2   : > { %10305 = vmatpush3.bf16.msra.mxu1 %v14017_v20 }
 0x7c3   : > { %10307 = vmatprep.subr.bf16.mxu1 %v14022_v2 }
 0x7c6   : > { %10309 = vmatpush3.bf16.msra.mxu1 %v14022_v2 }
 0x7c7   : > { %10311 = vmatprep.subr.bf16.mxu1 %v14026_v29 }
 0x7ca   : > { %10313 = vmatpush3.bf16.msra.mxu1 %v14026_v29 }
 0x7cb   : > { %10315 = vmatprep.subr.bf16.mxu1 %v14030_v21 }
 0x7ce   : > { %10317 = vmatpush3.bf16.msra.mxu1 %v14030_v21 }
 0x7cf   : > { %10319 = vmatprep.subr.bf16.mxu1 %v14040_v34 }
 0x7d2   : > { %10321 = vmatpush3.bf16.msra.mxu1 %v14040_v34 }
 0x7d3   : > { %10323 = vmatprep.subr.bf16.mxu1 %v10322_v63 }
 0x7d5   : > { %8961 = vmatmul.mubr.f32.vlgmr.msra.gmra.mrb[8].mxu1 %v15018_v12 }
 0x7d6   : > { %8963 = vmatprep.mubr.f32.mxu1 %v5630_v15  ;;  %10325 = vmatpush3.bf16.msra.mxu1 %v10322_v63  ;;  %v15022_v15 = vand.u32 4294901760, %v14053_v41  ;;  %v15028_v41 = vand.u32 4294901760, %v14090_v11  ;;  %v6592_v63 = vld [vmem:[%s15032_s5] ss:$0 sm:$0xff] }
 0x7d7   : > { %10327 = vmatprep.subr.bf16.mxu1 %v10326_v43 }
 0x7d8   : > { %v10338_v45 = vpack.c.bf16 %v15023_v5, %v15022_v15  ;;  %v10350_v33 = vpack.c.bf16 %v15029_v30, %v15028_v41 }
 0x7d9   : > { %8964 = vmatmul.mubr.f32.gmra.mrb[10].mxu1 %v15021_v46 }
 0x7da   : > { %10329 = vmatpush3.bf16.msra.mxu1 %v10326_v43  ;;  %8998 = vmatprep.mubr.f32.mxu1 %v14162_v18  ;;  %v6593_v43 = vld [vmem:[%s15033_s1] ss:$0 sm:$0xff] }
 0x7db   : > { %10331 = vmatprep.subr.bf16.mxu1 %v10330_v32 }
 0x7de   : > { %10333 = vmatpush3.bf16.msra.mxu1 %v10330_v32 }
 0x7df   : > { %10335 = vmatprep.subr.bf16.mxu1 %v10334_v61 }
 0x7e2   : > { %10337 = vmatpush3.bf16.msra.mxu1 %v10334_v61 }
 0x7e3   : > { %10339 = vmatprep.subr.bf16.mxu1 %v10338_v45 }
 0x7e6   : > { %10341 = vmatpush3.bf16.msra.mxu1 %v10338_v45 }
 0x7e7   : > { %10343 = vmatprep.subr.bf16.mxu1 %v10342_v7 }
 0x7ea   : > { %10345 = vmatpush3.bf16.msra.mxu1 %v10342_v7 }
 0x7eb   : > { %10347 = vmatprep.subr.bf16.mxu1 %v10346_v51 }
 0x7ee   : > { %10349 = vmatpush3.bf16.msra.mxu1 %v10346_v51 }
 0x7ef   : > { %10351 = vmatprep.subr.bf16.mxu1 %v10350_v33 }
 0x7f2   : > { %10353 = vmatpush3.bf16.msra.mxu1 %v10350_v33 }
 0x7f3   : > { %10355 = vmatprep.subr.bf16.mxu1 %v13976_v54 }
 0x7f5   : > { %8999 = vmatmul.mubr.f32.vlgmr.msra.gmra.mrb[8].mxu1 %v14154_v27 }
 0x7f6   : > { %9001 = vmatprep.mubr.f32.mxu1 %v14185_v22  ;;  %10357 = vmatpush3.bf16.msra.mxu1 %v13976_v54  ;;  %v6591_v54 = vld [vmem:[%s15030_s27] ss:$0 sm:$0xff]  ;;  %s10921_s27 = scalar_lea.vmem %s14357_s12, 512 }
 0x7f7   : > { %10359 = vmatprep.subr.bf16.mxu1 %v13990_v14  ;;  %p10922_p5 = scmp.ne.s32.totalorder %s14357_s12, %s10921_s27  ;;  %p10929_p0 = scmp.lt.s32.totalorder %s10927_s20, %s10921_s27 }
 0x7f9   : > { %9002 = vmatmul.mubr.f32.gmra.mrb[10].mxu1 %v14183_v16  ;;  %p10923_p8 = pnand %p10922_p5, %p15035_p9  ;;  %p10930_p2 = por %p10929_p0, %p10928_p7 }
 0x7fa   : > { %10361 = vmatpush3.bf16.msra.mxu1 %v13990_v14  ;;  %9036 = vmatprep.mubr.f32.mxu1 %v14162_v18 }
 0x7fb   : > { %10363 = vmatprep.subr.bf16.mxu1 %v14006_v53  ;;  %p10924_p6 = pneg %p10923_p8 }
 0x7fd   : > { %p10931_p10 = pnand %p10930_p2, %p10924_p6 }
 0x7fe   : > { %10365 = vmatpush3.bf16.msra.mxu1 %v14006_v53 }
 0x7ff   : > { %10367 = vmatprep.subr.bf16.mxu1 %v14017_v20 }
 0x802   : > { %10369 = vmatpush3.bf16.msra.mxu1 %v14017_v20 }
 0x803   : > { %10371 = vmatprep.subr.bf16.mxu1 %v14022_v2 }
 0x806   : > { %10373 = vmatpush3.bf16.msra.mxu1 %v14022_v2 }
 0x807   : > { %10375 = vmatprep.subr.bf16.mxu1 %v14026_v29 }
 0x80a   : > { %10377 = vmatpush3.bf16.msra.mxu1 %v14026_v29 }
 0x80b   : > { %10379 = vmatprep.subr.bf16.mxu1 %v14030_v21 }
 0x80e   : > { %10381 = vmatpush3.bf16.msra.mxu1 %v14030_v21 }
 0x80f   : > { %10383 = vmatprep.subr.bf16.mxu1 %v14040_v34 }
 0x812   : > { %10385 = vmatpush3.bf16.msra.mxu1 %v14040_v34 }
 0x815   : > { %9037 = vmatmul.mubr.f32.vlgmr.msra.gmra.mrb[8].mxu1 %v14154_v27 }
 0x816   : > { %9039 = vmatprep.mubr.f32.mxu1 %v14185_v22 }
 0x819   : > { %9040 = vmatmul.mubr.f32.gmra.mrb[10].mxu1 %v14183_v16 }
 0x8e8   : > { %v9038_v14 = vpop.f32.mrb[8].mxu1 }
 0x8e9   : > { %v10394_v53 = vadd.f32 %v9038_v14, %v6591_v54  ;;  %v6275_v20 = vpop.f32.mrb[9].mxu1 }
 0x8ea   : > { %v10395_v2 = vadd.f32 %v6591_v54, %v6275_v20 }
 0x8eb   : > { %v6298_v29 = vadd.f32 %v10394_v53, %v13816_v1 }
 0x8ec   : > { %v9041_v21 = vpop.f32.mrb[10].mxu1  ;;  %v6297_v39 = vadd.f32 %v10395_v2, %v13803_v25 }
 0x8ed   : > { %v10396_v34 = vadd.f32 %v9041_v21, %v6591_v54  ;;  %6305 = vadd.xlane.f32.xlu1 %v6298_v29  ;;  %v6287_v37 = vpop.f32.mrb[11].mxu1 }
 0x8ee   : > { %v10397_v42 = vadd.f32 %v6591_v54, %v6287_v37  ;;  %6303 = vadd.xlane.f32.xlu0 %v6297_v39 }
 0x8ef   : > { %v6300_v22 = vadd.f32 %v10396_v34, %v13832_v52 }
 0x8f0   : > { %v6299_v16 = vadd.f32 %v10397_v42, %v13814_v44 }
 0x8f1   : > { %6309 = vadd.xlane.f32.xlu1 %v6300_v22 }
 0x8f2   : > { %6307 = vadd.xlane.f32.xlu0 %v6299_v16 }
 0x97a   : > { %v6306_v60 = vpop.xlane.xlu1 %6305 }
 0x97b   : > { %v6312_v11 = vmul.f32 0.0078125, %v6306_v60  ;;  %v6304_v4 = vpop.xlane.xlu0 %6303 }
 0x97c   : > { %v6311_v27 = vmul.f32 0.0078125, %v6304_v4 }
 0x97d   : > { %v6316_v18 = vsub.f32 %v6298_v29, %v6312_v11 }
 0x97e   : > { %v6315_v1 = vsub.f32 %v6297_v39, %v6311_v27  ;;  %v6310_v35 = vpop.xlane.xlu1 %6309 }
 0x97f   : > { %v6314_v56 = vmul.f32 0.0078125, %v6310_v35  ;;  %v6308_v25 = vpop.xlane.xlu0 %6307  ;;  %v6320_v49 = vmul.f32 %v6316_v18, %v6316_v18 }
 0x980   : > { %v6313_v19 = vmul.f32 0.0078125, %v6308_v25  ;;  %v6319_v9 = vmul.f32 %v6315_v1, %v6315_v1 }
 0x981   : > { %v6318_v13 = vsub.f32 %v6300_v22, %v6314_v56  ;;  %6325 = vadd.xlane.f32.xlu1 %v6320_v49 }
 0x982   : > { %v6317_v24 = vsub.f32 %v6299_v16, %v6313_v19  ;;  %6323 = vadd.xlane.f32.xlu0 %v6319_v9 }
 0x983   : > { %v6322_v52 = vmul.f32 %v6318_v13, %v6318_v13 }
 0x984   : > { %v6321_v44 = vmul.f32 %v6317_v24, %v6317_v24 }
 0x985   : > { %6329 = vadd.xlane.f32.xlu1 %v6322_v52 }
 0x986   : > { %6327 = vadd.xlane.f32.xlu0 %v6321_v44 }
 0xa0e   : > { %v6326_v26 = vpop.xlane.xlu1 %6325 }
 0xa0f   : > { %v6332_v62 = vmul.f32 0.0078125, %v6326_v26  ;;  %v6324_v6 = vpop.xlane.xlu0 %6323 }
 0xa10   : > { %v6331_v17 = vmul.f32 0.0078125, %v6324_v6 }
 0xa11   : > { %v6336_v59 = vadd.f32 1e-05, %v6332_v62 }
 0xa12   : > { %v6335_v36 = vadd.f32 1e-05, %v6331_v17  ;;  %v6330_v55 = vpop.xlane.xlu1 %6329 }
 0xa13   : > { %10735 = vrsqrt.f32 %v6336_v59  ;;  %v6334_v58 = vmul.f32 0.0078125, %v6330_v55  ;;  %v6328_v23 = vpop.xlane.xlu0 %6327 }
 0xa14   : > { %10737 = vrsqrt.f32 %v6335_v36  ;;  %v6333_v31 = vmul.f32 0.0078125, %v6328_v23 }
 0xa15   : > { %v6338_v0 = vadd.f32 1e-05, %v6334_v58 }
 0xa16   : > { %v6337_v3 = vadd.f32 1e-05, %v6333_v31 }
 0xa17   : > { %10739 = vrsqrt.f32 %v6338_v0 }
 0xa18   : > { %10741 = vrsqrt.f32 %v6337_v3 }
 0xa1d   : > { %v10736_v8 = vpop.eup %10735 }
 0xa1e   : > { %v10738_v48 = vpop.eup %10737  ;;  %v6344_v50 = vmul.f32 %v10736_v8, %v6316_v18 }
 0xa1f   : > { %v6343_v12 = vmul.f32 %v10738_v48, %v6315_v1 }
 0xa20   : > { %v6354_v28 = vmul.f32 %v6592_v63, %v6344_v50 }
 0xa21   : > { %v10740_v38 = vpop.eup %10739  ;;  %v6353_v32 = vmul.f32 %v6592_v63, %v6343_v12 }
 0xa22   : > { %v10742_v46 = vpop.eup %10741  ;;  %v6364_v61 = vadd.f32 %v6593_v43, %v6354_v28  ;;  %v6346_v15 = vmul.f32 %v10740_v38, %v6318_v13 }
 0xa23   : > { %v6363_v5 = vadd.f32 %v6593_v43, %v6353_v32  ;;  %v6345_v45 = vmul.f32 %v10742_v46, %v6317_v24 }
 0xa24   : > { %6368 = vst [vmem:[%s623_s0 + $0x8] sm:$0xff] %v6364_v61  ;;  %v6356_v47 = vmul.f32 %v6592_v63, %v6346_v15 }
 0xa25   : > { %6367 = vst [vmem:[%s623_s0] sm:$0xff] %v6363_v5  ;;  %v6355_v40 = vmul.f32 %v6592_v63, %v6345_v45 }
 0xa26   : > { %v6366_v7 = vadd.f32 %v6593_v43, %v6356_v47 }
 0xa27   : > { %v6365_v57 = vadd.f32 %v6593_v43, %v6355_v40 }
 0xa28   : > { %6370 = vst [vmem:[%s623_s0 + $0x18] sm:$0xff] %v6366_v7 }
 0xa29   : > { %6369 = vst [vmem:[%s623_s0 + $0x10] sm:$0xff] %v6365_v57 }
 0xa2a   : > { %10934 = shalt.err (!%p10931_p10)
}
 0xa2b   : > { %s10935_s5 = scalar_lea.hbm %s14355_s6, 512  ;;  %s10939_s8 = scalar_lea.hbm %s15034_s11, 2048 }
 0xa2c   : > { %p10936_p11 = scmp.ne.s32.totalorder %s14355_s6, %s10935_s5  ;;  %p10940_p13 = scmp.lt.u32.totalorder %s14355_s6, %s15034_s11 }
 0xa2d   : > { %p10941_p1 = scmp.lt.u32.totalorder %s10939_s8, %s10935_s5  ;;  %p10943_p5 = scmp.lt.u32.totalorder %s10935_s5, %s14355_s6 }
 0xa2e   : > { %p10937_p4 = pnand %p10936_p11, %p15035_p9 }
 0xa2f   : > { %p10942_p3 = por %p10941_p1, %p10940_p13 }
 0xa30   : > { %p10938_p12 = pneg %p10937_p4 }
 0xa31   : > { %p10944_p8 = por %p10943_p5, %p10942_p3 }
 0xa33   : > { %p10945_p6 = pnand %p10944_p8, %p10938_p12 }
 0xa35   : > { %10948 = shalt.err (!%p10945_p6)
}
 0xa36   : > { %s11094_s17 = smov 128   ;;  %s11095_s19 = smov 8  }
 0xa37   : > { %10568 = dma.vmem_to_hbm [thread:$0]  (%p15035_p9), %s14357_s12, 512, %s14355_s6, %s6372_s2, %s11094_s17, %s11094_s17, %s11095_s19  }
 0xa38 PF: > { %p10601_p7 = scmp.ge.s32.totalorder %s11083_s21, 2  ;;  %s6402_s0 = sand.u32 1, %s11055_s14  }
 0xa39   : > { %p15036_p0 = scmp.ne.s32.totalorder %s14722_s4, 0  ;;  %s6403_s28 = scalar_lea.sflag [#allocation5], %s6402_s0 }
 0xa3b   : > { %p10591_p2 = pnand %p10601_p7, %p15036_p0 }
 0xa3d   : > { %11026 = dma.done.wait (!%p10591_p2), %s6403_s28, 512  }
 0xa3e   : > { %11028 = vsyncadd (!%p10591_p2), %s6403_s28, 4294966784  ;;  %s34_s21 = sadd.s32 1, %s11083_s21   ;;  %s15038_s10 = sld [smem:[#allocation22_spill]] }
 0xa3f   : > { %p14388_p10 = scmp.ge.s32.totalorder %s34_s21, 6   ;;  %s15039_s7 = sld [smem:[#allocation23_spill]] }
 0xa40   : > { %s15040_s12 = smov %s15070_s25  ;;  %s15041_s28 = sld [smem:[#allocation24_spill]] }
 0xa41   : > { %s15042_s6 = smov %s11431_s26  ;;  %s15043_s17 = sld [smem:[#allocation27_spill]] }
 0xa42   : > { %s15044_s18 = sld [smem:[#allocation28_spill]]  ;;  %s15045_s19 = sld [smem:[#allocation30_spill]] }
 0xa43   : > { %s15046_s20 = sld [smem:[#allocation31_spill]]  ;;  %s15049_s27 = smov %s15040_s12 }
 0xa44   : > { %s15047_s25 = smov %s15038_s10  ;;  %s15050_s29 = smov %s11051_s30 }
 0xa45   : > { %s15048_s26 = smov %s15039_s7  ;;  %s15051_s30 = smov %s11332_s13 }
 0xa46   : > { %s15052_s14 = smov %s11059_s15  ;;  %s15053_s15 = smov %s11063_s16 }
 0xa47   : > { %s15054_s16 = smov %s15042_s6  ;;  %33 = sbr.rel (!%p14388_p10) target bundleno = 29 (0x1d), region = 157 }
 0xa4e   :  { %6408 = vsyncpa [#allocation4], 1 }
 0xa4f   :  { %6410 = vsyncpa [#allocation4 + $0x1], 1 }
 0xa50   :  { %6411 = vsyncpa [#allocation7], 1 }
 0xa51   :  { %6413 = vsyncpa [#allocation7 + $0x1], 1 }
 0xa52   :  { %6414 = vsyncpa [#allocation10], 1 }
 0xa53   :  { %6415 = vsyncpa [#allocation13], 1 }
 0xa54   :  { %6416 = vsyncpa [#allocation5], 1 }
 0xa55   :  { %6418 = vsyncpa [#allocation5 + $0x1], 1 }

</bundles_post_ra>
